<compile_context>
chip_gen: v7x
topology: tpu7x:2x2x1
jax: 0.10.0
libtpu: 0.0.40
codegen_flags: <defaults>
</compile_context>

<pallas_src>
import jax
import jax.numpy as jnp
from jax import lax
from jax.experimental import pallas as pl
from jax.experimental.pallas import tpu as pltpu


def _round_up(a, b):
    return (a + b - 1) // b * b


# ----------------------------------------------------------------------------
# Kernel 1: M-tiled matmul with fused bias (fused FDPA conv1|conv2, d -> 2d)
# ----------------------------------------------------------------------------
def _matmul_kernel(x_ref, w_ref, b_ref, o_ref):
    # f32 blocks arrive via DMA; bf16 cast happens in VMEM (cheap VPU work
    # hidden under the DMA), f32 accumulation on the MXU.
    y = jnp.dot(x_ref[...].astype(jnp.bfloat16),
                w_ref[...].astype(jnp.bfloat16),
                preferred_element_type=jnp.float32)
    o_ref[...] = (y + b_ref[...]).astype(o_ref.dtype)


def pallas_matmul_bias(x, w, b, tm=256):
    """y = x @ w + b.  x:(M,K) f32, w:(K,N), b:(N,).  Returns f32 (M,N)."""
    M, K = x.shape
    K2, N = w.shape
    assert K == K2
    tm = min(tm, _round_up(M, 8))
    Mp = _round_up(M, tm)
    xp = x if Mp == M else jnp.pad(x, ((0, Mp - M), (0, 0)))
    y = pl.pallas_call(
        _matmul_kernel,
        out_shape=jax.ShapeDtypeStruct((Mp, N), jnp.float32),
        grid=(Mp // tm,),
        in_specs=[
            pl.BlockSpec((tm, K), lambda i: (i, 0)),
            pl.BlockSpec((K, N), lambda i: (0, 0)),
            pl.BlockSpec((1, N), lambda i: (0, 0)),
        ],
        out_specs=pl.BlockSpec((tm, N), lambda i: (i, 0)),
        compiler_params=pltpu.CompilerParams(dimension_semantics=("parallel",)),
    )(xp.astype(jnp.float32), w.astype(jnp.float32),
      b.reshape(1, N).astype(jnp.float32))
    return y[:M] if Mp != M else y


# ----------------------------------------------------------------------------
# Kernel 2: fused "tail" — dual BiasFree-LayerNorm + add, FFN project_in,
#           3x3 depthwise conv, relu-gate, project_out, and the +x residual.
#           One grid step per batch image; wide intermediates stay in VMEM.
# ----------------------------------------------------------------------------
def _ffn_tail_kernel(y_ref, x_ref, w2_ref, w1_ref, win_ref, wdw_ref, wout_ref,
                     o_ref):
    H, W, d = x_ref.shape
    C = wdw_ref.shape[-1]          # 2 * hidden
    hidden = C // 2

    y = y_ref[...]                 # (H,W,d) f32 — CBAM output
    x = x_ref[...]                 # (H,W,d) f32 — block input (residual source)

    def biasfree_ln(t, w):
        # torch: x / sqrt(var(x, unbiased=False) + 1e-5) * weight
        mu = jnp.mean(t, axis=-1, keepdims=True)
        var = jnp.mean(jnp.square(t - mu), axis=-1, keepdims=True)
        return t * lax.rsqrt(var + 1e-5) * w

    z = biasfree_ln(y, w2_ref[...]) + biasfree_ln(x, w1_ref[...])   # (H,W,d)

    # project_in: 1x1 conv  d -> 2*hidden (bias=False), bf16 on the MXU
    h = jnp.dot(z.reshape(H * W, d).astype(jnp.bfloat16),
                win_ref[...].astype(jnp.bfloat16),
                preferred_element_type=jnp.float32)                 # (H*W, C)
    h = h.reshape(H, W, C)

    # 3x3 depthwise conv with "same" zero padding; halo is built in VMEM with
    # concatenates (no wrapper-side jnp.pad HBM pass).
    zr = jnp.zeros((1, W, C), jnp.float32)
    zc = jnp.zeros((H + 2, 1, C), jnp.float32)
    hp = jnp.concatenate([zr, h, zr], axis=0)                       # (H+2, W,   C)
    hp = jnp.concatenate([zc, hp, zc], axis=1)                      # (H+2, W+2, C)
    wdw = wdw_ref[...]                                              # (3,3,C)
    acc = jnp.zeros((H, W, C), jnp.float32)
    for kh in range(3):
        for kw in range(3):
            acc = acc + hp[kh:kh + H, kw:kw + W, :] * wdw[kh, kw]

    # gated nonlinearity: relu(x1) * x2 — both channel halves already in VMEM.
    g = jnp.maximum(acc[..., :hidden], 0.0) * acc[..., hidden:]     # (H,W,hidden)

    # project_out: 1x1 conv hidden -> d (bias=False), plus the +x residual.
    out = jnp.dot(g.reshape(H * W, hidden).astype(jnp.bfloat16),
                  wout_ref[...].astype(jnp.bfloat16),
                  preferred_element_type=jnp.float32)               # (H*W, d)
    o_ref[...] = (out.reshape(H, W, d) + x).astype(o_ref.dtype)


def pallas_ffn_tail(cbam_out, x, norm2_w, norm1_w, w_in, w_dw, w_out):
    B, H, W, d = x.shape
    hidden, d2 = w_out.shape
    assert d2 == d
    C = 2 * hidden
    # TODO(synk): for large H*W this full-image-per-step tile should be row-tiled
    # with a 1-row halo to respect the 32 MiB scoped VMEM budget (64 MiB on v7x);
    # at these shapes one image (~0.4 MiB of f32 intermediates) fits trivially.
    return pl.pallas_call(
        _ffn_tail_kernel,
        out_shape=jax.ShapeDtypeStruct((B, H, W, d), jnp.float32),
        grid=(B,),
        in_specs=[
            pl.BlockSpec((None, H, W, d), lambda b: (b, 0, 0, 0)),
            pl.BlockSpec((None, H, W, d), lambda b: (b, 0, 0, 0)),
            pl.BlockSpec((1, d), lambda b: (0, 0)),
            pl.BlockSpec((1, d), lambda b: (0, 0)),
            pl.BlockSpec((d, C), lambda b: (0, 0)),
            pl.BlockSpec((3, 3, C), lambda b: (0, 0, 0)),
            pl.BlockSpec((hidden, d), lambda b: (0, 0)),
        ],
        out_specs=pl.BlockSpec((None, H, W, d), lambda b: (b, 0, 0, 0)),
        compiler_params=pltpu.CompilerParams(dimension_semantics=("parallel",)),
    )(cbam_out.astype(jnp.float32), x.astype(jnp.float32),
      norm2_w.reshape(1, d).astype(jnp.float32),
      norm1_w.reshape(1, d).astype(jnp.float32),
      w_in.astype(jnp.float32), w_dw.astype(jnp.float32),
      w_out.astype(jnp.float32))


# ----------------------------------------------------------------------------
# Module blocks (functional, NHWC)
# ----------------------------------------------------------------------------
def fdpa(x, p):
    B, H, W, d = x.shape
    M = B * H * W
    # conv1 and conv2 fused into a single 1x1 conv (d -> 2d).
    w12 = jnp.concatenate([p["w1"], p["w2"]], axis=1)          # (d, 2d)
    b12 = jnp.concatenate([p["b1"], p["b2"]], axis=0)          # (2d,)
    y = pallas_matmul_bias(x.reshape(M, d), w12, b12).reshape(B, H, W, 2 * d)
    x1, x2 = y[..., :d], y[..., d:]
    # TODO(synk): FFT has no Pallas primitive on TPU; fft2/ifft2 use jnp.fft (XLA FFT).
    # Matches torch: x1 (spatial) * fft2(x2), then ifft2 and abs.
    x2f = jnp.fft.fft2(x2.astype(jnp.complex64), axes=(1, 2))
    out = jnp.abs(jnp.fft.ifft2(x1.astype(jnp.complex64) * x2f, axes=(1, 2)))
    return out * p["alpha"] + x * p["beta"]


def cam(x, p):
    # Tiny (B,C)@(C,C//r) MLP (C//r can be 1): Pallas launch overhead dominates;
    # leave it to XLA so it fuses with the pooling / sigmoid.
    mx = jnp.max(x, axis=(1, 2))
    av = jnp.mean(x, axis=(1, 2))

    def mlp(v):
        h = jax.nn.relu(v @ p["w1"] + p["b1"])
        return h @ p["w2"] + p["b2"]

    gate = jax.nn.sigmoid(mlp(mx) + mlp(av))
    return gate[:, None, None, :] * x


def sam(x, w):
    mx = jnp.max(x, axis=-1, keepdims=True)
    av = jnp.mean(x, axis=-1, keepdims=True)
    cc = jnp.concatenate([mx, av], axis=-1)                    # (B,H,W,2)
    # TODO(synk): 2->1 channel 7x7 conv is too small for a Pallas kernel; XLA conv used.
    g = lax.conv_general_dilated(cc, w, window_strides=(1, 1),
                                 padding=((3, 3), (3, 3)),
                                 dimension_numbers=("NHWC", "HWIO", "NHWC"))
    return jax.nn.sigmoid(g) * x


def cbam(x, p):
    out = cam(x, p["cam"])
    out = sam(out, p["sam_w"])
    return out + x


def hybrid_domain_attention(params, x_nchw):
    x = jnp.transpose(x_nchw, (0, 2, 3, 1)).astype(jnp.float32)   # NCHW -> NHWC
    out = fdpa(x, params["fpa"])
    out = cbam(out, params["cbam"])
    # norm2(out) + norm1(x) -> FFN -> + x, all fused in one Pallas kernel.
    out = pallas_ffn_tail(out, x, params["norm2_w"], params["norm1_w"],
                          params["ffn"]["w_in"], params["ffn"]["w_dw"],
                          params["ffn"]["w_out"])
    return jnp.transpose(out, (0, 3, 1, 2))                       # NHWC -> NCHW


# ----------------------------------------------------------------------------
# Deterministic synthetic parameters
# ----------------------------------------------------------------------------
def init_params(key, dim=16, reduction=16):
    hid = max(dim // reduction, 1)
    ks = jax.random.split(key, 12)
    n = lambda k, shape, s=0.05: s * jax.random.normal(k, shape, jnp.float32)
    return dict(
        norm1_w=jnp.ones((dim,), jnp.float32),
        norm2_w=jnp.ones((dim,), jnp.float32),
        fpa=dict(w1=n(ks[0], (dim, dim)), b1=n(ks[1], (dim,), 0.02),
                 w2=n(ks[2], (dim, dim)), b2=n(ks[3], (dim,), 0.02),
                 alpha=jnp.zeros((dim,), jnp.float32),    # nn.Parameter(zeros(dim,1,1))
                 beta=jnp.ones((dim,), jnp.float32)),     # nn.Parameter(ones(dim,1,1))
        cbam=dict(cam=dict(w1=n(ks[4], (dim, hid)), b1=n(ks[5], (hid,), 0.02),
                           w2=n(ks[6], (hid, dim)), b2=n(ks[7], (dim,), 0.02)),
                  sam_w=n(ks[8], (7, 7, 2, 1))),
        ffn=dict(w_in=n(ks[9], (dim, 6 * dim)),
                 w_dw=n(ks[10], (3, 3, 6 * dim)),
                 w_out=n(ks[11], (3 * dim, dim))),
    )


if __name__ == "__main__":
    key = jax.random.PRNGKey(0)
    kx, kp = jax.random.split(key)
    # NCHW like PyTorch: batch=2, channels=dim=16, spatial 16x16 (reduction=16 -> C//r = 1)
    x = jax.random.normal(kx, (2, 16, 16, 16), jnp.float32)
    params = init_params(kp, dim=16, reduction=16)

    fwd = jax.jit(hybrid_domain_attention)
    y = fwd(params, x)
    jax.block_until_ready(y)

    assert y.shape == (2, 16, 16, 16)
    assert bool(jnp.all(jnp.isfinite(y)))
    print("KERNEL_OK")
</pallas_src>

<mosaic_0001>
module attributes {stable_mosaic.version = 11 : i64} {
  func.func @_matmul_kernel(%arg0: i32, %arg1: memref<256x16xf32, #tpu.memory_space<vmem>>, %arg2: memref<16x32xf32, #tpu.memory_space<vmem>>, %arg3: memref<1x32xf32, #tpu.memory_space<vmem>>, %arg4: memref<256x32xf32, #tpu.memory_space<vmem>>) attributes {dimension_semantics = [#tpu.dimension_semantics<parallel>], iteration_bounds = array<i64: 2>, scalar_prefetch = 0 : i64, scratch_operands = 0 : i64, tpu.core_type = #tpu.core_type<tc>, window_params = [{transform_indices = @transform_0, window_bounds = array<i64: 256, 16>}, {pipeline_mode = #tpu.pipeline_mode<synchronous>, transform_indices = @transform_1, window_bounds = array<i64: 16, 32>}, {pipeline_mode = #tpu.pipeline_mode<synchronous>, transform_indices = @transform_2, window_bounds = array<i64: 1, 32>}, {transform_indices = @transform_3, window_bounds = array<i64: 256, 32>}]} {
    %c0 = arith.constant 0 : index
    %c0_0 = arith.constant 0 : index
    %0 = vector.load %arg1[%c0, %c0_0] : memref<256x16xf32, #tpu.memory_space<vmem>>, vector<256x16xf32>
    %1 = arith.truncf %0 : vector<256x16xf32> to vector<256x16xbf16>
    %c0_1 = arith.constant 0 : index
    %c0_2 = arith.constant 0 : index
    %2 = vector.load %arg2[%c0_1, %c0_2] : memref<16x32xf32, #tpu.memory_space<vmem>>, vector<16x32xf32>
    %3 = arith.truncf %2 : vector<16x32xf32> to vector<16x32xbf16>
    %cst = arith.constant dense<0.000000e+00> : vector<256x32xf32>
    %4 = tpu.matmul %1, %3, %cst {dimension_numbers = #tpu.dot_dimension_numbers<[1], [0], [0], [1], [0, 0, 1, 1], [], []>} : vector<256x16xbf16>, vector<16x32xbf16>, vector<256x32xf32> -> vector<256x32xf32>
    %c0_3 = arith.constant 0 : index
    %c0_4 = arith.constant 0 : index
    %5 = vector.load %arg3[%c0_3, %c0_4] : memref<1x32xf32, #tpu.memory_space<vmem>>, vector<1x32xf32>
    %6 = vector.broadcast %5 : vector<1x32xf32> to vector<256x32xf32>
    %7 = arith.addf %4, %6 : vector<256x32xf32>
    %c0_5 = arith.constant 0 : index
    %c0_6 = arith.constant 0 : index
    %8 = vector.load %arg4[%c0_5, %c0_6] : memref<256x32xf32, #tpu.memory_space<vmem>>, vector<256x32xf32>
    tpu.vector_store %arg4[%c0_5, %c0_6], %7 {strides = array<i32>} : memref<256x32xf32, #tpu.memory_space<vmem>>, vector<256x32xf32>,
    return
  }
  func.func @transform_0(%arg0: i32) -> (i32, i32) {
    %c0_i32 = arith.constant 0 : i32
    %c0_i32_0 = arith.constant 0 : i32
    return %arg0, %c0_i32 : i32, i32
  }
  func.func @transform_1(%arg0: i32) -> (i32, i32) {
    %c0_i32 = arith.constant 0 : i32
    %c0_i32_0 = arith.constant 0 : i32
    %c0_i32_1 = arith.constant 0 : i32
    return %c0_i32, %c0_i32_0 : i32, i32
  }
  func.func @transform_2(%arg0: i32) -> (i32, i32) {
    %c0_i32 = arith.constant 0 : i32
    %c0_i32_0 = arith.constant 0 : i32
    %c0_i32_1 = arith.constant 0 : i32
    return %c0_i32, %c0_i32_0 : i32, i32
  }
  func.func @transform_3(%arg0: i32) -> (i32, i32) {
    %c0_i32 = arith.constant 0 : i32
    %c0_i32_0 = arith.constant 0 : i32
    return %arg0, %c0_i32 : i32, i32
  }
}

module attributes {stable_mosaic.version = 11 : i64} {
  func.func @_ffn_tail_kernel(%arg0: i32, %arg1: memref<1x16x16x16xf32, #tpu.memory_space<vmem>>, %arg2: memref<1x16x16x16xf32, #tpu.memory_space<vmem>>, %arg3: memref<1x16xf32, #tpu.memory_space<vmem>>, %arg4: memref<1x16xf32, #tpu.memory_space<vmem>>, %arg5: memref<16x96xf32, #tpu.memory_space<vmem>>, %arg6: memref<3x3x96xf32, #tpu.memory_space<vmem>>, %arg7: memref<48x16xf32, #tpu.memory_space<vmem>>, %arg8: memref<1x16x16x16xf32, #tpu.memory_space<vmem>>) attributes {dimension_semantics = [#tpu.dimension_semantics<parallel>], iteration_bounds = array<i64: 2>, scalar_prefetch = 0 : i64, scratch_operands = 0 : i64, tpu.core_type = #tpu.core_type<tc>, window_params = [{transform_indices = @transform_0, window_bounds = array<i64: 1, 16, 16, 16>}, {transform_indices = @transform_1, window_bounds = array<i64: 1, 16, 16, 16>}, {pipeline_mode = #tpu.pipeline_mode<synchronous>, transform_indices = @transform_2, window_bounds = array<i64: 1, 16>}, {pipeline_mode = #tpu.pipeline_mode<synchronous>, transform_indices = @transform_3, window_bounds = array<i64: 1, 16>}, {pipeline_mode = #tpu.pipeline_mode<synchronous>, transform_indices = @transform_4, window_bounds = array<i64: 16, 96>}, {pipeline_mode = #tpu.pipeline_mode<synchronous>, transform_indices = @transform_5, window_bounds = array<i64: 3, 3, 96>}, {pipeline_mode = #tpu.pipeline_mode<synchronous>, transform_indices = @transform_6, window_bounds = array<i64: 48, 16>}, {transform_indices = @transform_7, window_bounds = array<i64: 1, 16, 16, 16>}]} {
    %c0 = arith.constant 0 : index
    %c0_0 = arith.constant 0 : index
    %c0_1 = arith.constant 0 : index
    %c0_2 = arith.constant 0 : index
    %0 = vector.load %arg1[%c0, %c0_0, %c0_1, %c0_2] : memref<1x16x16x16xf32, #tpu.memory_space<vmem>>, vector<1x16x16x16xf32>
    %1 = vector.shape_cast %0 : vector<1x16x16x16xf32> to vector<16x16x16xf32>
    %c0_3 = arith.constant 0 : index
    %c0_4 = arith.constant 0 : index
    %c0_5 = arith.constant 0 : index
    %c0_6 = arith.constant 0 : index
    %2 = vector.load %arg2[%c0_3, %c0_4, %c0_5, %c0_6] : memref<1x16x16x16xf32, #tpu.memory_space<vmem>>, vector<1x16x16x16xf32>
    %3 = vector.shape_cast %2 : vector<1x16x16x16xf32> to vector<16x16x16xf32>
    %c0_7 = arith.constant 0 : index
    %c0_8 = arith.constant 0 : index
    %4 = vector.load %arg3[%c0_7, %c0_8] : memref<1x16xf32, #tpu.memory_space<vmem>>, vector<1x16xf32>
    %cst = arith.constant dense<0.000000e+00> : vector<16x16xf32>
    %5 = vector.multi_reduction <add>, %1, %cst [2] : vector<16x16x16xf32> to vector<16x16xf32>
    %6 = vector.shape_cast %5 : vector<16x16xf32> to vector<16x16x1xf32>
    %cst_9 = arith.constant 1.600000e+01 : f32
    %7 = vector.broadcast %cst_9 : f32 to vector<16x16x1xf32>
    %8 = arith.divf %6, %7 : vector<16x16x1xf32>
    %9 = vector.broadcast %8 : vector<16x16x1xf32> to vector<16x16x16xf32>
    %10 = arith.subf %1, %9 : vector<16x16x16xf32>
    %11 = arith.mulf %10, %10 : vector<16x16x16xf32>
    %cst_10 = arith.constant dense<0.000000e+00> : vector<16x16xf32>
    %12 = vector.multi_reduction <add>, %11, %cst_10 [2] : vector<16x16x16xf32> to vector<16x16xf32>
    %13 = vector.shape_cast %12 : vector<16x16xf32> to vector<16x16x1xf32>
    %cst_11 = arith.constant 1.600000e+01 : f32
    %14 = vector.broadcast %cst_11 : f32 to vector<16x16x1xf32>
    %15 = arith.divf %13, %14 : vector<16x16x1xf32>
    %cst_12 = arith.constant 9.99999974E-6 : f32
    %16 = vector.broadcast %cst_12 : f32 to vector<16x16x1xf32>
    %17 = arith.addf %15, %16 : vector<16x16x1xf32>
    %18 = math.rsqrt %17 : vector<16x16x1xf32>
    %19 = vector.broadcast %18 : vector<16x16x1xf32> to vector<16x16x16xf32>
    %20 = arith.mulf %1, %19 : vector<16x16x16xf32>
    %21 = vector.shape_cast %4 : vector<1x16xf32> to vector<1x1x16xf32>
    %22 = vector.broadcast %21 : vector<1x1x16xf32> to vector<16x16x16xf32>
    %23 = arith.mulf %20, %22 : vector<16x16x16xf32>
    %c0_13 = arith.constant 0 : index
    %c0_14 = arith.constant 0 : index
    %24 = vector.load %arg4[%c0_13, %c0_14] : memref<1x16xf32, #tpu.memory_space<vmem>>, vector<1x16xf32>
    %cst_15 = arith.constant dense<0.000000e+00> : vector<16x16xf32>
    %25 = vector.multi_reduction <add>, %3, %cst_15 [2] : vector<16x16x16xf32> to vector<16x16xf32>
    %26 = vector.shape_cast %25 : vector<16x16xf32> to vector<16x16x1xf32>
    %cst_16 = arith.constant 1.600000e+01 : f32
    %27 = vector.broadcast %cst_16 : f32 to vector<16x16x1xf32>
    %28 = arith.divf %26, %27 : vector<16x16x1xf32>
    %29 = vector.broadcast %28 : vector<16x16x1xf32> to vector<16x16x16xf32>
    %30 = arith.subf %3, %29 : vector<16x16x16xf32>
    %31 = arith.mulf %30, %30 : vector<16x16x16xf32>
    %cst_17 = arith.constant dense<0.000000e+00> : vector<16x16xf32>
    %32 = vector.multi_reduction <add>, %31, %cst_17 [2] : vector<16x16x16xf32> to vector<16x16xf32>
    %33 = vector.shape_cast %32 : vector<16x16xf32> to vector<16x16x1xf32>
    %cst_18 = arith.constant 1.600000e+01 : f32
    %34 = vector.broadcast %cst_18 : f32 to vector<16x16x1xf32>
    %35 = arith.divf %33, %34 : vector<16x16x1xf32>
    %cst_19 = arith.constant 9.99999974E-6 : f32
    %36 = vector.broadcast %cst_19 : f32 to vector<16x16x1xf32>
    %37 = arith.addf %35, %36 : vector<16x16x1xf32>
    %38 = math.rsqrt %37 : vector<16x16x1xf32>
    %39 = vector.broadcast %38 : vector<16x16x1xf32> to vector<16x16x16xf32>
    %40 = arith.mulf %3, %39 : vector<16x16x16xf32>
    %41 = vector.shape_cast %24 : vector<1x16xf32> to vector<1x1x16xf32>
    %42 = vector.broadcast %41 : vector<1x1x16xf32> to vector<16x16x16xf32>
    %43 = arith.mulf %40, %42 : vector<16x16x16xf32>
    %44 = arith.addf %23, %43 : vector<16x16x16xf32>
    %45 = vector.shape_cast %44 : vector<16x16x16xf32> to vector<256x16xf32>
    %46 = arith.truncf %45 : vector<256x16xf32> to vector<256x16xbf16>
    %c0_20 = arith.constant 0 : index
    %c0_21 = arith.constant 0 : index
    %47 = vector.load %arg5[%c0_20, %c0_21] : memref<16x96xf32, #tpu.memory_space<vmem>>, vector<16x96xf32>
    %48 = arith.truncf %47 : vector<16x96xf32> to vector<16x96xbf16>
    %cst_22 = arith.constant dense<0.000000e+00> : vector<256x96xf32>
    %49 = tpu.matmul %46, %48, %cst_22 {dimension_numbers = #tpu.dot_dimension_numbers<[1], [0], [0], [1], [0, 0, 1, 1], [], []>} : vector<256x16xbf16>, vector<16x96xbf16>, vector<256x96xf32> -> vector<256x96xf32>
    %50 = vector.shape_cast %49 : vector<256x96xf32> to vector<16x16x96xf32>
    %cst_23 = arith.constant 0.000000e+00 : f32
    %51 = vector.broadcast %cst_23 : f32 to vector<1x16x96xf32>
    %cst_24 = arith.constant 0.000000e+00 : f32
    %52 = vector.broadcast %cst_24 : f32 to vector<18x1x96xf32>
    %53 = tpu.concatenate %51, %50, %51 in 0 : vector<1x16x96xf32>, vector<16x16x96xf32>, vector<1x16x96xf32> -> vector<18x16x96xf32>
    %54 = tpu.concatenate %52, %53, %52 in 1 : vector<18x1x96xf32>, vector<18x16x96xf32>, vector<18x1x96xf32> -> vector<18x18x96xf32>
    %c0_25 = arith.constant 0 : index
    %c0_26 = arith.constant 0 : index
    %c0_27 = arith.constant 0 : index
    %55 = vector.load %arg6[%c0_25, %c0_26, %c0_27] : memref<3x3x96xf32, #tpu.memory_space<vmem>>, vector<3x3x96xf32>
    %cst_28 = arith.constant 0.000000e+00 : f32
    %56 = vector.broadcast %cst_28 : f32 to vector<16x16x96xf32>
    %57 = vector.extract_strided_slice %54 {offsets = [0, 0, 0], sizes = [16, 16, 96], strides = [1, 1, 1]} : vector<18x18x96xf32> to vector<16x16x96xf32>
    %58 = vector.extract_strided_slice %55 {offsets = [0, 0, 0], sizes = [1, 1, 96], strides = [1, 1, 1]} : vector<3x3x96xf32> to vector<1x1x96xf32>
    %59 = vector.shape_cast %58 : vector<1x1x96xf32> to vector<96xf32>
    %60 = vector.shape_cast %59 : vector<96xf32> to vector<1x1x96xf32>
    %61 = vector.broadcast %60 : vector<1x1x96xf32> to vector<16x16x96xf32>
    %62 = arith.mulf %57, %61 : vector<16x16x96xf32>
    %63 = arith.addf %56, %62 : vector<16x16x96xf32>
    %64 = vector.extract_strided_slice %54 {offsets = [0, 1, 0], sizes = [16, 16, 96], strides = [1, 1, 1]} : vector<18x18x96xf32> to vector<16x16x96xf32>
    %65 = vector.extract_strided_slice %55 {offsets = [0, 1, 0], sizes = [1, 1, 96], strides = [1, 1, 1]} : vector<3x3x96xf32> to vector<1x1x96xf32>
    %66 = vector.shape_cast %65 : vector<1x1x96xf32> to vector<96xf32>
    %67 = vector.shape_cast %66 : vector<96xf32> to vector<1x1x96xf32>
    %68 = vector.broadcast %67 : vector<1x1x96xf32> to vector<16x16x96xf32>
    %69 = arith.mulf %64, %68 : vector<16x16x96xf32>
    %70 = arith.addf %63, %69 : vector<16x16x96xf32>
    %71 = vector.extract_strided_slice %54 {offsets = [0, 2, 0], sizes = [16, 16, 96], strides = [1, 1, 1]} : vector<18x18x96xf32> to vector<16x16x96xf32>
    %72 = vector.extract_strided_slice %55 {offsets = [0, 2, 0], sizes = [1, 1, 96], strides = [1, 1, 1]} : vector<3x3x96xf32> to vector<1x1x96xf32>
    %73 = vector.shape_cast %72 : vector<1x1x96xf32> to vector<96xf32>
    %74 = vector.shape_cast %73 : vector<96xf32> to vector<1x1x96xf32>
    %75 = vector.broadcast %74 : vector<1x1x96xf32> to vector<16x16x96xf32>
    %76 = arith.mulf %71, %75 : vector<16x16x96xf32>
    %77 = arith.addf %70, %76 : vector<16x16x96xf32>
    %78 = vector.extract_strided_slice %54 {offsets = [1, 0, 0], sizes = [16, 16, 96], strides = [1, 1, 1]} : vector<18x18x96xf32> to vector<16x16x96xf32>
    %79 = vector.extract_strided_slice %55 {offsets = [1, 0, 0], sizes = [1, 1, 96], strides = [1, 1, 1]} : vector<3x3x96xf32> to vector<1x1x96xf32>
    %80 = vector.shape_cast %79 : vector<1x1x96xf32> to vector<96xf32>
    %81 = vector.shape_cast %80 : vector<96xf32> to vector<1x1x96xf32>
    %82 = vector.broadcast %81 : vector<1x1x96xf32> to vector<16x16x96xf32>
    %83 = arith.mulf %78, %82 : vector<16x16x96xf32>
    %84 = arith.addf %77, %83 : vector<16x16x96xf32>
    %85 = vector.extract_strided_slice %54 {offsets = [1, 1, 0], sizes = [16, 16, 96], strides = [1, 1, 1]} : vector<18x18x96xf32> to vector<16x16x96xf32>
    %86 = vector.extract_strided_slice %55 {offsets = [1, 1, 0], sizes = [1, 1, 96], strides = [1, 1, 1]} : vector<3x3x96xf32> to vector<1x1x96xf32>
    %87 = vector.shape_cast %86 : vector<1x1x96xf32> to vector<96xf32>
    %88 = vector.shape_cast %87 : vector<96xf32> to vector<1x1x96xf32>
    %89 = vector.broadcast %88 : vector<1x1x96xf32> to vector<16x16x96xf32>
    %90 = arith.mulf %85, %89 : vector<16x16x96xf32>
    %91 = arith.addf %84, %90 : vector<16x16x96xf32>
    %92 = vector.extract_strided_slice %54 {offsets = [1, 2, 0], sizes = [16, 16, 96], strides = [1, 1, 1]} : vector<18x18x96xf32> to vector<16x16x96xf32>
    %93 = vector.extract_strided_slice %55 {offsets = [1, 2, 0], sizes = [1, 1, 96], strides = [1, 1, 1]} : vector<3x3x96xf32> to vector<1x1x96xf32>
    %94 = vector.shape_cast %93 : vector<1x1x96xf32> to vector<96xf32>
    %95 = vector.shape_cast %94 : vector<96xf32> to vector<1x1x96xf32>
    %96 = vector.broadcast %95 : vector<1x1x96xf32> to vector<16x16x96xf32>
    %97 = arith.mulf %92, %96 : vector<16x16x96xf32>
    %98 = arith.addf %91, %97 : vector<16x16x96xf32>
    %99 = vector.extract_strided_slice %54 {offsets = [2, 0, 0], sizes = [16, 16, 96], strides = [1, 1, 1]} : vector<18x18x96xf32> to vector<16x16x96xf32>
    %100 = vector.extract_strided_slice %55 {offsets = [2, 0, 0], sizes = [1, 1, 96], strides = [1, 1, 1]} : vector<3x3x96xf32> to vector<1x1x96xf32>
    %101 = vector.shape_cast %100 : vector<1x1x96xf32> to vector<96xf32>
    %102 = vector.shape_cast %101 : vector<96xf32> to vector<1x1x96xf32>
    %103 = vector.broadcast %102 : vector<1x1x96xf32> to vector<16x16x96xf32>
    %104 = arith.mulf %99, %103 : vector<16x16x96xf32>
    %105 = arith.addf %98, %104 : vector<16x16x96xf32>
    %106 = vector.extract_strided_slice %54 {offsets = [2, 1, 0], sizes = [16, 16, 96], strides = [1, 1, 1]} : vector<18x18x96xf32> to vector<16x16x96xf32>
    %107 = vector.extract_strided_slice %55 {offsets = [2, 1, 0], sizes = [1, 1, 96], strides = [1, 1, 1]} : vector<3x3x96xf32> to vector<1x1x96xf32>
    %108 = vector.shape_cast %107 : vector<1x1x96xf32> to vector<96xf32>
    %109 = vector.shape_cast %108 : vector<96xf32> to vector<1x1x96xf32>
    %110 = vector.broadcast %109 : vector<1x1x96xf32> to vector<16x16x96xf32>
    %111 = arith.mulf %106, %110 : vector<16x16x96xf32>
    %112 = arith.addf %105, %111 : vector<16x16x96xf32>
    %113 = vector.extract_strided_slice %54 {offsets = [2, 2, 0], sizes = [16, 16, 96], strides = [1, 1, 1]} : vector<18x18x96xf32> to vector<16x16x96xf32>
    %114 = vector.extract_strided_slice %55 {offsets = [2, 2, 0], sizes = [1, 1, 96], strides = [1, 1, 1]} : vector<3x3x96xf32> to vector<1x1x96xf32>
    %115 = vector.shape_cast %114 : vector<1x1x96xf32> to vector<96xf32>
    %116 = vector.shape_cast %115 : vector<96xf32> to vector<1x1x96xf32>
    %117 = vector.broadcast %116 : vector<1x1x96xf32> to vector<16x16x96xf32>
    %118 = arith.mulf %113, %117 : vector<16x16x96xf32>
    %119 = arith.addf %112, %118 : vector<16x16x96xf32>
    %120 = vector.extract_strided_slice %119 {offsets = [0, 0, 0], sizes = [16, 16, 48], strides = [1, 1, 1]} : vector<16x16x96xf32> to vector<16x16x48xf32>
    %cst_29 = arith.constant 0.000000e+00 : f32
    %121 = vector.broadcast %cst_29 : f32 to vector<16x16x48xf32>
    %122 = arith.maximumf %120, %121 : vector<16x16x48xf32>
    %123 = vector.extract_strided_slice %119 {offsets = [0, 0, 48], sizes = [16, 16, 48], strides = [1, 1, 1]} : vector<16x16x96xf32> to vector<16x16x48xf32>
    %124 = arith.mulf %122, %123 : vector<16x16x48xf32>
    %125 = vector.shape_cast %124 : vector<16x16x48xf32> to vector<256x48xf32>
    %126 = arith.truncf %125 : vector<256x48xf32> to vector<256x48xbf16>
    %c0_30 = arith.constant 0 : index
    %c0_31 = arith.constant 0 : index
    %127 = vector.load %arg7[%c0_30, %c0_31] : memref<48x16xf32, #tpu.memory_space<vmem>>, vector<48x16xf32>
    %128 = arith.truncf %127 : vector<48x16xf32> to vector<48x16xbf16>
    %cst_32 = arith.constant dense<0.000000e+00> : vector<256x16xf32>
    %129 = tpu.matmul %126, %128, %cst_32 {dimension_numbers = #tpu.dot_dimension_numbers<[1], [0], [0], [1], [0, 0, 1, 1], [], []>} : vector<256x48xbf16>, vector<48x16xbf16>, vector<256x16xf32> -> vector<256x16xf32>
    %130 = vector.shape_cast %129 : vector<256x16xf32> to vector<16x16x16xf32>
    %131 = arith.addf %130, %3 : vector<16x16x16xf32>
    %c0_33 = arith.constant 0 : index
    %c0_34 = arith.constant 0 : index
    %c0_35 = arith.constant 0 : index
    %c0_36 = arith.constant 0 : index
    %132 = vector.load %arg8[%c0_33, %c0_34, %c0_35, %c0_36] : memref<1x16x16x16xf32, #tpu.memory_space<vmem>>, vector<1x16x16x16xf32>
    %133 = vector.shape_cast %132 : vector<1x16x16x16xf32> to vector<16x16x16xf32>
    %134 = vector.shape_cast %131 : vector<16x16x16xf32> to vector<1x16x16x16xf32>
    tpu.vector_store %arg8[%c0_33, %c0_34, %c0_35, %c0_36], %134 {strides = array<i32>} : memref<1x16x16x16xf32, #tpu.memory_space<vmem>>, vector<1x16x16x16xf32>,
    return
  }
  func.func @transform_0(%arg0: i32) -> (i32, i32, i32, i32) {
    %c0_i32 = arith.constant 0 : i32
    %c0_i32_0 = arith.constant 0 : i32
    %c0_i32_1 = arith.constant 0 : i32
    %c0_i32_2 = arith.constant 0 : i32
    return %arg0, %c0_i32, %c0_i32_0, %c0_i32_1 : i32, i32, i32, i32
  }
  func.func @transform_1(%arg0: i32) -> (i32, i32, i32, i32) {
    %c0_i32 = arith.constant 0 : i32
    %c0_i32_0 = arith.constant 0 : i32
    %c0_i32_1 = arith.constant 0 : i32
    %c0_i32_2 = arith.constant 0 : i32
    return %arg0, %c0_i32, %c0_i32_0, %c0_i32_1 : i32, i32, i32, i32
  }
  func.func @transform_2(%arg0: i32) -> (i32, i32) {
    %c0_i32 = arith.constant 0 : i32
    %c0_i32_0 = arith.constant 0 : i32
    %c0_i32_1 = arith.constant 0 : i32
    return %c0_i32, %c0_i32_0 : i32, i32
  }
  func.func @transform_3(%arg0: i32) -> (i32, i32) {
    %c0_i32 = arith.constant 0 : i32
    %c0_i32_0 = arith.constant 0 : i32
    %c0_i32_1 = arith.constant 0 : i32
    return %c0_i32, %c0_i32_0 : i32, i32
  }
  func.func @transform_4(%arg0: i32) -> (i32, i32) {
    %c0_i32 = arith.constant 0 : i32
    %c0_i32_0 = arith.constant 0 : i32
    %c0_i32_1 = arith.constant 0 : i32
    return %c0_i32, %c0_i32_0 : i32, i32
  }
  func.func @transform_5(%arg0: i32) -> (i32, i32, i32) {
    %c0_i32 = arith.constant 0 : i32
    %c0_i32_0 = arith.constant 0 : i32
    %c0_i32_1 = arith.constant 0 : i32
    %c0_i32_2 = arith.constant 0 : i32
    return %c0_i32, %c0_i32_0, %c0_i32_1 : i32, i32, i32
  }
  func.func @transform_6(%arg0: i32) -> (i32, i32) {
    %c0_i32 = arith.constant 0 : i32
    %c0_i32_0 = arith.constant 0 : i32
    %c0_i32_1 = arith.constant 0 : i32
    return %c0_i32, %c0_i32_0 : i32, i32
  }
  func.func @transform_7(%arg0: i32) -> (i32, i32, i32, i32) {
    %c0_i32 = arith.constant 0 : i32
    %c0_i32_0 = arith.constant 0 : i32
    %c0_i32_1 = arith.constant 0 : i32
    %c0_i32_2 = arith.constant 0 : i32
    return %arg0, %c0_i32, %c0_i32_0, %c0_i32_1 : i32, i32, i32, i32
  }
}

</mosaic_0001>

<bundles_post_ra>
// kernel: hybrid_domain_attention.2
= control target key start
LH: loop header
LB: loop body
LE: loop exit
PB: predicated region body
PF: predicated region fallthrough
CT: control target
= control target key end

     0   :  { %s649_s12 = smov 0   ;;  %s832_s0 = inlined_call_operand.vmem [shape: f32[512,16], index: 0, kind: input, shape index: {}]   ;;  %s833_s1 = inlined_call_operand.vmem [shape: f32[16,32], index: 1, kind: input, shape index: {}]   ;;  %s834_s2 = inlined_call_operand.vmem [shape: f32[1,32], index: 2, kind: input, shape index: {}]   ;;  %s835_s3 = inlined_call_operand.vmem [shape: f32[512,32], index: 3, kind: output, shape index: {}]  }
   0x1 LB: > { %s532_s13 = sadd.s32 4294967295, %s627_s12   ;;  %p536_p0 = scmp.ge.s32.totalorder %s627_s12, 1  ;;  %s627_s12 = sphi %s649_s12, %s13_s12  }
   0x2   : > { %p138_p1 = scmp.lt.s32.totalorder %s627_s12, 3 }
   0x4   : > { %p139_p2 = pnand %p536_p0, %p138_p1 }
   0x5   : > { %v223_v0 = vld [vmem:[%s833_s1] sm:$0xff] (!%p139_p2)  ;;  %v224_v1 = vld [vmem:[%s833_s1 + $0x8] sm:$0xff] (!%p139_p2)  ;;  %s537_s18 = sshll.u32 (!%p139_p2), %s532_s13, 5  ;;  %vm233_vm0 = vcmask (!%p139_p2), 130048   ;;  %vm443_vm1 = vcmask (!%p139_p2), 261120  }
   0x6   : > { %142 = sbr.rel (%p139_p2) target bundleno = 263 (0x107), region = 32  ;;  %v225_v2 = vpack.c.bf16 (!%p139_p2), %v224_v1, %v223_v0  ;;  %p163_p3 = scmp.lt.s32.totalorder (!%p139_p2), %s537_s18, 63  ;;  %v724_v51 = vld [vmem:[%s834_s2] ss:$0 sm:$0xff] (!%p139_p2) }
   0x8   : > { %577 = vmatprep.subr.bf16.mxu0 (!%p139_p2), %v225_v2  ;;  %611 = vmatprep.subr.bf16.mxu1 (!%p139_p2), %v225_v2 }
   0x9   : > { %578 = vmatpush3.bf16.msra.mxu0 (!%p139_p2), %v225_v2  ;;  %612 = vmatpush3.bf16.msra.mxu1 (!%p139_p2), %v225_v2 }
   0xd   : > { %s837_s18 = smov (!%p163_p3, %s537_s18), 63 }
   0xe   : > { %s538_s19 = sshll.u32 %s837_s18, 3 }
   0xf   : > { %s671_s22 = scalar_lea.vmem %s832_s0, %s538_s19  ;;  %s731_s27 = scalar_lea.vmem %s835_s3, %s538_s19 }
  0x10   : > { %v175_v3 = vld [vmem:[%s671_s22] sm:$0xff]  ;;  %v176_v4 = vld [vmem:[%s671_s22 + $0x8] sm:$0xff]  ;;  %v177_v8 = vld [vmem:[%s671_s22 + $0x10] sm:$0xff] }
  0x11   : > { %v191_v5 = vld [vmem:[%s671_s22 + $0x80] sm:$0xff]  ;;  %v207_v6 = vpack.c.bf16 %v176_v4, %v175_v3  ;;  %v192_v7 = vld [vmem:[%s671_s22 + $0x88] sm:$0xff]  ;;  %v178_v9 = vld [vmem:[%s671_s22 + $0x18] sm:$0xff] }
  0x12   : > { %v215_v10 = vpack.c.bf16 %v192_v7, %v191_v5  ;;  %v208_v11 = vpack.c.bf16 %v178_v9, %v177_v8  ;;  %v193_v12 = vld [vmem:[%s671_s22 + $0x90] sm:$0xff]  ;;  %v194_v13 = vld [vmem:[%s671_s22 + $0x98] sm:$0xff]  ;;  %v179_v14 = vld [vmem:[%s671_s22 + $0x20] sm:$0xff] }
  0x13   : > { %579 = vmatprep.mubr.msk.bf16.mxu0 %vm233_vm0, %v207_v6  ;;  %v216_v15 = vpack.c.bf16 %v194_v13, %v193_v12  ;;  %v180_v16 = vld [vmem:[%s671_s22 + $0x28] sm:$0xff]  ;;  %v195_v17 = vld [vmem:[%s671_s22 + $0xa0] sm:$0xff]  ;;  %v181_v21 = vld [vmem:[%s671_s22 + $0x30] sm:$0xff] }
  0x14   : > { %v196_v18 = vld [vmem:[%s671_s22 + $0xa8] sm:$0xff]  ;;  %595 = vmatprep.mubr.msk.bf16.mxu1 %vm233_vm0, %v215_v10  ;;  %580 = vmatmul.mubr.msk.bf16.vlgmr.msra.gmra.mrb[0].mxu0 %vm233_vm0, %v208_v11  ;;  %v209_v19 = vpack.c.bf16 %v180_v16, %v179_v14  ;;  %v182_v22 = vld [vmem:[%s671_s22 + $0x38] sm:$0xff]  ;;  %v197_v23 = vld [vmem:[%s671_s22 + $0xb0] sm:$0xff] }
  0x15   : > { %v217_v20 = vpack.c.bf16 %v196_v18, %v195_v17  ;;  %596 = vmatmul.mubr.msk.bf16.vlgmr.msra.gmra.mrb[0].mxu1 %vm233_vm0, %v216_v15  ;;  %v198_v24 = vld [vmem:[%s671_s22 + $0xb8] sm:$0xff]  ;;  %v183_v25 = vld [vmem:[%s671_s22 + $0x40] sm:$0xff]  ;;  %v184_v26 = vld [vmem:[%s671_s22 + $0x48] sm:$0xff]  ;;  %v210_v29 = vpack.c.bf16 %v182_v22, %v181_v21 }
  0x16   : > { %583 = vmatprep.mubr.msk.bf16.mxu0 %vm233_vm0, %v209_v19  ;;  %v199_v27 = vld [vmem:[%s671_s22 + $0xc0] sm:$0xff]  ;;  %v200_v28 = vld [vmem:[%s671_s22 + $0xc8] sm:$0xff]  ;;  %v218_v30 = vpack.c.bf16 %v198_v24, %v197_v23  ;;  %v211_v31 = vpack.c.bf16 %v184_v26, %v183_v25  ;;  %v185_v33 = vld [vmem:[%s671_s22 + $0x50] sm:$0xff] }
  0x17   : > { %599 = vmatprep.mubr.msk.bf16.mxu1 %vm233_vm0, %v217_v20  ;;  %v219_v32 = vpack.c.bf16 %v200_v28, %v199_v27  ;;  %v186_v34 = vld [vmem:[%s671_s22 + $0x58] sm:$0xff]  ;;  %v201_v35 = vld [vmem:[%s671_s22 + $0xd0] sm:$0xff]  ;;  %v187_v37 = vld [vmem:[%s671_s22 + $0x60] sm:$0xff] }
  0x18   : > { %v202_v36 = vld [vmem:[%s671_s22 + $0xd8] sm:$0xff]  ;;  %v188_v38 = vld [vmem:[%s671_s22 + $0x68] sm:$0xff]  ;;  %v203_v39 = vld [vmem:[%s671_s22 + $0xe0] sm:$0xff]  ;;  %v212_v41 = vpack.c.bf16 %v186_v34, %v185_v33 }
  0x19   : > { %v204_v40 = vld [vmem:[%s671_s22 + $0xe8] sm:$0xff]  ;;  %v220_v42 = vpack.c.bf16 %v202_v36, %v201_v35  ;;  %v213_v43 = vpack.c.bf16 %v188_v38, %v187_v37  ;;  %v189_v45 = vld [vmem:[%s671_s22 + $0x70] sm:$0xff]  ;;  %v190_v46 = vld [vmem:[%s671_s22 + $0x78] sm:$0xff] }
  0x1a   : > { %v221_v44 = vpack.c.bf16 %v204_v40, %v203_v39  ;;  %v205_v47 = vld [vmem:[%s671_s22 + $0xf0] sm:$0xff]  ;;  %v206_v48 = vld [vmem:[%s671_s22 + $0xf8] sm:$0xff]  ;;  %v214_v49 = vpack.c.bf16 %v190_v46, %v189_v45 }
  0x1b   : > { %v222_v50 = vpack.c.bf16 %v206_v48, %v205_v47 }
  0x1c   : > { %584 = vmatmul.mubr.msk.bf16.gmra.mrb[4].mxu0 %vm233_vm0, %v210_v29 }
  0x1d   : > { %600 = vmatmul.mubr.msk.bf16.gmra.mrb[4].mxu1 %vm233_vm0, %v218_v30  ;;  %587 = vmatprep.mubr.msk.bf16.mxu0 %vm233_vm0, %v211_v31 }
  0x1e   : > { %603 = vmatprep.mubr.msk.bf16.mxu1 %vm233_vm0, %v219_v32 }
  0x24   : > { %588 = vmatmul.mubr.msk.bf16.gmra.mrb[8].mxu0 %vm233_vm0, %v212_v41 }
  0x25   : > { %604 = vmatmul.mubr.msk.bf16.gmra.mrb[8].mxu1 %vm233_vm0, %v220_v42  ;;  %591 = vmatprep.mubr.msk.bf16.mxu0 %vm233_vm0, %v213_v43 }
  0x26   : > { %607 = vmatprep.mubr.msk.bf16.mxu1 %vm233_vm0, %v221_v44 }
  0x2c   : > { %592 = vmatmul.mubr.msk.bf16.gmra.mrb[12].mxu0 %vm233_vm0, %v214_v49 }
  0x2d   : > { %608 = vmatmul.mubr.msk.bf16.gmra.mrb[12].mxu1 %vm233_vm0, %v222_v50 }
  0xe7   : > { %v581_v52 = vpop.f32.mrb[0].mxu0 }
  0xe8   : > { %v325_v53 = vadd.f32 %v581_v52, %v724_v51  ;;  %v597_v54 = vpop.f32.mrb[0].mxu1  ;;  %v316_v55 = vpop.f32.mrb[1].mxu0 }
  0xe9   : > { %v389_v56 = vadd.f32 %v597_v54, %v724_v51  ;;  %v317_v57 = vadd.f32 %v724_v51, %v316_v55  ;;  %v380_v58 = vpop.f32.mrb[1].mxu1  ;;  %v582_v59 = vpop.f32.mrb[2].mxu0 }
  0xea   : > { %446 = vst.msk [vmem:[%s731_s27 + $0x10] sm:$0xff] %vm443_vm1, %v325_v53  ;;  %v381_v60 = vadd.f32 %v724_v51, %v380_v58  ;;  %v328_v61 = vadd.f32 %v582_v59, %v724_v51  ;;  %v598_v62 = vpop.f32.mrb[2].mxu1  ;;  %v319_v63 = vpop.f32.mrb[3].mxu0 }
  0xeb   : > { %462 = vst.msk [vmem:[%s731_s27 + $0x90] sm:$0xff] %vm443_vm1, %v389_v56  ;;  %444 = vst.msk [vmem:[%s731_s27] sm:$0xff] %vm443_vm1, %v317_v57  ;;  %v392_v0 = vadd.f32 %v598_v62, %v724_v51  ;;  %v320_v1 = vadd.f32 %v724_v51, %v319_v63  ;;  %v383_v2 = vpop.f32.mrb[3].mxu1 }
  0xec   : > { %460 = vst.msk [vmem:[%s731_s27 + $0x80] sm:$0xff] %vm443_vm1, %v381_v60  ;;  %447 = vst.msk [vmem:[%s731_s27 + $0x18] sm:$0xff] %vm443_vm1, %v328_v61  ;;  %v384_v3 = vadd.f32 %v724_v51, %v383_v2 }
  0xed   : > { %463 = vst.msk [vmem:[%s731_s27 + $0x98] sm:$0xff] %vm443_vm1, %v392_v0  ;;  %445 = vst.msk [vmem:[%s731_s27 + $0x8] sm:$0xff] %vm443_vm1, %v320_v1 }
  0xee   : > { %461 = vst.msk [vmem:[%s731_s27 + $0x88] sm:$0xff] %vm443_vm1, %v384_v3 }
  0xef   : > { %v585_v4 = vpop.f32.mrb[4].mxu0 }
  0xf0   : > { %v341_v5 = vadd.f32 %v585_v4, %v724_v51  ;;  %v601_v6 = vpop.f32.mrb[4].mxu1  ;;  %v332_v7 = vpop.f32.mrb[5].mxu0 }
  0xf1   : > { %v405_v8 = vadd.f32 %v601_v6, %v724_v51  ;;  %v333_v9 = vadd.f32 %v724_v51, %v332_v7  ;;  %v396_v10 = vpop.f32.mrb[5].mxu1  ;;  %v586_v11 = vpop.f32.mrb[6].mxu0 }
  0xf2   : > { %450 = vst.msk [vmem:[%s731_s27 + $0x30] sm:$0xff] %vm443_vm1, %v341_v5  ;;  %v397_v12 = vadd.f32 %v724_v51, %v396_v10  ;;  %v344_v13 = vadd.f32 %v586_v11, %v724_v51  ;;  %v602_v14 = vpop.f32.mrb[6].mxu1  ;;  %v335_v15 = vpop.f32.mrb[7].mxu0 }
  0xf3   : > { %466 = vst.msk [vmem:[%s731_s27 + $0xb0] sm:$0xff] %vm443_vm1, %v405_v8  ;;  %448 = vst.msk [vmem:[%s731_s27 + $0x20] sm:$0xff] %vm443_vm1, %v333_v9  ;;  %v408_v16 = vadd.f32 %v602_v14, %v724_v51  ;;  %v336_v17 = vadd.f32 %v724_v51, %v335_v15  ;;  %v399_v18 = vpop.f32.mrb[7].mxu1 }
  0xf4   : > { %464 = vst.msk [vmem:[%s731_s27 + $0xa0] sm:$0xff] %vm443_vm1, %v397_v12  ;;  %451 = vst.msk [vmem:[%s731_s27 + $0x38] sm:$0xff] %vm443_vm1, %v344_v13  ;;  %v400_v19 = vadd.f32 %v724_v51, %v399_v18 }
  0xf5   : > { %467 = vst.msk [vmem:[%s731_s27 + $0xb8] sm:$0xff] %vm443_vm1, %v408_v16  ;;  %449 = vst.msk [vmem:[%s731_s27 + $0x28] sm:$0xff] %vm443_vm1, %v336_v17 }
  0xf6   : > { %465 = vst.msk [vmem:[%s731_s27 + $0xa8] sm:$0xff] %vm443_vm1, %v400_v19 }
  0xf7   : > { %v589_v20 = vpop.f32.mrb[8].mxu0 }
  0xf8   : > { %v357_v21 = vadd.f32 %v589_v20, %v724_v51  ;;  %v605_v22 = vpop.f32.mrb[8].mxu1  ;;  %v348_v23 = vpop.f32.mrb[9].mxu0 }
  0xf9   : > { %v421_v24 = vadd.f32 %v605_v22, %v724_v51  ;;  %v349_v25 = vadd.f32 %v724_v51, %v348_v23  ;;  %v412_v26 = vpop.f32.mrb[9].mxu1  ;;  %v590_v27 = vpop.f32.mrb[10].mxu0 }
  0xfa   : > { %454 = vst.msk [vmem:[%s731_s27 + $0x50] sm:$0xff] %vm443_vm1, %v357_v21  ;;  %v413_v28 = vadd.f32 %v724_v51, %v412_v26  ;;  %v360_v29 = vadd.f32 %v590_v27, %v724_v51  ;;  %v606_v30 = vpop.f32.mrb[10].mxu1  ;;  %v351_v31 = vpop.f32.mrb[11].mxu0 }
  0xfb   : > { %470 = vst.msk [vmem:[%s731_s27 + $0xd0] sm:$0xff] %vm443_vm1, %v421_v24  ;;  %452 = vst.msk [vmem:[%s731_s27 + $0x40] sm:$0xff] %vm443_vm1, %v349_v25  ;;  %v424_v32 = vadd.f32 %v606_v30, %v724_v51  ;;  %v352_v33 = vadd.f32 %v724_v51, %v351_v31  ;;  %v415_v34 = vpop.f32.mrb[11].mxu1 }
  0xfc   : > { %468 = vst.msk [vmem:[%s731_s27 + $0xc0] sm:$0xff] %vm443_vm1, %v413_v28  ;;  %455 = vst.msk [vmem:[%s731_s27 + $0x58] sm:$0xff] %vm443_vm1, %v360_v29  ;;  %v416_v35 = vadd.f32 %v724_v51, %v415_v34 }
  0xfd   : > { %471 = vst.msk [vmem:[%s731_s27 + $0xd8] sm:$0xff] %vm443_vm1, %v424_v32  ;;  %453 = vst.msk [vmem:[%s731_s27 + $0x48] sm:$0xff] %vm443_vm1, %v352_v33 }
  0xfe   : > { %469 = vst.msk [vmem:[%s731_s27 + $0xc8] sm:$0xff] %vm443_vm1, %v416_v35 }
  0xff   : > { %v593_v36 = vpop.f32.mrb[12].mxu0 }
 0x100   : > { %v373_v37 = vadd.f32 %v593_v36, %v724_v51  ;;  %v609_v38 = vpop.f32.mrb[12].mxu1  ;;  %v364_v39 = vpop.f32.mrb[13].mxu0 }
 0x101   : > { %v437_v40 = vadd.f32 %v609_v38, %v724_v51  ;;  %v365_v41 = vadd.f32 %v724_v51, %v364_v39  ;;  %v428_v42 = vpop.f32.mrb[13].mxu1  ;;  %v594_v43 = vpop.f32.mrb[14].mxu0 }
 0x102   : > { %458 = vst.msk [vmem:[%s731_s27 + $0x70] sm:$0xff] %vm443_vm1, %v373_v37  ;;  %v429_v44 = vadd.f32 %v724_v51, %v428_v42  ;;  %v376_v45 = vadd.f32 %v594_v43, %v724_v51  ;;  %v610_v46 = vpop.f32.mrb[14].mxu1  ;;  %v367_v47 = vpop.f32.mrb[15].mxu0 }
 0x103   : > { %474 = vst.msk [vmem:[%s731_s27 + $0xf0] sm:$0xff] %vm443_vm1, %v437_v40  ;;  %456 = vst.msk [vmem:[%s731_s27 + $0x60] sm:$0xff] %vm443_vm1, %v365_v41  ;;  %v440_v48 = vadd.f32 %v610_v46, %v724_v51  ;;  %v368_v49 = vadd.f32 %v724_v51, %v367_v47  ;;  %v431_v50 = vpop.f32.mrb[15].mxu1 }
 0x104   : > { %472 = vst.msk [vmem:[%s731_s27 + $0xe0] sm:$0xff] %vm443_vm1, %v429_v44  ;;  %459 = vst.msk [vmem:[%s731_s27 + $0x78] sm:$0xff] %vm443_vm1, %v376_v45  ;;  %v432_v52 = vadd.f32 %v724_v51, %v431_v50 }
 0x105   : > { %475 = vst.msk [vmem:[%s731_s27 + $0xf8] sm:$0xff] %vm443_vm1, %v440_v48  ;;  %457 = vst.msk [vmem:[%s731_s27 + $0x68] sm:$0xff] %vm443_vm1, %v368_v49 }
 0x106   : > { %473 = vst.msk [vmem:[%s731_s27 + $0xe8] sm:$0xff] %vm443_vm1, %v432_v52 }
 0x107 PF: > { %s13_s12 = sadd.s32 1, %s627_s12  }
 0x108   : > { %p10_p4 = scmp.ge.s32.totalorder %s13_s12, 4  }
 0x10a   :  { %12 = sbr.rel (!%p10_p4) target bundleno = 1 (0x1), region = 62 }

// kernel: hybrid_domain_attention.3
= control target key start
LH: loop header
LB: loop body
LE: loop exit
PB: predicated region body
PF: predicated region fallthrough
CT: control target
= control target key end

     0   :  { %s4377_s24 = smov 0   ;;  %s7248_s0 = inlined_call_operand.vmem [shape: f32[2,16,16,16], index: 0, kind: input, shape index: {}]   ;;  %s7249_s1 = inlined_call_operand.vmem [shape: f32[2,16,16,16], index: 1, kind: input, shape index: {}]   ;;  %s7250_s2 = inlined_call_operand.vmem [shape: f32[1,16], index: 2, kind: input, shape index: {}]   ;;  %s7251_s3 = inlined_call_operand.vmem [shape: f32[1,16], index: 3, kind: input, shape index: {}]   ;;  %s7252_s4 = inlined_call_operand.vmem [shape: f32[16,96], index: 4, kind: input, shape index: {}]   ;;  %s7253_s5 = inlined_call_operand.vmem [shape: f32[3,3,96], index: 5, kind: input, shape index: {}]   ;;  %s7254_s6 = inlined_call_operand.vmem [shape: f32[48,16], index: 6, kind: input, shape index: {}]   ;;  %s7255_s7 = inlined_call_operand.vmem [shape: f32[2,16,16,16], index: 7, kind: output, shape index: {}]  }
   0x1 LB: > { %s3935_s25 = sadd.s32 4294967295, %s4333_s24   ;;  %p3939_p0 = scmp.ge.s32.totalorder %s4333_s24, 1  ;;  %s4333_s24 = sphi %s4377_s24, %s17_s24  }
   0x2   : > { %p247_p1 = scmp.lt.s32.totalorder %s4333_s24, 3 }
   0x4   : > { %p248_p2 = pnand %p3939_p0, %p247_p1 }
   0x6   : > { %251 = sbr.rel (%p248_p2) target bundleno = 1214 (0x4be), region = 48 }
   0xd   : > { %p284_p3 = scmp.lt.s32.totalorder %s3935_s25, 1  ;;  %vm365_vm0 = vcmask 130048   ;;  %vm1569_vm1 = vcmask 1040384   ;;  %vm1875_vm2 = vcmask 1046528   ;;  %vm2120_vm3 = vcmask 1045504  }
   0xe   : > { %vm3594_vm4 = vcmask 392192  }
   0xf   : > { %s7721_s25 = smov (!%p284_p3, %s3935_s25), 1 }
  0x10   : > { %s4385_s26 = sshll.u32 %s7721_s25, 8  ;;  %s4336_s25 = smov 80  }
  0x11   : > { %s4391_s29 = scalar_lea.vmem %s7248_s0, %s4385_s26  ;;  %s4397_s9 = scalar_lea.vmem %s7249_s1, %s4385_s26 }
  0x12   : > { %v4400_v0 = vld [vmem:[%s4391_s29] sm:$0xff]  ;;  %v4406_v2 = vld [vmem:[%s4391_s29 + $0x8] sm:$0xff]  ;;  %v4420_v8 = vld [vmem:[%s4391_s29 + $0x10] sm:$0xff]  ;;  %s7147_s19 = scalar_lea.vmem %s7255_s7, %s4385_s26 }
  0x13   : > { %v4403_v1 = vld [vmem:[%s4397_s9] sm:$0xff]  ;;  %v366_v3 = vsel %vm365_vm0, %v4400_v0, 0.0  ;;  %v4413_v5 = vld [vmem:[%s4397_s9 + $0x8] sm:$0xff]  ;;  %v369_v6 = vsel %vm365_vm0, %v4406_v2, 0.0  ;;  %v4423_v9 = vld [vmem:[%s4391_s29 + $0x18] sm:$0xff]  ;;  %v372_v10 = vsel %vm365_vm0, %v4420_v8, 0.0 }
  0x14   : > { %v822_v4 = vsel %vm365_vm0, %v4403_v1, 0.0  ;;  %367 = vadd.xlane.f32.xlu0 %v366_v3  ;;  %v825_v7 = vsel %vm365_vm0, %v4413_v5, 0.0  ;;  %v375_v11 = vsel %vm365_vm0, %v4423_v9, 0.0  ;;  %v4430_v12 = vld [vmem:[%s4397_s9 + $0x10] sm:$0xff]  ;;  %v4433_v13 = vld [vmem:[%s4397_s9 + $0x18] sm:$0xff]  ;;  %v4440_v16 = vld [vmem:[%s4391_s29 + $0x20] sm:$0xff] }
  0x15   : > { %823 = vadd.xlane.f32.xlu1 %v822_v4  ;;  %v828_v14 = vsel %vm365_vm0, %v4430_v12, 0.0  ;;  %v831_v15 = vsel %vm365_vm0, %v4433_v13, 0.0  ;;  %v4443_v17 = vld [vmem:[%s4391_s29 + $0x28] sm:$0xff]  ;;  %v378_v18 = vsel %vm365_vm0, %v4440_v16, 0.0  ;;  %v4450_v20 = vld [vmem:[%s4397_s9 + $0x20] sm:$0xff]  ;;  %v4460_v24 = vld [vmem:[%s4391_s29 + $0x30] sm:$0xff] }
  0x16   : > { %v381_v19 = vsel %vm365_vm0, %v4443_v17, 0.0  ;;  %v4453_v21 = vld [vmem:[%s4397_s9 + $0x28] sm:$0xff]  ;;  %v834_v22 = vsel %vm365_vm0, %v4450_v20, 0.0  ;;  %v4463_v25 = vld [vmem:[%s4391_s29 + $0x38] sm:$0xff]  ;;  %v384_v26 = vsel %vm365_vm0, %v4460_v24, 0.0  ;;  %v4470_v28 = vld [vmem:[%s4397_s9 + $0x30] sm:$0xff] }
  0x17   : > { %v837_v23 = vsel %vm365_vm0, %v4453_v21, 0.0  ;;  %v387_v27 = vsel %vm365_vm0, %v4463_v25, 0.0  ;;  %v4473_v29 = vld [vmem:[%s4397_s9 + $0x38] sm:$0xff]  ;;  %v840_v30 = vsel %vm365_vm0, %v4470_v28, 0.0  ;;  %v4480_v32 = vld [vmem:[%s4391_s29 + $0x40] sm:$0xff]  ;;  %v4483_v33 = vld [vmem:[%s4391_s29 + $0x48] sm:$0xff] }
  0x18   : > { %370 = vadd.xlane.f32.xlu0 %v369_v6  ;;  %v843_v31 = vsel %vm365_vm0, %v4473_v29, 0.0  ;;  %v390_v34 = vsel %vm365_vm0, %v4480_v32, 0.0  ;;  %v393_v35 = vsel %vm365_vm0, %v4483_v33, 0.0  ;;  %v4490_v36 = vld [vmem:[%s4397_s9 + $0x40] sm:$0xff]  ;;  %v4493_v37 = vld [vmem:[%s4397_s9 + $0x48] sm:$0xff]  ;;  %v4500_v40 = vld [vmem:[%s4391_s29 + $0x50] sm:$0xff] }
  0x19   : > { %826 = vadd.xlane.f32.xlu1 %v825_v7  ;;  %v846_v38 = vsel %vm365_vm0, %v4490_v36, 0.0  ;;  %v849_v39 = vsel %vm365_vm0, %v4493_v37, 0.0  ;;  %v4503_v41 = vld [vmem:[%s4391_s29 + $0x58] sm:$0xff]  ;;  %v396_v42 = vsel %vm365_vm0, %v4500_v40, 0.0  ;;  %v4510_v44 = vld [vmem:[%s4397_s9 + $0x50] sm:$0xff]  ;;  %v4520_v48 = vld [vmem:[%s4391_s29 + $0x60] sm:$0xff] }
  0x1a   : > { %v399_v43 = vsel %vm365_vm0, %v4503_v41, 0.0  ;;  %v4513_v45 = vld [vmem:[%s4397_s9 + $0x58] sm:$0xff]  ;;  %v852_v46 = vsel %vm365_vm0, %v4510_v44, 0.0  ;;  %v4523_v49 = vld [vmem:[%s4391_s29 + $0x68] sm:$0xff]  ;;  %v402_v50 = vsel %vm365_vm0, %v4520_v48, 0.0  ;;  %v4530_v52 = vld [vmem:[%s4397_s9 + $0x60] sm:$0xff] }
  0x1b   : > { %v855_v47 = vsel %vm365_vm0, %v4513_v45, 0.0  ;;  %v405_v51 = vsel %vm365_vm0, %v4523_v49, 0.0  ;;  %v4533_v53 = vld [vmem:[%s4397_s9 + $0x68] sm:$0xff]  ;;  %v858_v54 = vsel %vm365_vm0, %v4530_v52, 0.0  ;;  %v4540_v56 = vld [vmem:[%s4391_s29 + $0x70] sm:$0xff]  ;;  %v4543_v57 = vld [vmem:[%s4391_s29 + $0x78] sm:$0xff] }
  0x1c   : > { %373 = vadd.xlane.f32.xlu0 %v372_v10  ;;  %v861_v55 = vsel %vm365_vm0, %v4533_v53, 0.0  ;;  %v408_v58 = vsel %vm365_vm0, %v4540_v56, 0.0  ;;  %v411_v59 = vsel %vm365_vm0, %v4543_v57, 0.0  ;;  %v4550_v60 = vld [vmem:[%s4397_s9 + $0x70] sm:$0xff]  ;;  %v4553_v61 = vld [vmem:[%s4397_s9 + $0x78] sm:$0xff]  ;;  %v4560_v3 = vld [vmem:[%s4391_s29 + $0x80] sm:$0xff] }
  0x1d   : > { %376 = vadd.xlane.f32.xlu1 %v375_v11  ;;  %v864_v62 = vsel %vm365_vm0, %v4550_v60, 0.0  ;;  %v867_v63 = vsel %vm365_vm0, %v4553_v61, 0.0  ;;  %v4563_v4 = vld [vmem:[%s4391_s29 + $0x88] sm:$0xff]  ;;  %v414_v6 = vsel %vm365_vm0, %v4560_v3, 0.0  ;;  %v4570_v10 = vld [vmem:[%s4397_s9 + $0x80] sm:$0xff] }
  0x1e   : > { %v417_v7 = vsel %vm365_vm0, %v4563_v4, 0.0  ;;  %v4573_v11 = vld [vmem:[%s4397_s9 + $0x88] sm:$0xff] }
  0x20   : > { %829 = vadd.xlane.f32.xlu0 %v828_v14  ;;  %v870_v14 = vsel %vm365_vm0, %v4570_v10, 0.0 }
  0x21   : > { %832 = vadd.xlane.f32.xlu1 %v831_v15  ;;  %v873_v15 = vsel %vm365_vm0, %v4573_v11, 0.0 }
  0x24   : > { %379 = vadd.xlane.f32.xlu0 %v378_v18  ;;  %v4580_v18 = vld [vmem:[%s4391_s29 + $0x90] sm:$0xff] }
  0x25   : > { %382 = vadd.xlane.f32.xlu1 %v381_v19  ;;  %v4583_v19 = vld [vmem:[%s4391_s29 + $0x98] sm:$0xff] }
  0x28   : > { %835 = vadd.xlane.f32.xlu0 %v834_v22  ;;  %v420_v22 = vsel %vm365_vm0, %v4580_v18, 0.0 }
  0x29   : > { %838 = vadd.xlane.f32.xlu1 %v837_v23  ;;  %v423_v23 = vsel %vm365_vm0, %v4583_v19, 0.0 }
  0x2c   : > { %385 = vadd.xlane.f32.xlu0 %v384_v26  ;;  %v4590_v26 = vld [vmem:[%s4397_s9 + $0x90] sm:$0xff] }
  0x2d   : > { %388 = vadd.xlane.f32.xlu1 %v387_v27  ;;  %v4593_v27 = vld [vmem:[%s4397_s9 + $0x98] sm:$0xff] }
  0x30   : > { %841 = vadd.xlane.f32.xlu0 %v840_v30  ;;  %v876_v30 = vsel %vm365_vm0, %v4590_v26, 0.0 }
  0x31   : > { %844 = vadd.xlane.f32.xlu1 %v843_v31  ;;  %v879_v31 = vsel %vm365_vm0, %v4593_v27, 0.0 }
  0x34   : > { %391 = vadd.xlane.f32.xlu0 %v390_v34  ;;  %v4600_v34 = vld [vmem:[%s4391_s29 + $0xa0] sm:$0xff] }
  0x35   : > { %394 = vadd.xlane.f32.xlu1 %v393_v35  ;;  %v4603_v35 = vld [vmem:[%s4391_s29 + $0xa8] sm:$0xff] }
  0x38   : > { %847 = vadd.xlane.f32.xlu0 %v846_v38  ;;  %v426_v38 = vsel %vm365_vm0, %v4600_v34, 0.0 }
  0x39   : > { %850 = vadd.xlane.f32.xlu1 %v849_v39  ;;  %v429_v39 = vsel %vm365_vm0, %v4603_v35, 0.0 }
  0x3c   : > { %397 = vadd.xlane.f32.xlu0 %v396_v42  ;;  %v4610_v42 = vld [vmem:[%s4397_s9 + $0xa0] sm:$0xff] }
  0x3d   : > { %400 = vadd.xlane.f32.xlu1 %v399_v43  ;;  %v4613_v43 = vld [vmem:[%s4397_s9 + $0xa8] sm:$0xff] }
  0x40   : > { %853 = vadd.xlane.f32.xlu0 %v852_v46  ;;  %v882_v46 = vsel %vm365_vm0, %v4610_v42, 0.0 }
  0x41   : > { %856 = vadd.xlane.f32.xlu1 %v855_v47  ;;  %v885_v47 = vsel %vm365_vm0, %v4613_v43, 0.0 }
  0x44   : > { %403 = vadd.xlane.f32.xlu0 %v402_v50  ;;  %v4620_v50 = vld [vmem:[%s4391_s29 + $0xb0] sm:$0xff] }
  0x45   : > { %406 = vadd.xlane.f32.xlu1 %v405_v51  ;;  %v4623_v51 = vld [vmem:[%s4391_s29 + $0xb8] sm:$0xff] }
  0x48   : > { %859 = vadd.xlane.f32.xlu0 %v858_v54  ;;  %v432_v54 = vsel %vm365_vm0, %v4620_v50, 0.0 }
  0x49   : > { %862 = vadd.xlane.f32.xlu1 %v861_v55  ;;  %v435_v55 = vsel %vm365_vm0, %v4623_v51, 0.0 }
  0x4c   : > { %409 = vadd.xlane.f32.xlu0 %v408_v58  ;;  %v4630_v58 = vld [vmem:[%s4397_s9 + $0xb0] sm:$0xff] }
  0x4d   : > { %412 = vadd.xlane.f32.xlu1 %v411_v59  ;;  %v4633_v59 = vld [vmem:[%s4397_s9 + $0xb8] sm:$0xff] }
  0x50   : > { %865 = vadd.xlane.f32.xlu0 %v864_v62  ;;  %v888_v62 = vsel %vm365_vm0, %v4630_v58, 0.0 }
  0x51   : > { %868 = vadd.xlane.f32.xlu1 %v867_v63  ;;  %v891_v63 = vsel %vm365_vm0, %v4633_v59, 0.0 }
  0x54   : > { %415 = vadd.xlane.f32.xlu0 %v414_v6  ;;  %v4640_v6 = vld [vmem:[%s4391_s29 + $0xc0] sm:$0xff] }
  0x55   : > { %418 = vadd.xlane.f32.xlu1 %v417_v7  ;;  %7367 = vst [vmem:[#allocation2_spill] sm:$0xff] %v4640_v6  ;;  %v4643_v7 = vld [vmem:[%s4391_s29 + $0xc8] sm:$0xff] }
  0x56   : > { %7368 = vst [vmem:[#allocation3_spill] sm:$0xff] %v4643_v7 }
  0x58   : > { %871 = vadd.xlane.f32.xlu0 %v870_v14  ;;  %v438_v14 = vsel %vm365_vm0, %v4640_v6, 0.0 }
  0x59   : > { %874 = vadd.xlane.f32.xlu1 %v873_v15  ;;  %v441_v15 = vsel %vm365_vm0, %v4643_v7, 0.0 }
  0x5c   : > { %421 = vadd.xlane.f32.xlu0 %v420_v22  ;;  %v4650_v22 = vld [vmem:[%s4397_s9 + $0xc0] sm:$0xff] }
  0x5d   : > { %424 = vadd.xlane.f32.xlu1 %v423_v23  ;;  %7369 = vst [vmem:[#allocation4_spill] sm:$0xff] %v4650_v22  ;;  %v4653_v23 = vld [vmem:[%s4397_s9 + $0xc8] sm:$0xff] }
  0x5e   : > { %7370 = vst [vmem:[#allocation5_spill] sm:$0xff] %v4653_v23 }
  0x60   : > { %877 = vadd.xlane.f32.xlu0 %v876_v30  ;;  %v894_v30 = vsel %vm365_vm0, %v4650_v22, 0.0 }
  0x61   : > { %880 = vadd.xlane.f32.xlu1 %v879_v31  ;;  %v897_v31 = vsel %vm365_vm0, %v4653_v23, 0.0 }
  0x64   : > { %427 = vadd.xlane.f32.xlu0 %v426_v38  ;;  %v4660_v38 = vld [vmem:[%s4391_s29 + $0xd0] sm:$0xff] }
  0x65   : > { %430 = vadd.xlane.f32.xlu1 %v429_v39  ;;  %7371 = vst [vmem:[#allocation6_spill] sm:$0xff] %v4660_v38  ;;  %v4663_v39 = vld [vmem:[%s4391_s29 + $0xd8] sm:$0xff] }
  0x66   : > { %7372 = vst [vmem:[#allocation7_spill] sm:$0xff] %v4663_v39 }
  0x68   : > { %883 = vadd.xlane.f32.xlu0 %v882_v46  ;;  %v444_v46 = vsel %vm365_vm0, %v4660_v38, 0.0 }
  0x69   : > { %886 = vadd.xlane.f32.xlu1 %v885_v47  ;;  %v447_v47 = vsel %vm365_vm0, %v4663_v39, 0.0 }
  0x6c   : > { %433 = vadd.xlane.f32.xlu0 %v432_v54  ;;  %v4670_v54 = vld [vmem:[%s4397_s9 + $0xd0] sm:$0xff] }
  0x6d   : > { %436 = vadd.xlane.f32.xlu1 %v435_v55  ;;  %7373 = vst [vmem:[#allocation8_spill] sm:$0xff] %v4670_v54  ;;  %v4673_v55 = vld [vmem:[%s4397_s9 + $0xd8] sm:$0xff] }
  0x6e   : > { %7374 = vst [vmem:[#allocation9_spill] sm:$0xff] %v4673_v55 }
  0x70   : > { %889 = vadd.xlane.f32.xlu0 %v888_v62  ;;  %v900_v62 = vsel %vm365_vm0, %v4670_v54, 0.0  ;;  %v4703_v54 = vld [vmem:[%s4391_s29 + $0xf8] sm:$0xff] }
  0x71   : > { %892 = vadd.xlane.f32.xlu1 %v891_v63  ;;  %v903_v63 = vsel %vm365_vm0, %v4673_v55, 0.0  ;;  %7380 = vst [vmem:[#allocation15_spill] sm:$0xff] %v4703_v54 }
  0x74   : > { %439 = vadd.xlane.f32.xlu0 %v438_v14  ;;  %v4680_v14 = vld [vmem:[%s4391_s29 + $0xe0] sm:$0xff] }
  0x75   : > { %442 = vadd.xlane.f32.xlu1 %v441_v15  ;;  %7375 = vst [vmem:[#allocation10_spill] sm:$0xff] %v4680_v14  ;;  %v4683_v15 = vld [vmem:[%s4391_s29 + $0xe8] sm:$0xff] }
  0x76   : > { %7376 = vst [vmem:[#allocation11_spill] sm:$0xff] %v4683_v15 }
  0x78   : > { %895 = vadd.xlane.f32.xlu0 %v894_v30  ;;  %v450_v30 = vsel %vm365_vm0, %v4680_v14, 0.0  ;;  %v459_v14 = vsel %vm365_vm0, %v4703_v54, 0.0 }
  0x79   : > { %898 = vadd.xlane.f32.xlu1 %v897_v31  ;;  %v453_v31 = vsel %vm365_vm0, %v4683_v15, 0.0 }
  0x7c   : > { %445 = vadd.xlane.f32.xlu0 %v444_v46  ;;  %v4690_v46 = vld [vmem:[%s4397_s9 + $0xe0] sm:$0xff] }
  0x7d   : > { %448 = vadd.xlane.f32.xlu1 %v447_v47  ;;  %7377 = vst [vmem:[#allocation12_spill] sm:$0xff] %v4690_v46  ;;  %v4693_v47 = vld [vmem:[%s4397_s9 + $0xe8] sm:$0xff]  ;;  %v906_v55 = vsel %vm365_vm0, %v4690_v46, 0.0 }
  0x7e   : > { %7378 = vst [vmem:[#allocation13_spill] sm:$0xff] %v4693_v47 }
  0x80   : > { %901 = vadd.xlane.f32.xlu0 %v900_v62  ;;  %v909_v62 = vsel %vm365_vm0, %v4693_v47, 0.0 }
  0x81   : > { %904 = vadd.xlane.f32.xlu1 %v903_v63  ;;  %v4700_v63 = vld [vmem:[%s4391_s29 + $0xf0] sm:$0xff] }
  0x82   : > { %7379 = vst [vmem:[#allocation14_spill] sm:$0xff] %v4700_v63  ;;  %v456_v15 = vsel %vm365_vm0, %v4700_v63, 0.0 }
  0x84   : > { %451 = vadd.xlane.f32.xlu0 %v450_v30  ;;  %v4710_v30 = vld [vmem:[%s4397_s9 + $0xf0] sm:$0xff] }
  0x85   : > { %454 = vadd.xlane.f32.xlu1 %v453_v31  ;;  %7381 = vst [vmem:[#allocation16_spill] sm:$0xff] %v4710_v30  ;;  %v4713_v31 = vld [vmem:[%s4397_s9 + $0xf8] sm:$0xff]  ;;  %v912_v47 = vsel %vm365_vm0, %v4710_v30, 0.0 }
  0x86   : > { %7382 = vst [vmem:[#allocation17_spill] sm:$0xff] %v4713_v31  ;;  %v915_v46 = vsel %vm365_vm0, %v4713_v31, 0.0 }
  0x88   : > { %907 = vadd.xlane.f32.xlu0 %v906_v55 }
  0x89   : > { %910 = vadd.xlane.f32.xlu1 %v909_v62 }
  0x8c   : > { %457 = vadd.xlane.f32.xlu0 %v456_v15 }
  0x8d   : > { %460 = vadd.xlane.f32.xlu1 %v459_v14 }
  0x90   : > { %913 = vadd.xlane.f32.xlu0 %v912_v47 }
  0x91   : > { %916 = vadd.xlane.f32.xlu1 %v915_v46 }
  0xa1   : > { %v368_v55 = vpop.xlane.xlu0 %367 }
  0xa2   : > { %v824_v62 = vpop.xlane.xlu1 %823  ;;  %v463_v63 = vmul.f32 0.0625, %v368_v55 }
  0xa3   : > { %v918_v39 = vmul.f32 0.0625, %v824_v62 }
  0xa4   : > { %v495_v54 = vsub.f32 %v4400_v0, %v463_v63 }
  0xa5   : > { %v950_v38 = vsub.f32 %v4403_v1, %v918_v39  ;;  %v371_v23 = vpop.xlane.xlu0 %370 }
  0xa6   : > { %v827_v22 = vpop.xlane.xlu1 %826  ;;  %v464_v15 = vmul.f32 0.0625, %v371_v23  ;;  %v527_v7 = vmul.f32 %v495_v54, %v495_v54 }
  0xa7   : > { %v919_v14 = vmul.f32 0.0625, %v827_v22  ;;  %v982_v6 = vmul.f32 %v950_v38, %v950_v38 }
  0xa8   : > { %v559_v30 = vsel %vm365_vm0, %v527_v7, 0.0  ;;  %v496_v31 = vsub.f32 %v4406_v2, %v464_v15 }
  0xa9   : > { %v951_v46 = vsub.f32 %v4413_v5, %v919_v14  ;;  %560 = vadd.xlane.f32.xlu0 %v559_v30  ;;  %v374_v47 = vpop.xlane.xlu0 %373  ;;  %v1014_v62 = vsel %vm365_vm0, %v982_v6, 0.0 }
  0xaa   : > { %v377_v55 = vpop.xlane.xlu1 %376  ;;  %v465_v0 = vmul.f32 0.0625, %v374_v47  ;;  %v528_v1 = vmul.f32 %v496_v31, %v496_v31 }
  0xab   : > { %v466_v63 = vmul.f32 0.0625, %v377_v55  ;;  %v983_v39 = vmul.f32 %v951_v46, %v951_v46 }
  0xac   : > { %v562_v23 = vsel %vm365_vm0, %v528_v1, 0.0  ;;  %v497_v22 = vsub.f32 %v4420_v8, %v465_v0 }
  0xad   : > { %v498_v38 = vsub.f32 %v4423_v9, %v466_v63  ;;  %1015 = vadd.xlane.f32.xlu0 %v1014_v62  ;;  %563 = vadd.xlane.f32.xlu1 %v562_v23  ;;  %v830_v2 = vpop.xlane.xlu0 %829  ;;  %v1017_v5 = vsel %vm365_vm0, %v983_v39, 0.0 }
  0xae   : > { %v833_v7 = vpop.xlane.xlu1 %832  ;;  %v920_v54 = vmul.f32 0.0625, %v830_v2  ;;  %v529_v15 = vmul.f32 %v497_v22, %v497_v22 }
  0xaf   : > { %v921_v30 = vmul.f32 0.0625, %v833_v7  ;;  %v530_v6 = vmul.f32 %v498_v38, %v498_v38 }
  0xb0   : > { %v565_v14 = vsel %vm365_vm0, %v529_v15, 0.0  ;;  %v952_v31 = vsub.f32 %v4430_v12, %v920_v54 }
  0xb1   : > { %v953_v46 = vsub.f32 %v4433_v13, %v921_v30  ;;  %1018 = vadd.xlane.f32.xlu1 %v1017_v5  ;;  %566 = vadd.xlane.f32.xlu0 %v565_v14  ;;  %v380_v8 = vpop.xlane.xlu0 %379  ;;  %v568_v47 = vsel %vm365_vm0, %v530_v6, 0.0 }
  0xb2   : > { %v383_v9 = vpop.xlane.xlu1 %382  ;;  %v467_v55 = vmul.f32 0.0625, %v380_v8  ;;  %v984_v0 = vmul.f32 %v952_v31, %v952_v31 }
  0xb3   : > { %v468_v62 = vmul.f32 0.0625, %v383_v9  ;;  %v985_v63 = vmul.f32 %v953_v46, %v953_v46 }
  0xb4   : > { %v1020_v1 = vsel %vm365_vm0, %v984_v0, 0.0  ;;  %v499_v39 = vsub.f32 %v4440_v16, %v467_v55 }
  0xb5   : > { %v500_v23 = vsub.f32 %v4443_v17, %v468_v62  ;;  %569 = vadd.xlane.f32.xlu1 %v568_v47  ;;  %1021 = vadd.xlane.f32.xlu0 %v1020_v1  ;;  %v836_v12 = vpop.xlane.xlu0 %835  ;;  %v1023_v22 = vsel %vm365_vm0, %v985_v63, 0.0 }
  0xb6   : > { %v839_v13 = vpop.xlane.xlu1 %838  ;;  %v922_v38 = vmul.f32 0.0625, %v836_v12  ;;  %v531_v7 = vmul.f32 %v499_v39, %v499_v39 }
  0xb7   : > { %v923_v2 = vmul.f32 0.0625, %v839_v13  ;;  %v532_v5 = vmul.f32 %v500_v23, %v500_v23 }
  0xb8   : > { %v571_v54 = vsel %vm365_vm0, %v531_v7, 0.0  ;;  %v954_v30 = vsub.f32 %v4450_v20, %v922_v38 }
  0xb9   : > { %v955_v15 = vsub.f32 %v4453_v21, %v923_v2  ;;  %1024 = vadd.xlane.f32.xlu1 %v1023_v22  ;;  %572 = vadd.xlane.f32.xlu0 %v571_v54  ;;  %v386_v16 = vpop.xlane.xlu0 %385  ;;  %v574_v6 = vsel %vm365_vm0, %v532_v5, 0.0 }
  0xba   : > { %v389_v17 = vpop.xlane.xlu1 %388  ;;  %v469_v14 = vmul.f32 0.0625, %v386_v16  ;;  %v986_v46 = vmul.f32 %v954_v30, %v954_v30 }
  0xbb   : > { %v470_v31 = vmul.f32 0.0625, %v389_v17  ;;  %v987_v8 = vmul.f32 %v955_v15, %v955_v15 }
  0xbc   : > { %v1026_v9 = vsel %vm365_vm0, %v986_v46, 0.0  ;;  %v501_v47 = vsub.f32 %v4460_v24, %v469_v14 }
  0xbd   : > { %v502_v55 = vsub.f32 %v4463_v25, %v470_v31  ;;  %575 = vadd.xlane.f32.xlu1 %v574_v6  ;;  %1027 = vadd.xlane.f32.xlu0 %v1026_v9  ;;  %v842_v20 = vpop.xlane.xlu0 %841  ;;  %v1029_v62 = vsel %vm365_vm0, %v987_v8, 0.0 }
  0xbe   : > { %v845_v21 = vpop.xlane.xlu1 %844  ;;  %v924_v0 = vmul.f32 0.0625, %v842_v20  ;;  %v533_v1 = vmul.f32 %v501_v47, %v501_v47 }
  0xbf   : > { %v925_v63 = vmul.f32 0.0625, %v845_v21  ;;  %v534_v39 = vmul.f32 %v502_v55, %v502_v55 }
  0xc0   : > { %v577_v23 = vsel %vm365_vm0, %v533_v1, 0.0  ;;  %v956_v12 = vsub.f32 %v4470_v28, %v924_v0 }
  0xc1   : > { %v957_v13 = vsub.f32 %v4473_v29, %v925_v63  ;;  %1030 = vadd.xlane.f32.xlu1 %v1029_v62  ;;  %578 = vadd.xlane.f32.xlu0 %v577_v23  ;;  %v392_v24 = vpop.xlane.xlu0 %391  ;;  %v580_v22 = vsel %vm365_vm0, %v534_v39, 0.0 }
  0xc2   : > { %v395_v25 = vpop.xlane.xlu1 %394  ;;  %v471_v38 = vmul.f32 0.0625, %v392_v24  ;;  %v988_v7 = vmul.f32 %v956_v12, %v956_v12 }
  0xc3   : > { %v472_v2 = vmul.f32 0.0625, %v395_v25  ;;  %v989_v5 = vmul.f32 %v957_v13, %v957_v13 }
  0xc4   : > { %v1032_v54 = vsel %vm365_vm0, %v988_v7, 0.0  ;;  %v503_v30 = vsub.f32 %v4480_v32, %v471_v38 }
  0xc5   : > { %v504_v15 = vsub.f32 %v4483_v33, %v472_v2  ;;  %581 = vadd.xlane.f32.xlu1 %v580_v22  ;;  %1033 = vadd.xlane.f32.xlu0 %v1032_v54  ;;  %v848_v28 = vpop.xlane.xlu0 %847  ;;  %v1035_v16 = vsel %vm365_vm0, %v989_v5, 0.0 }
  0xc6   : > { %v851_v29 = vpop.xlane.xlu1 %850  ;;  %v926_v17 = vmul.f32 0.0625, %v848_v28  ;;  %v535_v14 = vmul.f32 %v503_v30, %v503_v30 }
  0xc7   : > { %v927_v6 = vmul.f32 0.0625, %v851_v29  ;;  %v536_v31 = vmul.f32 %v504_v15, %v504_v15 }
  0xc8   : > { %v583_v46 = vsel %vm365_vm0, %v535_v14, 0.0  ;;  %v958_v8 = vsub.f32 %v4490_v36, %v926_v17 }
  0xc9   : > { %v959_v9 = vsub.f32 %v4493_v37, %v927_v6  ;;  %1036 = vadd.xlane.f32.xlu1 %v1035_v16  ;;  %584 = vadd.xlane.f32.xlu0 %v583_v46  ;;  %v398_v32 = vpop.xlane.xlu0 %397  ;;  %v586_v47 = vsel %vm365_vm0, %v536_v31, 0.0 }
  0xca   : > { %v401_v33 = vpop.xlane.xlu1 %400  ;;  %v473_v55 = vmul.f32 0.0625, %v398_v32  ;;  %v990_v21 = vmul.f32 %v958_v8, %v958_v8 }
  0xcb   : > { %v474_v20 = vmul.f32 0.0625, %v401_v33  ;;  %v991_v62 = vmul.f32 %v959_v9, %v959_v9  ;;  %v1324_v33 = vld [vmem:[%s7252_s4] sm:$0xff] }
  0xcc   : > { %v1038_v0 = vsel %vm365_vm0, %v990_v21, 0.0  ;;  %v505_v63 = vsub.f32 %v4500_v40, %v473_v55 }
  0xcd   : > { %v506_v1 = vsub.f32 %v4503_v41, %v474_v20  ;;  %587 = vadd.xlane.f32.xlu1 %v586_v47  ;;  %1039 = vadd.xlane.f32.xlu0 %v1038_v0  ;;  %v854_v36 = vpop.xlane.xlu0 %853  ;;  %v1041_v39 = vsel %vm365_vm0, %v991_v62, 0.0  ;;  %v1325_v47 = vld [vmem:[%s7252_s4 + $0x8] sm:$0xff] }
  0xce   : > { %v857_v37 = vpop.xlane.xlu1 %856  ;;  %v928_v23 = vmul.f32 0.0625, %v854_v36  ;;  %v537_v13 = vmul.f32 %v505_v63, %v505_v63  ;;  %v1326_v62 = vpack.c.bf16 %v1325_v47, %v1324_v33 }
  0xcf   : > { %v929_v12 = vmul.f32 0.0625, %v857_v37  ;;  %v538_v24 = vmul.f32 %v506_v1, %v506_v1 }
  0xd0   : > { %v589_v25 = vsel %vm365_vm0, %v537_v13, 0.0  ;;  %v960_v22 = vsub.f32 %v4510_v44, %v928_v23  ;;  %4021 = vmatprep.subr.bf16.mxu0 %v1326_v62 }
  0xd1   : > { %v961_v38 = vsub.f32 %v4513_v45, %v929_v12  ;;  %1042 = vadd.xlane.f32.xlu1 %v1041_v39  ;;  %590 = vadd.xlane.f32.xlu0 %v589_v25  ;;  %v404_v40 = vpop.xlane.xlu0 %403  ;;  %v592_v2 = vsel %vm365_vm0, %v538_v24, 0.0 }
  0xd2   : > { %v407_v41 = vpop.xlane.xlu1 %406  ;;  %v475_v7 = vmul.f32 0.0625, %v404_v40  ;;  %v992_v54 = vmul.f32 %v960_v22, %v960_v22  ;;  %4022 = vmatpush3.bf16.msra.mxu0 %v1326_v62 }
  0xd3   : > { %v476_v5 = vmul.f32 0.0625, %v407_v41  ;;  %v993_v30 = vmul.f32 %v961_v38, %v961_v38 }
  0xd4   : > { %v1044_v15 = vsel %vm365_vm0, %v992_v54, 0.0  ;;  %v507_v28 = vsub.f32 %v4520_v48, %v475_v7 }
  0xd5   : > { %v508_v29 = vsub.f32 %v4523_v49, %v476_v5  ;;  %593 = vadd.xlane.f32.xlu1 %v592_v2  ;;  %1045 = vadd.xlane.f32.xlu0 %v1044_v15  ;;  %v860_v44 = vpop.xlane.xlu0 %859  ;;  %v1047_v16 = vsel %vm365_vm0, %v993_v30, 0.0 }
  0xd6   : > { %v863_v45 = vpop.xlane.xlu1 %862  ;;  %v930_v17 = vmul.f32 0.0625, %v860_v44  ;;  %v539_v14 = vmul.f32 %v507_v28, %v507_v28 }
  0xd7   : > { %v931_v6 = vmul.f32 0.0625, %v863_v45  ;;  %v540_v31 = vmul.f32 %v508_v29, %v508_v29 }
  0xd8   : > { %v595_v46 = vsel %vm365_vm0, %v539_v14, 0.0  ;;  %v962_v8 = vsub.f32 %v4530_v52, %v930_v17 }
  0xd9   : > { %v963_v9 = vsub.f32 %v4533_v53, %v931_v6  ;;  %1048 = vadd.xlane.f32.xlu1 %v1047_v16  ;;  %596 = vadd.xlane.f32.xlu0 %v595_v46  ;;  %v410_v48 = vpop.xlane.xlu0 %409  ;;  %v598_v32 = vsel %vm365_vm0, %v540_v31, 0.0 }
  0xda   : > { %v413_v49 = vpop.xlane.xlu1 %412  ;;  %v477_v55 = vmul.f32 0.0625, %v410_v48  ;;  %v994_v21 = vmul.f32 %v962_v8, %v962_v8 }
  0xdb   : > { %v478_v20 = vmul.f32 0.0625, %v413_v49  ;;  %v995_v52 = vmul.f32 %v963_v9, %v963_v9 }
  0xdc   : > { %v1050_v53 = vsel %vm365_vm0, %v994_v21, 0.0  ;;  %v509_v0 = vsub.f32 %v4540_v56, %v477_v55 }
  0xdd   : > { %v510_v63 = vsub.f32 %v4543_v57, %v478_v20  ;;  %599 = vadd.xlane.f32.xlu1 %v598_v32  ;;  %1051 = vadd.xlane.f32.xlu0 %v1050_v53  ;;  %v866_v1 = vpop.xlane.xlu0 %865  ;;  %v1053_v37 = vsel %vm365_vm0, %v995_v52, 0.0 }
  0xde   : > { %v869_v36 = vpop.xlane.xlu1 %868  ;;  %v932_v39 = vmul.f32 0.0625, %v866_v1  ;;  %v541_v12 = vmul.f32 %v509_v0, %v509_v0 }
  0xdf   : > { %v933_v23 = vmul.f32 0.0625, %v869_v36  ;;  %v542_v13 = vmul.f32 %v510_v63, %v510_v63 }
  0xe0   : > { %v601_v24 = vsel %vm365_vm0, %v541_v12, 0.0  ;;  %v964_v25 = vsub.f32 %v4550_v60, %v932_v39 }
  0xe1   : > { %v965_v56 = vsub.f32 %v4553_v61, %v933_v23  ;;  %1054 = vadd.xlane.f32.xlu1 %v1053_v37  ;;  %602 = vadd.xlane.f32.xlu0 %v601_v24  ;;  %v416_v57 = vpop.xlane.xlu0 %415  ;;  %v604_v38 = vsel %vm365_vm0, %v542_v13, 0.0 }
  0xe2   : > { %v419_v22 = vpop.xlane.xlu1 %418  ;;  %v479_v40 = vmul.f32 0.0625, %v416_v57  ;;  %v996_v2 = vmul.f32 %v964_v25, %v964_v25 }
  0xe3   : > { %v480_v41 = vmul.f32 0.0625, %v419_v22  ;;  %v997_v7 = vmul.f32 %v965_v56, %v965_v56 }
  0xe4   : > { %v1056_v5 = vsel %vm365_vm0, %v996_v2, 0.0  ;;  %v511_v54 = vsub.f32 %v4560_v3, %v479_v40 }
  0xe5   : > { %v512_v30 = vsub.f32 %v4563_v4, %v480_v41  ;;  %605 = vadd.xlane.f32.xlu1 %v604_v38  ;;  %1057 = vadd.xlane.f32.xlu0 %v1056_v5  ;;  %v872_v60 = vpop.xlane.xlu0 %871  ;;  %v1059_v15 = vsel %vm365_vm0, %v997_v7, 0.0 }
  0xe6   : > { %v875_v61 = vpop.xlane.xlu1 %874  ;;  %v934_v28 = vmul.f32 0.0625, %v872_v60  ;;  %v543_v44 = vmul.f32 %v511_v54, %v511_v54 }
  0xe7   : > { %v935_v29 = vmul.f32 0.0625, %v875_v61  ;;  %v544_v45 = vmul.f32 %v512_v30, %v512_v30 }
  0xe8   : > { %v966_v16 = vsub.f32 %v4570_v10, %v934_v28  ;;  %v607_v6 = vsel %vm365_vm0, %v543_v44, 0.0 }
  0xe9   : > { %v967_v17 = vsub.f32 %v4573_v11, %v935_v29  ;;  %1060 = vadd.xlane.f32.xlu1 %v1059_v15  ;;  %608 = vadd.xlane.f32.xlu0 %v607_v6  ;;  %v422_v3 = vpop.xlane.xlu0 %421  ;;  %v610_v14 = vsel %vm365_vm0, %v544_v45, 0.0 }
  0xea   : > { %v425_v4 = vpop.xlane.xlu1 %424  ;;  %v481_v31 = vmul.f32 0.0625, %v422_v3  ;;  %v998_v8 = vmul.f32 %v966_v16, %v966_v16 }
  0xeb   : > { %v482_v46 = vmul.f32 0.0625, %v425_v4  ;;  %v999_v9 = vmul.f32 %v967_v17, %v967_v17 }
  0xec   : > { %v513_v48 = vsub.f32 %v4580_v18, %v481_v31  ;;  %v1062_v10 = vsel %vm365_vm0, %v998_v8, 0.0  ;;  %v7383_v8 = vld [vmem:[#allocation2_spill] sm:$0xff] }
  0xed   : > { %v514_v49 = vsub.f32 %v4583_v19, %v482_v46  ;;  %611 = vadd.xlane.f32.xlu1 %v610_v14  ;;  %1063 = vadd.xlane.f32.xlu0 %v1062_v10  ;;  %v878_v11 = vpop.xlane.xlu0 %877  ;;  %v1065_v33 = vsel %vm365_vm0, %v999_v9, 0.0 }
  0xee   : > { %v881_v32 = vpop.xlane.xlu1 %880  ;;  %v936_v47 = vmul.f32 0.0625, %v878_v11  ;;  %v545_v20 = vmul.f32 %v513_v48, %v513_v48  ;;  %v7384_v48 = vld [vmem:[#allocation3_spill] sm:$0xff] }
  0xef   : > { %v937_v55 = vmul.f32 0.0625, %v881_v32  ;;  %v546_v21 = vmul.f32 %v514_v49, %v514_v49 }
  0xf0   : > { %v968_v52 = vsub.f32 %v4590_v26, %v936_v47  ;;  %v613_v18 = vsel %vm365_vm0, %v545_v20, 0.0  ;;  %v7385_v20 = vld [vmem:[#allocation4_spill] sm:$0xff] }
  0xf1   : > { %v969_v62 = vsub.f32 %v4593_v27, %v937_v55  ;;  %1066 = vadd.xlane.f32.xlu1 %v1065_v33  ;;  %614 = vadd.xlane.f32.xlu0 %v613_v18  ;;  %v428_v19 = vpop.xlane.xlu0 %427  ;;  %v616_v0 = vsel %vm365_vm0, %v546_v21, 0.0 }
  0xf2   : > { %v431_v53 = vpop.xlane.xlu1 %430  ;;  %v483_v63 = vmul.f32 0.0625, %v428_v19  ;;  %v1000_v36 = vmul.f32 %v968_v52, %v968_v52  ;;  %v7386_v52 = vld [vmem:[#allocation5_spill] sm:$0xff] }
  0xf3   : > { %v484_v1 = vmul.f32 0.0625, %v431_v53  ;;  %v1001_v37 = vmul.f32 %v969_v62, %v969_v62 }
  0xf4   : > { %v515_v39 = vsub.f32 %v4600_v34, %v483_v63  ;;  %v1068_v26 = vsel %vm365_vm0, %v1000_v36, 0.0 }
  0xf5   : > { %v516_v23 = vsub.f32 %v4603_v35, %v484_v1  ;;  %617 = vadd.xlane.f32.xlu1 %v616_v0  ;;  %1069 = vadd.xlane.f32.xlu0 %v1068_v26  ;;  %v884_v27 = vpop.xlane.xlu0 %883  ;;  %v1071_v13 = vsel %vm365_vm0, %v1001_v37, 0.0  ;;  %v7388_v26 = vld [vmem:[#allocation7_spill] sm:$0xff] }
  0xf6   : > { %v887_v12 = vpop.xlane.xlu1 %886  ;;  %v938_v24 = vmul.f32 0.0625, %v884_v27  ;;  %v547_v56 = vmul.f32 %v515_v39, %v515_v39  ;;  %v7387_v39 = vld [vmem:[#allocation6_spill] sm:$0xff] }
  0xf7   : > { %v939_v25 = vmul.f32 0.0625, %v887_v12  ;;  %v548_v57 = vmul.f32 %v516_v23, %v516_v23 }
  0xf8   : > { %v970_v22 = vsub.f32 %v4610_v42, %v938_v24  ;;  %v619_v34 = vsel %vm365_vm0, %v547_v56, 0.0 }
  0xf9   : > { %v971_v38 = vsub.f32 %v4613_v43, %v939_v25  ;;  %1072 = vadd.xlane.f32.xlu1 %v1071_v13  ;;  %620 = vadd.xlane.f32.xlu0 %v619_v34  ;;  %v434_v35 = vpop.xlane.xlu0 %433  ;;  %v622_v41 = vsel %vm365_vm0, %v548_v57, 0.0  ;;  %v7389_v34 = vld [vmem:[#allocation8_spill] sm:$0xff] }
  0xfa   : > { %v437_v40 = vpop.xlane.xlu1 %436  ;;  %v485_v2 = vmul.f32 0.0625, %v434_v35  ;;  %v1002_v5 = vmul.f32 %v970_v22, %v970_v22 }
  0xfb   : > { %v486_v7 = vmul.f32 0.0625, %v437_v40  ;;  %v1003_v54 = vmul.f32 %v971_v38, %v971_v38  ;;  %v7390_v40 = vld [vmem:[#allocation9_spill] sm:$0xff] }
  0xfc   : > { %v517_v30 = vsub.f32 %v4620_v50, %v485_v2  ;;  %v1074_v42 = vsel %vm365_vm0, %v1002_v5, 0.0 }
  0xfd   : > { %v518_v60 = vsub.f32 %v4623_v51, %v486_v7  ;;  %623 = vadd.xlane.f32.xlu1 %v622_v41  ;;  %1075 = vadd.xlane.f32.xlu0 %v1074_v42  ;;  %v890_v43 = vpop.xlane.xlu0 %889  ;;  %v1077_v15 = vsel %vm365_vm0, %v1003_v54, 0.0 }
  0xfe   : > { %v893_v61 = vpop.xlane.xlu1 %892  ;;  %v940_v28 = vmul.f32 0.0625, %v890_v43  ;;  %v549_v44 = vmul.f32 %v517_v30, %v517_v30 }
  0xff   : > { %v941_v29 = vmul.f32 0.0625, %v893_v61  ;;  %v550_v45 = vmul.f32 %v518_v60, %v518_v60  ;;  %v7391_v61 = vld [vmem:[#allocation10_spill] sm:$0xff] }
 0x100   : > { %v972_v16 = vsub.f32 %v4630_v58, %v940_v28  ;;  %v625_v50 = vsel %vm365_vm0, %v549_v44, 0.0  ;;  %v7392_v28 = vld [vmem:[#allocation11_spill] sm:$0xff] }
 0x101   : > { %v973_v17 = vsub.f32 %v4633_v59, %v941_v29  ;;  %1078 = vadd.xlane.f32.xlu1 %v1077_v15  ;;  %626 = vadd.xlane.f32.xlu0 %v625_v50  ;;  %v440_v51 = vpop.xlane.xlu0 %439  ;;  %v628_v3 = vsel %vm365_vm0, %v550_v45, 0.0 }
 0x102   : > { %v443_v6 = vpop.xlane.xlu1 %442  ;;  %v487_v4 = vmul.f32 0.0625, %v440_v51  ;;  %v1004_v31 = vmul.f32 %v972_v16, %v972_v16 }
 0x103   : > { %v488_v14 = vmul.f32 0.0625, %v443_v6  ;;  %v1005_v46 = vmul.f32 %v973_v17, %v973_v17 }
 0x104   : > { %v519_v9 = vsub.f32 %v7383_v8, %v487_v4  ;;  %v1080_v58 = vsel %vm365_vm0, %v1004_v31, 0.0  ;;  %v7393_v4 = vld [vmem:[#allocation12_spill] sm:$0xff]  ;;  %v7394_v31 = vld [vmem:[#allocation13_spill] sm:$0xff] }
 0x105   : > { %v520_v49 = vsub.f32 %v7384_v48, %v488_v14  ;;  %629 = vadd.xlane.f32.xlu1 %v628_v3  ;;  %1081 = vadd.xlane.f32.xlu0 %v1080_v58  ;;  %v896_v59 = vpop.xlane.xlu0 %895  ;;  %v1083_v11 = vsel %vm365_vm0, %v1005_v46, 0.0 }
 0x106   : > { %v899_v10 = vpop.xlane.xlu1 %898  ;;  %v942_v32 = vmul.f32 0.0625, %v896_v59  ;;  %v551_v47 = vmul.f32 %v519_v9, %v519_v9 }
 0x107   : > { %v943_v33 = vmul.f32 0.0625, %v899_v10  ;;  %v552_v55 = vmul.f32 %v520_v49, %v520_v49 }
 0x108   : > { %v974_v21 = vsub.f32 %v7385_v20, %v942_v32  ;;  %v631_v18 = vsel %vm365_vm0, %v551_v47, 0.0  ;;  %v7395_v32 = vld [vmem:[#allocation14_spill] sm:$0xff]  ;;  %v7396_v47 = vld [vmem:[#allocation15_spill] sm:$0xff] }
 0x109   : > { %v975_v62 = vsub.f32 %v7386_v52, %v943_v33  ;;  %1084 = vadd.xlane.f32.xlu1 %v1083_v11  ;;  %632 = vadd.xlane.f32.xlu0 %v631_v18  ;;  %v446_v19 = vpop.xlane.xlu0 %445  ;;  %v634_v0 = vsel %vm365_vm0, %v552_v55, 0.0 }
 0x10a   : > { %v449_v53 = vpop.xlane.xlu1 %448  ;;  %v489_v63 = vmul.f32 0.0625, %v446_v19  ;;  %v1006_v36 = vmul.f32 %v974_v21, %v974_v21 }
 0x10b   : > { %v490_v1 = vmul.f32 0.0625, %v449_v53  ;;  %v1007_v37 = vmul.f32 %v975_v62, %v975_v62 }
 0x10c   : > { %v521_v23 = vsub.f32 %v7387_v39, %v489_v63  ;;  %v1086_v12 = vsel %vm365_vm0, %v1006_v36, 0.0  ;;  %v7397_v63 = vld [vmem:[#allocation16_spill] sm:$0xff]  ;;  %v7398_v36 = vld [vmem:[#allocation17_spill] sm:$0xff] }
 0x10d   : > { %v522_v27 = vsub.f32 %v7388_v26, %v490_v1  ;;  %635 = vadd.xlane.f32.xlu1 %v634_v0  ;;  %1087 = vadd.xlane.f32.xlu0 %v1086_v12  ;;  %v902_v13 = vpop.xlane.xlu0 %901  ;;  %v1089_v25 = vsel %vm365_vm0, %v1007_v37, 0.0 }
 0x10e   : > { %v905_v24 = vpop.xlane.xlu1 %904  ;;  %v944_v56 = vmul.f32 0.0625, %v902_v13  ;;  %v553_v22 = vmul.f32 %v521_v23, %v521_v23 }
 0x10f   : > { %v945_v57 = vmul.f32 0.0625, %v905_v24  ;;  %v554_v38 = vmul.f32 %v522_v27, %v522_v27 }
 0x110   : > { %v976_v35 = vsub.f32 %v7389_v34, %v944_v56  ;;  %v637_v2 = vsel %vm365_vm0, %v553_v22, 0.0 }
 0x111   : > { %v977_v41 = vsub.f32 %v7390_v40, %v945_v57  ;;  %1090 = vadd.xlane.f32.xlu1 %v1089_v25  ;;  %638 = vadd.xlane.f32.xlu0 %v637_v2  ;;  %v452_v7 = vpop.xlane.xlu0 %451  ;;  %v640_v54 = vsel %vm365_vm0, %v554_v38, 0.0 }
 0x112   : > { %v455_v5 = vpop.xlane.xlu1 %454  ;;  %v491_v30 = vmul.f32 0.0625, %v452_v7  ;;  %v1008_v42 = vmul.f32 %v976_v35, %v976_v35 }
 0x113   : > { %v492_v60 = vmul.f32 0.0625, %v455_v5  ;;  %v1009_v43 = vmul.f32 %v977_v41, %v977_v41 }
 0x114   : > { %v523_v15 = vsub.f32 %v7391_v61, %v491_v30  ;;  %v1092_v44 = vsel %vm365_vm0, %v1008_v42, 0.0 }
 0x115   : > { %v524_v29 = vsub.f32 %v7392_v28, %v492_v60  ;;  %641 = vadd.xlane.f32.xlu1 %v640_v54  ;;  %1093 = vadd.xlane.f32.xlu0 %v1092_v44  ;;  %v908_v45 = vpop.xlane.xlu0 %907  ;;  %v1095_v17 = vsel %vm365_vm0, %v1009_v43, 0.0 }
 0x116   : > { %v911_v16 = vpop.xlane.xlu1 %910  ;;  %v946_v50 = vmul.f32 0.0625, %v908_v45  ;;  %v555_v6 = vmul.f32 %v523_v15, %v523_v15 }
 0x117   : > { %v947_v51 = vmul.f32 0.0625, %v911_v16  ;;  %v556_v3 = vmul.f32 %v524_v29, %v524_v29 }
 0x118   : > { %v978_v14 = vsub.f32 %v7393_v4, %v946_v50  ;;  %v643_v8 = vsel %vm365_vm0, %v555_v6, 0.0 }
 0x119   : > { %v979_v46 = vsub.f32 %v7394_v31, %v947_v51  ;;  %1096 = vadd.xlane.f32.xlu1 %v1095_v17  ;;  %644 = vadd.xlane.f32.xlu0 %v643_v8  ;;  %v458_v9 = vpop.xlane.xlu0 %457  ;;  %v646_v49 = vsel %vm365_vm0, %v556_v3, 0.0  ;;  %v4856_v8 = vld [vmem:[%s7251_s3] ss:$0 sm:$0xff] }
 0x11a   : > { %v461_v48 = vpop.xlane.xlu1 %460  ;;  %v493_v58 = vmul.f32 0.0625, %v458_v9  ;;  %v1010_v10 = vmul.f32 %v978_v14, %v978_v14  ;;  %v4231_v9 = vld [vmem:[%s4397_s9] sm:$0xff] }
 0x11b   : > { %v494_v59 = vmul.f32 0.0625, %v461_v48  ;;  %v1011_v11 = vmul.f32 %v979_v46, %v979_v46 }
 0x11c   : > { %v525_v33 = vsub.f32 %v7395_v32, %v493_v58  ;;  %v1098_v20 = vsel %vm365_vm0, %v1010_v10, 0.0 }
 0x11d   : > { %v526_v55 = vsub.f32 %v7396_v47, %v494_v59  ;;  %647 = vadd.xlane.f32.xlu1 %v646_v49  ;;  %1099 = vadd.xlane.f32.xlu0 %v1098_v20  ;;  %v914_v21 = vpop.xlane.xlu0 %913  ;;  %v1101_v62 = vsel %vm365_vm0, %v1011_v11, 0.0  ;;  %v4232_v49 = vld [vmem:[%s4391_s29] sm:$0xff]  ;;  %v4233_v59 = vld [vmem:[%s4391_s29 + $0x8] sm:$0xff] }
 0x11e   : > { %v917_v52 = vpop.xlane.xlu1 %916  ;;  %v557_v18 = vmul.f32 %v525_v33, %v525_v33  ;;  %v948_v19 = vmul.f32 0.0625, %v914_v21  ;;  %v4864_v47 = vld [vmem:[%s7250_s2] ss:$0 sm:$0xff]  ;;  %v4234_v21 = vld [vmem:[%s4397_s9 + $0x8] sm:$0xff] }
 0x11f   : > { %v949_v53 = vmul.f32 0.0625, %v917_v52  ;;  %v558_v0 = vmul.f32 %v526_v55, %v526_v55 }
 0x120   : > { %v980_v1 = vsub.f32 %v7397_v63, %v948_v19  ;;  %v649_v39 = vsel %vm365_vm0, %v557_v18, 0.0 }
 0x121   : > { %v981_v37 = vsub.f32 %v7398_v36, %v949_v53  ;;  %1102 = vadd.xlane.f32.xlu1 %v1101_v62  ;;  %650 = vadd.xlane.f32.xlu0 %v649_v39  ;;  %v652_v26 = vsel %vm365_vm0, %v558_v0, 0.0 }
 0x122   : > { %v1012_v23 = vmul.f32 %v980_v1, %v980_v1 }
 0x123   : > { %v1013_v27 = vmul.f32 %v981_v37, %v981_v37 }
 0x124   : > { %v1104_v12 = vsel %vm365_vm0, %v1012_v23, 0.0 }
 0x125   : > { %653 = vadd.xlane.f32.xlu1 %v652_v26  ;;  %1105 = vadd.xlane.f32.xlu0 %v1104_v12  ;;  %v1107_v13 = vsel %vm365_vm0, %v1013_v27, 0.0  ;;  %v4235_v26 = vld [vmem:[%s4391_s29 + $0x10] sm:$0xff] }
 0x129   : > { %1108 = vadd.xlane.f32.xlu1 %v1107_v13 }
 0x136   : > { %v561_v24 = vpop.xlane.xlu0 %560 }
 0x137   : > { %v655_v25 = vmul.f32 0.0625, %v561_v24 }
 0x139   : > { %v687_v56 = vadd.f32 1e-05, %v655_v25 }
 0x13a   : > { %v564_v57 = vpop.xlane.xlu1 %563  ;;  %v1016_v22 = vpop.xlane.xlu0 %1015 }
 0x13b   : > { %v656_v38 = vmul.f32 0.0625, %v564_v57  ;;  %v1110_v34 = vmul.f32 0.0625, %v1016_v22  ;;  %4103 = vrsqrt.f32 %v687_v56  ;;  %v4236_v56 = vld [vmem:[%s4397_s9 + $0x10] sm:$0xff] }
 0x13d   : > { %v688_v35 = vadd.f32 1e-05, %v656_v38  ;;  %v1142_v40 = vadd.f32 1e-05, %v1110_v34  ;;  %v4237_v34 = vld [vmem:[%s4391_s29 + $0x18] sm:$0xff] }
 0x13e   : > { %v1019_v41 = vpop.xlane.xlu1 %1018  ;;  %v567_v2 = vpop.xlane.xlu0 %566 }
 0x13f   : > { %4105 = vrsqrt.f32 %v688_v35  ;;  %v1111_v7 = vmul.f32 0.0625, %v1019_v41  ;;  %v657_v5 = vmul.f32 0.0625, %v567_v2 }
 0x140   : > { %4107 = vrsqrt.f32 %v1142_v40 }
 0x141   : > { %v1143_v54 = vadd.f32 1e-05, %v1111_v7  ;;  %v689_v30 = vadd.f32 1e-05, %v657_v5  ;;  %v4238_v5 = vld [vmem:[%s4397_s9 + $0x18] sm:$0xff] }
 0x142   : > { %v570_v60 = vpop.xlane.xlu1 %569  ;;  %v1022_v42 = vpop.xlane.xlu0 %1021 }
 0x143   : > { %4109 = vrsqrt.f32 %v1143_v54  ;;  %v658_v43 = vmul.f32 0.0625, %v570_v60  ;;  %v1112_v61 = vmul.f32 0.0625, %v1022_v42 }
 0x144   : > { %4111 = vrsqrt.f32 %v689_v30 }
 0x145   : > { %v690_v15 = vadd.f32 1e-05, %v658_v43  ;;  %v1144_v28 = vadd.f32 1e-05, %v1112_v61  ;;  %v4104_v17 = vpop.eup %4103 }
 0x146   : > { %v1025_v29 = vpop.xlane.xlu1 %1024  ;;  %v573_v44 = vpop.xlane.xlu0 %572  ;;  %v751_v58 = vmul.f32 %v4232_v49, %v4104_v17 }
 0x147   : > { %4113 = vrsqrt.f32 %v690_v15  ;;  %v1113_v45 = vmul.f32 0.0625, %v1025_v29  ;;  %v659_v16 = vmul.f32 0.0625, %v573_v44 }
 0x148   : > { %4115 = vrsqrt.f32 %v1144_v28  ;;  %v789_v0 = vmul.f32 %v4864_v47, %v751_v58  ;;  %v4241_v58 = vld [vmem:[%s4391_s29 + $0x28] sm:$0xff] }
 0x149   : > { %v4106_v50 = vpop.eup %4105  ;;  %v1145_v51 = vadd.f32 1e-05, %v1113_v45  ;;  %v691_v6 = vadd.f32 1e-05, %v659_v16 }
 0x14a   : > { %v4108_v3 = vpop.eup %4107  ;;  %v576_v4 = vpop.xlane.xlu1 %575  ;;  %v752_v10 = vmul.f32 %v4233_v59, %v4106_v50 }
 0x14b   : > { %v1028_v14 = vpop.xlane.xlu0 %1027  ;;  %4117 = vrsqrt.f32 %v1145_v51  ;;  %v660_v31 = vmul.f32 0.0625, %v576_v4  ;;  %v1206_v48 = vmul.f32 %v4231_v9, %v4108_v3  ;;  %v4239_v51 = vld [vmem:[%s4391_s29 + $0x20] sm:$0xff] }
 0x14c   : > { %v1114_v46 = vmul.f32 0.0625, %v1028_v14  ;;  %4119 = vrsqrt.f32 %v691_v6  ;;  %v790_v63 = vmul.f32 %v4864_v47, %v752_v10 }
 0x14d   : > { %v4110_v11 = vpop.eup %4109  ;;  %v692_v32 = vadd.f32 1e-05, %v660_v31  ;;  %v1244_v62 = vmul.f32 %v4856_v8, %v1206_v48 }
 0x14e   : > { %v1146_v33 = vadd.f32 1e-05, %v1114_v46  ;;  %v1031_v55 = vpop.xlane.xlu1 %1030  ;;  %v1207_v52 = vmul.f32 %v4234_v21, %v4110_v11  ;;  %v4112_v18 = vpop.eup %4111  ;;  %v4240_v46 = vld [vmem:[%s4397_s9 + $0x20] sm:$0xff] }
 0x14f   : > { %v579_v20 = vpop.xlane.xlu0 %578  ;;  %4121 = vrsqrt.f32 %v692_v32  ;;  %v1115_v19 = vmul.f32 0.0625, %v1031_v55  ;;  %v753_v27 = vmul.f32 %v4235_v26, %v4112_v18  ;;  %v1276_v24 = vadd.f32 %v1244_v62, %v789_v0  ;;  %v4242_v55 = vld [vmem:[%s4397_s9 + $0x28] sm:$0xff]  ;;  %v4243_v26 = vld [vmem:[%s4391_s29 + $0x30] sm:$0xff] }
 0x150   : > { %v661_v53 = vmul.f32 0.0625, %v579_v20  ;;  %4123 = vrsqrt.f32 %v1146_v33  ;;  %v1245_v1 = vmul.f32 %v4856_v8, %v1207_v52 }
 0x151   : > { %v4114_v36 = vpop.eup %4113  ;;  %v1147_v37 = vadd.f32 1e-05, %v1115_v19  ;;  %v791_v42 = vmul.f32 %v4864_v47, %v753_v27 }
 0x152   : > { %v693_v39 = vadd.f32 1e-05, %v661_v53  ;;  %v4116_v23 = vpop.eup %4115  ;;  %v582_v12 = vpop.xlane.xlu1 %581  ;;  %v1277_v25 = vadd.f32 %v1245_v1, %v790_v63  ;;  %v754_v35 = vmul.f32 %v4237_v34, %v4114_v36  ;;  %v4245_v34 = vld [vmem:[%s4391_s29 + $0x38] sm:$0xff] }
 0x153   : > { %v1034_v13 = vpop.xlane.xlu0 %1033  ;;  %v1208_v57 = vmul.f32 %v4236_v56, %v4116_v23  ;;  %4125 = vrsqrt.f32 %v1147_v37  ;;  %v662_v22 = vmul.f32 0.0625, %v582_v12  ;;  %v4244_v56 = vld [vmem:[%s4397_s9 + $0x30] sm:$0xff] }
 0x154   : > { %v1116_v38 = vmul.f32 0.0625, %v1034_v13  ;;  %v1308_v40 = vpack.c.bf16 %v1277_v25, %v1276_v24  ;;  %4127 = vrsqrt.f32 %v693_v39  ;;  %v792_v29 = vmul.f32 %v4864_v47, %v754_v35 }
 0x155   : > { %v4118_v41 = vpop.eup %4117  ;;  %v694_v2 = vadd.f32 1e-05, %v662_v22  ;;  %v1246_v43 = vmul.f32 %v4856_v8, %v1208_v57 }
 0x156   : > { %v1148_v7 = vadd.f32 1e-05, %v1116_v38  ;;  %v1209_v54 = vmul.f32 %v4238_v5, %v4118_v41  ;;  %v1037_v30 = vpop.xlane.xlu1 %1036  ;;  %4023 = vmatprep.mubr.msk.bf16.mxu0 %vm365_vm0, %v1308_v40  ;;  %v4120_v61 = vpop.eup %4119  ;;  %v4246_v5 = vld [vmem:[%s4397_s9 + $0x38] sm:$0xff] }
 0x157   : > { %v585_v60 = vpop.xlane.xlu0 %584  ;;  %4129 = vrsqrt.f32 %v694_v2  ;;  %v1117_v15 = vmul.f32 0.0625, %v1037_v30  ;;  %v755_v6 = vmul.f32 %v4239_v51, %v4120_v61  ;;  %v1278_v14 = vadd.f32 %v1246_v43, %v791_v42  ;;  %v4247_v51 = vld [vmem:[%s4391_s29 + $0x40] sm:$0xff] }
 0x158   : > { %v663_v28 = vmul.f32 0.0625, %v585_v60  ;;  %4131 = vrsqrt.f32 %v1148_v7  ;;  %v1247_v44 = vmul.f32 %v4856_v8, %v1209_v54 }
 0x159   : > { %v4122_v45 = vpop.eup %4121  ;;  %v1149_v16 = vadd.f32 1e-05, %v1117_v15  ;;  %v793_v62 = vmul.f32 %v4864_v47, %v755_v6 }
 0x15a   : > { %v695_v17 = vadd.f32 1e-05, %v663_v28  ;;  %v4124_v50 = vpop.eup %4123  ;;  %v588_v3 = vpop.xlane.xlu1 %587  ;;  %v1279_v31 = vadd.f32 %v1247_v44, %v792_v29  ;;  %v756_v59 = vmul.f32 %v4241_v58, %v4122_v45  ;;  %v4249_v58 = vld [vmem:[%s4391_s29 + $0x48] sm:$0xff] }
 0x15b   : > { %v1040_v4 = vpop.xlane.xlu0 %1039  ;;  %v1210_v9 = vmul.f32 %v4240_v46, %v4124_v50  ;;  %4133 = vrsqrt.f32 %v1149_v16  ;;  %v664_v48 = vmul.f32 0.0625, %v588_v3  ;;  %v4248_v46 = vld [vmem:[%s4397_s9 + $0x40] sm:$0xff] }
 0x15c   : > { %v1118_v49 = vmul.f32 0.0625, %v1040_v4  ;;  %v1309_v10 = vpack.c.bf16 %v1279_v31, %v1278_v14  ;;  %4135 = vrsqrt.f32 %v695_v17  ;;  %v794_v63 = vmul.f32 %v4864_v47, %v756_v59 }
 0x15d   : > { %v4126_v11 = vpop.eup %4125  ;;  %v696_v32 = vadd.f32 1e-05, %v664_v48  ;;  %v1248_v18 = vmul.f32 %v4856_v8, %v1210_v9 }
 0x15e   : > { %v1150_v33 = vadd.f32 1e-05, %v1118_v49  ;;  %v1211_v20 = vmul.f32 %v4242_v55, %v4126_v11  ;;  %v1043_v21 = vpop.xlane.xlu1 %1042  ;;  %4024 = vmatmul.mubr.msk.bf16.vlgmr.msra.gmra.mrb[0].mxu0 %vm365_vm0, %v1309_v10  ;;  %v4128_v19 = vpop.eup %4127  ;;  %v4250_v55 = vld [vmem:[%s4397_s9 + $0x48] sm:$0xff] }
 0x15f   : > { %v591_v52 = vpop.xlane.xlu0 %590  ;;  %4137 = vrsqrt.f32 %v696_v32  ;;  %v1119_v53 = vmul.f32 0.0625, %v1043_v21  ;;  %v757_v27 = vmul.f32 %v4243_v26, %v4128_v19  ;;  %v1280_v24 = vadd.f32 %v1248_v18, %v793_v62  ;;  %v4251_v26 = vld [vmem:[%s4391_s29 + $0x50] sm:$0xff] }
 0x160   : > { %v665_v0 = vmul.f32 0.0625, %v591_v52  ;;  %4139 = vrsqrt.f32 %v1150_v33  ;;  %v1249_v1 = vmul.f32 %v4856_v8, %v1211_v20 }
 0x161   : > { %v4130_v36 = vpop.eup %4129  ;;  %v1151_v37 = vadd.f32 1e-05, %v1119_v53  ;;  %v795_v42 = vmul.f32 %v4864_v47, %v757_v27 }
 0x162   : > { %v697_v39 = vadd.f32 1e-05, %v665_v0  ;;  %v4132_v23 = vpop.eup %4131  ;;  %v594_v12 = vpop.xlane.xlu1 %593  ;;  %v1281_v25 = vadd.f32 %v1249_v1, %v794_v63  ;;  %v758_v35 = vmul.f32 %v4245_v34, %v4130_v36  ;;  %v4253_v34 = vld [vmem:[%s4391_s29 + $0x58] sm:$0xff] }
 0x163   : > { %v1046_v13 = vpop.xlane.xlu0 %1045  ;;  %v1212_v57 = vmul.f32 %v4244_v56, %v4132_v23  ;;  %4141 = vrsqrt.f32 %v1151_v37  ;;  %v666_v22 = vmul.f32 0.0625, %v594_v12  ;;  %v4252_v56 = vld [vmem:[%s4397_s9 + $0x50] sm:$0xff] }
 0x164   : > { %v1120_v38 = vmul.f32 0.0625, %v1046_v13  ;;  %v1310_v40 = vpack.c.bf16 %v1281_v25, %v1280_v24  ;;  %4143 = vrsqrt.f32 %v697_v39  ;;  %v796_v29 = vmul.f32 %v4864_v47, %v758_v35 }
 0x165   : > { %v4134_v41 = vpop.eup %4133  ;;  %v698_v2 = vadd.f32 1e-05, %v666_v22  ;;  %v1250_v43 = vmul.f32 %v4856_v8, %v1212_v57 }
 0x166   : > { %v1152_v7 = vadd.f32 1e-05, %v1120_v38  ;;  %v1213_v54 = vmul.f32 %v4246_v5, %v4134_v41  ;;  %v1049_v30 = vpop.xlane.xlu1 %1048  ;;  %4027 = vmatprep.mubr.msk.bf16.mxu0 %vm365_vm0, %v1310_v40  ;;  %v4136_v61 = vpop.eup %4135  ;;  %v4254_v5 = vld [vmem:[%s4397_s9 + $0x58] sm:$0xff] }
 0x167   : > { %v597_v60 = vpop.xlane.xlu0 %596  ;;  %4145 = vrsqrt.f32 %v698_v2  ;;  %v1121_v15 = vmul.f32 0.0625, %v1049_v30  ;;  %v759_v6 = vmul.f32 %v4247_v51, %v4136_v61  ;;  %v1282_v14 = vadd.f32 %v1250_v43, %v795_v42  ;;  %v4255_v51 = vld [vmem:[%s4391_s29 + $0x60] sm:$0xff] }
 0x168   : > { %v667_v28 = vmul.f32 0.0625, %v597_v60  ;;  %4147 = vrsqrt.f32 %v1152_v7  ;;  %v1251_v44 = vmul.f32 %v4856_v8, %v1213_v54 }
 0x169   : > { %v4138_v45 = vpop.eup %4137  ;;  %v1153_v16 = vadd.f32 1e-05, %v1121_v15  ;;  %v797_v62 = vmul.f32 %v4864_v47, %v759_v6 }
 0x16a   : > { %v699_v17 = vadd.f32 1e-05, %v667_v28  ;;  %v4140_v50 = vpop.eup %4139  ;;  %v600_v3 = vpop.xlane.xlu1 %599  ;;  %v1283_v31 = vadd.f32 %v1251_v44, %v796_v29  ;;  %v760_v59 = vmul.f32 %v4249_v58, %v4138_v45  ;;  %v4257_v58 = vld [vmem:[%s4391_s29 + $0x68] sm:$0xff] }
 0x16b   : > { %v1052_v4 = vpop.xlane.xlu0 %1051  ;;  %v1214_v9 = vmul.f32 %v4248_v46, %v4140_v50  ;;  %4149 = vrsqrt.f32 %v1153_v16  ;;  %v668_v48 = vmul.f32 0.0625, %v600_v3  ;;  %v4256_v46 = vld [vmem:[%s4397_s9 + $0x60] sm:$0xff] }
 0x16c   : > { %v1122_v49 = vmul.f32 0.0625, %v1052_v4  ;;  %v1311_v10 = vpack.c.bf16 %v1283_v31, %v1282_v14  ;;  %4151 = vrsqrt.f32 %v699_v17  ;;  %v798_v63 = vmul.f32 %v4864_v47, %v760_v59 }
 0x16d   : > { %v4142_v11 = vpop.eup %4141  ;;  %v700_v32 = vadd.f32 1e-05, %v668_v48  ;;  %v1252_v18 = vmul.f32 %v4856_v8, %v1214_v9 }
 0x16e   : > { %v1154_v33 = vadd.f32 1e-05, %v1122_v49  ;;  %v1215_v20 = vmul.f32 %v4250_v55, %v4142_v11  ;;  %v1055_v21 = vpop.xlane.xlu1 %1054  ;;  %4028 = vmatmul.mubr.msk.bf16.gmra.mrb[4].mxu0 %vm365_vm0, %v1311_v10  ;;  %v4144_v19 = vpop.eup %4143  ;;  %v4258_v55 = vld [vmem:[%s4397_s9 + $0x68] sm:$0xff] }
 0x16f   : > { %v603_v52 = vpop.xlane.xlu0 %602  ;;  %4153 = vrsqrt.f32 %v700_v32  ;;  %v1123_v53 = vmul.f32 0.0625, %v1055_v21  ;;  %v761_v27 = vmul.f32 %v4251_v26, %v4144_v19  ;;  %v1284_v24 = vadd.f32 %v1252_v18, %v797_v62  ;;  %v4259_v26 = vld [vmem:[%s4391_s29 + $0x70] sm:$0xff] }
 0x170   : > { %v669_v0 = vmul.f32 0.0625, %v603_v52  ;;  %4155 = vrsqrt.f32 %v1154_v33  ;;  %v1253_v1 = vmul.f32 %v4856_v8, %v1215_v20 }
 0x171   : > { %v4146_v36 = vpop.eup %4145  ;;  %v1155_v37 = vadd.f32 1e-05, %v1123_v53  ;;  %v799_v42 = vmul.f32 %v4864_v47, %v761_v27 }
 0x172   : > { %v701_v39 = vadd.f32 1e-05, %v669_v0  ;;  %v4148_v23 = vpop.eup %4147  ;;  %v606_v12 = vpop.xlane.xlu1 %605  ;;  %v1285_v25 = vadd.f32 %v1253_v1, %v798_v63  ;;  %v762_v35 = vmul.f32 %v4253_v34, %v4146_v36  ;;  %v4261_v34 = vld [vmem:[%s4391_s29 + $0x78] sm:$0xff] }
 0x173   : > { %v1058_v13 = vpop.xlane.xlu0 %1057  ;;  %v1216_v57 = vmul.f32 %v4252_v56, %v4148_v23  ;;  %4157 = vrsqrt.f32 %v1155_v37  ;;  %v670_v22 = vmul.f32 0.0625, %v606_v12  ;;  %v4260_v56 = vld [vmem:[%s4397_s9 + $0x70] sm:$0xff] }
 0x174   : > { %v1124_v38 = vmul.f32 0.0625, %v1058_v13  ;;  %v1312_v40 = vpack.c.bf16 %v1285_v25, %v1284_v24  ;;  %4159 = vrsqrt.f32 %v701_v39  ;;  %v800_v29 = vmul.f32 %v4864_v47, %v762_v35 }
 0x175   : > { %v4150_v41 = vpop.eup %4149  ;;  %v702_v2 = vadd.f32 1e-05, %v670_v22  ;;  %v1254_v43 = vmul.f32 %v4856_v8, %v1216_v57 }
 0x176   : > { %v1156_v7 = vadd.f32 1e-05, %v1124_v38  ;;  %v1217_v54 = vmul.f32 %v4254_v5, %v4150_v41  ;;  %v1061_v30 = vpop.xlane.xlu1 %1060  ;;  %4031 = vmatprep.mubr.msk.bf16.mxu0 %vm365_vm0, %v1312_v40  ;;  %v4152_v61 = vpop.eup %4151  ;;  %v4262_v5 = vld [vmem:[%s4397_s9 + $0x78] sm:$0xff] }
 0x177   : > { %v609_v60 = vpop.xlane.xlu0 %608  ;;  %4161 = vrsqrt.f32 %v702_v2  ;;  %v1125_v15 = vmul.f32 0.0625, %v1061_v30  ;;  %v763_v6 = vmul.f32 %v4255_v51, %v4152_v61  ;;  %v1286_v14 = vadd.f32 %v1254_v43, %v799_v42  ;;  %v4263_v51 = vld [vmem:[%s4391_s29 + $0x80] sm:$0xff] }
 0x178   : > { %v671_v28 = vmul.f32 0.0625, %v609_v60  ;;  %4163 = vrsqrt.f32 %v1156_v7  ;;  %v1255_v44 = vmul.f32 %v4856_v8, %v1217_v54 }
 0x179   : > { %v4154_v45 = vpop.eup %4153  ;;  %v1157_v16 = vadd.f32 1e-05, %v1125_v15  ;;  %v801_v62 = vmul.f32 %v4864_v47, %v763_v6 }
 0x17a   : > { %v703_v17 = vadd.f32 1e-05, %v671_v28  ;;  %v4156_v50 = vpop.eup %4155  ;;  %v612_v3 = vpop.xlane.xlu1 %611  ;;  %v1287_v31 = vadd.f32 %v1255_v44, %v800_v29  ;;  %v764_v59 = vmul.f32 %v4257_v58, %v4154_v45  ;;  %v4265_v58 = vld [vmem:[%s4391_s29 + $0x88] sm:$0xff] }
 0x17b   : > { %v1064_v4 = vpop.xlane.xlu0 %1063  ;;  %v1218_v9 = vmul.f32 %v4256_v46, %v4156_v50  ;;  %4165 = vrsqrt.f32 %v1157_v16  ;;  %v672_v48 = vmul.f32 0.0625, %v612_v3  ;;  %v4264_v46 = vld [vmem:[%s4397_s9 + $0x80] sm:$0xff] }
 0x17c   : > { %v1126_v49 = vmul.f32 0.0625, %v1064_v4  ;;  %v1313_v10 = vpack.c.bf16 %v1287_v31, %v1286_v14  ;;  %4167 = vrsqrt.f32 %v703_v17  ;;  %v802_v63 = vmul.f32 %v4864_v47, %v764_v59 }
 0x17d   : > { %v4158_v11 = vpop.eup %4157  ;;  %v704_v32 = vadd.f32 1e-05, %v672_v48  ;;  %v1256_v18 = vmul.f32 %v4856_v8, %v1218_v9 }
 0x17e   : > { %v1158_v33 = vadd.f32 1e-05, %v1126_v49  ;;  %v1219_v20 = vmul.f32 %v4258_v55, %v4158_v11  ;;  %v1067_v21 = vpop.xlane.xlu1 %1066  ;;  %4032 = vmatmul.mubr.msk.bf16.gmra.mrb[8].mxu0 %vm365_vm0, %v1313_v10  ;;  %v4160_v19 = vpop.eup %4159  ;;  %v4266_v55 = vld [vmem:[%s4397_s9 + $0x88] sm:$0xff] }
 0x17f   : > { %v615_v52 = vpop.xlane.xlu0 %614  ;;  %4169 = vrsqrt.f32 %v704_v32  ;;  %v1127_v53 = vmul.f32 0.0625, %v1067_v21  ;;  %v765_v27 = vmul.f32 %v4259_v26, %v4160_v19  ;;  %v1288_v24 = vadd.f32 %v1256_v18, %v801_v62  ;;  %v4267_v26 = vld [vmem:[%s4391_s29 + $0x90] sm:$0xff] }
 0x180   : > { %v673_v0 = vmul.f32 0.0625, %v615_v52  ;;  %4171 = vrsqrt.f32 %v1158_v33  ;;  %v1257_v1 = vmul.f32 %v4856_v8, %v1219_v20 }
 0x181   : > { %v4162_v36 = vpop.eup %4161  ;;  %v1159_v37 = vadd.f32 1e-05, %v1127_v53  ;;  %v803_v42 = vmul.f32 %v4864_v47, %v765_v27 }
 0x182   : > { %v705_v39 = vadd.f32 1e-05, %v673_v0  ;;  %v4164_v23 = vpop.eup %4163  ;;  %v618_v12 = vpop.xlane.xlu1 %617  ;;  %v1289_v25 = vadd.f32 %v1257_v1, %v802_v63  ;;  %v766_v35 = vmul.f32 %v4261_v34, %v4162_v36  ;;  %v4269_v34 = vld [vmem:[%s4391_s29 + $0x98] sm:$0xff] }
 0x183   : > { %v1070_v13 = vpop.xlane.xlu0 %1069  ;;  %v1220_v57 = vmul.f32 %v4260_v56, %v4164_v23  ;;  %4173 = vrsqrt.f32 %v1159_v37  ;;  %v674_v22 = vmul.f32 0.0625, %v618_v12  ;;  %v4268_v56 = vld [vmem:[%s4397_s9 + $0x90] sm:$0xff] }
 0x184   : > { %v1128_v38 = vmul.f32 0.0625, %v1070_v13  ;;  %v1314_v40 = vpack.c.bf16 %v1289_v25, %v1288_v24  ;;  %4175 = vrsqrt.f32 %v705_v39  ;;  %v804_v29 = vmul.f32 %v4864_v47, %v766_v35 }
 0x185   : > { %v4166_v41 = vpop.eup %4165  ;;  %v706_v2 = vadd.f32 1e-05, %v674_v22  ;;  %v1258_v43 = vmul.f32 %v4856_v8, %v1220_v57 }
 0x186   : > { %v1160_v7 = vadd.f32 1e-05, %v1128_v38  ;;  %v1221_v54 = vmul.f32 %v4262_v5, %v4166_v41  ;;  %v1073_v30 = vpop.xlane.xlu1 %1072  ;;  %4035 = vmatprep.mubr.msk.bf16.mxu0 %vm365_vm0, %v1314_v40  ;;  %v4168_v61 = vpop.eup %4167  ;;  %v4270_v5 = vld [vmem:[%s4397_s9 + $0x98] sm:$0xff] }
 0x187   : > { %v621_v60 = vpop.xlane.xlu0 %620  ;;  %4177 = vrsqrt.f32 %v706_v2  ;;  %v1129_v15 = vmul.f32 0.0625, %v1073_v30  ;;  %v767_v6 = vmul.f32 %v4263_v51, %v4168_v61  ;;  %v1290_v14 = vadd.f32 %v1258_v43, %v803_v42  ;;  %v4271_v51 = vld [vmem:[%s4391_s29 + $0xa0] sm:$0xff] }
 0x188   : > { %v675_v28 = vmul.f32 0.0625, %v621_v60  ;;  %4179 = vrsqrt.f32 %v1160_v7  ;;  %v1259_v44 = vmul.f32 %v4856_v8, %v1221_v54 }
 0x189   : > { %v4170_v45 = vpop.eup %4169  ;;  %v1161_v16 = vadd.f32 1e-05, %v1129_v15  ;;  %v805_v62 = vmul.f32 %v4864_v47, %v767_v6 }
 0x18a   : > { %v707_v17 = vadd.f32 1e-05, %v675_v28  ;;  %v4172_v50 = vpop.eup %4171  ;;  %v624_v3 = vpop.xlane.xlu1 %623  ;;  %v1291_v31 = vadd.f32 %v1259_v44, %v804_v29  ;;  %v768_v59 = vmul.f32 %v4265_v58, %v4170_v45  ;;  %v4273_v58 = vld [vmem:[%s4391_s29 + $0xa8] sm:$0xff] }
 0x18b   : > { %v1076_v4 = vpop.xlane.xlu0 %1075  ;;  %v1222_v9 = vmul.f32 %v4264_v46, %v4172_v50  ;;  %4181 = vrsqrt.f32 %v1161_v16  ;;  %v676_v48 = vmul.f32 0.0625, %v624_v3  ;;  %v4272_v46 = vld [vmem:[%s4397_s9 + $0xa0] sm:$0xff] }
 0x18c   : > { %v1130_v49 = vmul.f32 0.0625, %v1076_v4  ;;  %v1315_v10 = vpack.c.bf16 %v1291_v31, %v1290_v14  ;;  %4183 = vrsqrt.f32 %v707_v17  ;;  %v806_v63 = vmul.f32 %v4864_v47, %v768_v59 }
 0x18d   : > { %v4174_v11 = vpop.eup %4173  ;;  %v708_v32 = vadd.f32 1e-05, %v676_v48  ;;  %v1260_v18 = vmul.f32 %v4856_v8, %v1222_v9 }
 0x18e   : > { %v1162_v33 = vadd.f32 1e-05, %v1130_v49  ;;  %v1223_v20 = vmul.f32 %v4266_v55, %v4174_v11  ;;  %v1079_v21 = vpop.xlane.xlu1 %1078  ;;  %4036 = vmatmul.mubr.msk.bf16.gmra.mrb[12].mxu0 %vm365_vm0, %v1315_v10  ;;  %v4176_v19 = vpop.eup %4175  ;;  %v4274_v55 = vld [vmem:[%s4397_s9 + $0xa8] sm:$0xff] }
 0x18f   : > { %v627_v52 = vpop.xlane.xlu0 %626  ;;  %4185 = vrsqrt.f32 %v708_v32  ;;  %v1131_v53 = vmul.f32 0.0625, %v1079_v21  ;;  %v769_v27 = vmul.f32 %v4267_v26, %v4176_v19  ;;  %v1292_v24 = vadd.f32 %v1260_v18, %v805_v62  ;;  %v4275_v26 = vld [vmem:[%s4391_s29 + $0xb0] sm:$0xff] }
 0x190   : > { %v677_v0 = vmul.f32 0.0625, %v627_v52  ;;  %4187 = vrsqrt.f32 %v1162_v33  ;;  %v1261_v1 = vmul.f32 %v4856_v8, %v1223_v20 }
 0x191   : > { %v4178_v36 = vpop.eup %4177  ;;  %v1163_v37 = vadd.f32 1e-05, %v1131_v53  ;;  %v807_v42 = vmul.f32 %v4864_v47, %v769_v27 }
 0x192   : > { %v709_v39 = vadd.f32 1e-05, %v677_v0  ;;  %v4180_v23 = vpop.eup %4179  ;;  %v630_v12 = vpop.xlane.xlu1 %629  ;;  %v1293_v25 = vadd.f32 %v1261_v1, %v806_v63  ;;  %v770_v35 = vmul.f32 %v4269_v34, %v4178_v36  ;;  %v4277_v34 = vld [vmem:[%s4391_s29 + $0xb8] sm:$0xff] }
 0x193   : > { %v1082_v13 = vpop.xlane.xlu0 %1081  ;;  %v1224_v57 = vmul.f32 %v4268_v56, %v4180_v23  ;;  %4189 = vrsqrt.f32 %v1163_v37  ;;  %v678_v22 = vmul.f32 0.0625, %v630_v12  ;;  %v4276_v56 = vld [vmem:[%s4397_s9 + $0xb0] sm:$0xff] }
 0x194   : > { %v1132_v38 = vmul.f32 0.0625, %v1082_v13  ;;  %v1316_v40 = vpack.c.bf16 %v1293_v25, %v1292_v24  ;;  %4191 = vrsqrt.f32 %v709_v39  ;;  %v808_v29 = vmul.f32 %v4864_v47, %v770_v35 }
 0x195   : > { %v4182_v41 = vpop.eup %4181  ;;  %v710_v2 = vadd.f32 1e-05, %v678_v22  ;;  %v1262_v43 = vmul.f32 %v4856_v8, %v1224_v57 }
 0x196   : > { %v1164_v7 = vadd.f32 1e-05, %v1132_v38  ;;  %v1225_v54 = vmul.f32 %v4270_v5, %v4182_v41  ;;  %v1085_v30 = vpop.xlane.xlu1 %1084  ;;  %4039 = vmatprep.mubr.msk.bf16.mxu0 %vm365_vm0, %v1316_v40  ;;  %v4184_v61 = vpop.eup %4183  ;;  %v4278_v5 = vld [vmem:[%s4397_s9 + $0xb8] sm:$0xff] }
 0x197   : > { %v633_v60 = vpop.xlane.xlu0 %632  ;;  %4193 = vrsqrt.f32 %v710_v2  ;;  %v1133_v15 = vmul.f32 0.0625, %v1085_v30  ;;  %v771_v6 = vmul.f32 %v4271_v51, %v4184_v61  ;;  %v1294_v14 = vadd.f32 %v1262_v43, %v807_v42  ;;  %v4279_v51 = vld [vmem:[%s4391_s29 + $0xc0] sm:$0xff] }
 0x198   : > { %v679_v28 = vmul.f32 0.0625, %v633_v60  ;;  %4195 = vrsqrt.f32 %v1164_v7  ;;  %v1263_v44 = vmul.f32 %v4856_v8, %v1225_v54 }
 0x199   : > { %v4186_v45 = vpop.eup %4185  ;;  %v1165_v16 = vadd.f32 1e-05, %v1133_v15  ;;  %v809_v62 = vmul.f32 %v4864_v47, %v771_v6 }
 0x19a   : > { %v711_v17 = vadd.f32 1e-05, %v679_v28  ;;  %v4188_v50 = vpop.eup %4187  ;;  %v636_v3 = vpop.xlane.xlu1 %635  ;;  %v1295_v31 = vadd.f32 %v1263_v44, %v808_v29  ;;  %v772_v59 = vmul.f32 %v4273_v58, %v4186_v45  ;;  %v4281_v58 = vld [vmem:[%s4391_s29 + $0xc8] sm:$0xff] }
 0x19b   : > { %v1088_v4 = vpop.xlane.xlu0 %1087  ;;  %v1226_v9 = vmul.f32 %v4272_v46, %v4188_v50  ;;  %4197 = vrsqrt.f32 %v1165_v16  ;;  %v680_v48 = vmul.f32 0.0625, %v636_v3  ;;  %v4280_v46 = vld [vmem:[%s4397_s9 + $0xc0] sm:$0xff] }
 0x19c   : > { %v1134_v49 = vmul.f32 0.0625, %v1088_v4  ;;  %v1317_v10 = vpack.c.bf16 %v1295_v31, %v1294_v14  ;;  %4199 = vrsqrt.f32 %v711_v17  ;;  %v810_v63 = vmul.f32 %v4864_v47, %v772_v59 }
 0x19d   : > { %v4190_v11 = vpop.eup %4189  ;;  %v712_v32 = vadd.f32 1e-05, %v680_v48  ;;  %v1264_v18 = vmul.f32 %v4856_v8, %v1226_v9 }
 0x19e   : > { %v1166_v33 = vadd.f32 1e-05, %v1134_v49  ;;  %v1227_v20 = vmul.f32 %v4274_v55, %v4190_v11  ;;  %v1091_v21 = vpop.xlane.xlu1 %1090  ;;  %4040 = vmatmul.mubr.msk.bf16.gmra.mrb[16].mxu0 %vm365_vm0, %v1317_v10  ;;  %v4192_v19 = vpop.eup %4191  ;;  %v4282_v55 = vld [vmem:[%s4397_s9 + $0xc8] sm:$0xff] }
 0x19f   : > { %v639_v52 = vpop.xlane.xlu0 %638  ;;  %4201 = vrsqrt.f32 %v712_v32  ;;  %v1135_v53 = vmul.f32 0.0625, %v1091_v21  ;;  %v773_v27 = vmul.f32 %v4275_v26, %v4192_v19  ;;  %v1296_v24 = vadd.f32 %v1264_v18, %v809_v62  ;;  %v4283_v26 = vld [vmem:[%s4391_s29 + $0xd0] sm:$0xff] }
 0x1a0   : > { %v681_v0 = vmul.f32 0.0625, %v639_v52  ;;  %4203 = vrsqrt.f32 %v1166_v33  ;;  %v1265_v1 = vmul.f32 %v4856_v8, %v1227_v20 }
 0x1a1   : > { %v4194_v36 = vpop.eup %4193  ;;  %v1167_v37 = vadd.f32 1e-05, %v1135_v53  ;;  %v811_v42 = vmul.f32 %v4864_v47, %v773_v27 }
 0x1a2   : > { %v713_v39 = vadd.f32 1e-05, %v681_v0  ;;  %v4196_v23 = vpop.eup %4195  ;;  %v642_v12 = vpop.xlane.xlu1 %641  ;;  %v1297_v25 = vadd.f32 %v1265_v1, %v810_v63  ;;  %v774_v35 = vmul.f32 %v4277_v34, %v4194_v36  ;;  %v4285_v34 = vld [vmem:[%s4391_s29 + $0xd8] sm:$0xff] }
 0x1a3   : > { %v1094_v13 = vpop.xlane.xlu0 %1093  ;;  %v1228_v57 = vmul.f32 %v4276_v56, %v4196_v23  ;;  %4205 = vrsqrt.f32 %v1167_v37  ;;  %v682_v22 = vmul.f32 0.0625, %v642_v12  ;;  %v4284_v56 = vld [vmem:[%s4397_s9 + $0xd0] sm:$0xff] }
 0x1a4   : > { %v1136_v38 = vmul.f32 0.0625, %v1094_v13  ;;  %v1318_v40 = vpack.c.bf16 %v1297_v25, %v1296_v24  ;;  %4207 = vrsqrt.f32 %v713_v39  ;;  %v812_v29 = vmul.f32 %v4864_v47, %v774_v35 }
 0x1a5   : > { %v4198_v41 = vpop.eup %4197  ;;  %v714_v2 = vadd.f32 1e-05, %v682_v22  ;;  %v1266_v43 = vmul.f32 %v4856_v8, %v1228_v57 }
 0x1a6   : > { %v1168_v7 = vadd.f32 1e-05, %v1136_v38  ;;  %v1229_v54 = vmul.f32 %v4278_v5, %v4198_v41  ;;  %v1097_v30 = vpop.xlane.xlu1 %1096  ;;  %4043 = vmatprep.mubr.msk.bf16.mxu0 %vm365_vm0, %v1318_v40  ;;  %v4200_v61 = vpop.eup %4199  ;;  %v4286_v5 = vld [vmem:[%s4397_s9 + $0xd8] sm:$0xff] }
 0x1a7   : > { %v645_v60 = vpop.xlane.xlu0 %644  ;;  %4209 = vrsqrt.f32 %v714_v2  ;;  %v1137_v15 = vmul.f32 0.0625, %v1097_v30  ;;  %v775_v6 = vmul.f32 %v4279_v51, %v4200_v61  ;;  %v1298_v14 = vadd.f32 %v1266_v43, %v811_v42 }
 0x1a8   : > { %v683_v28 = vmul.f32 0.0625, %v645_v60  ;;  %4211 = vrsqrt.f32 %v1168_v7  ;;  %v1267_v44 = vmul.f32 %v4856_v8, %v1229_v54 }
 0x1a9   : > { %v4202_v45 = vpop.eup %4201  ;;  %v1169_v16 = vadd.f32 1e-05, %v1137_v15  ;;  %v813_v62 = vmul.f32 %v4864_v47, %v775_v6  ;;  %v4288_v6 = vld [vmem:[%s4397_s9 + $0xe0] sm:$0xff] }
 0x1aa   : > { %v715_v17 = vadd.f32 1e-05, %v683_v28  ;;  %v4204_v50 = vpop.eup %4203  ;;  %v648_v3 = vpop.xlane.xlu1 %647  ;;  %v1299_v31 = vadd.f32 %v1267_v44, %v812_v29  ;;  %v776_v59 = vmul.f32 %v4281_v58, %v4202_v45 }
 0x1ab   : > { %v1100_v4 = vpop.xlane.xlu0 %1099  ;;  %v1230_v9 = vmul.f32 %v4280_v46, %v4204_v50  ;;  %4213 = vrsqrt.f32 %v1169_v16  ;;  %v684_v48 = vmul.f32 0.0625, %v648_v3  ;;  %v4287_v16 = vld [vmem:[%s4391_s29 + $0xe0] sm:$0xff] }
 0x1ac   : > { %v1138_v49 = vmul.f32 0.0625, %v1100_v4  ;;  %v1319_v10 = vpack.c.bf16 %v1299_v31, %v1298_v14  ;;  %4215 = vrsqrt.f32 %v715_v17  ;;  %v814_v63 = vmul.f32 %v4864_v47, %v776_v59  ;;  %v4289_v4 = vld [vmem:[%s4391_s29 + $0xe8] sm:$0xff] }
 0x1ad   : > { %v4206_v11 = vpop.eup %4205  ;;  %v716_v32 = vadd.f32 1e-05, %v684_v48  ;;  %v1268_v18 = vmul.f32 %v4856_v8, %v1230_v9  ;;  %v4290_v9 = vld [vmem:[%s4397_s9 + $0xe8] sm:$0xff] }
 0x1ae   : > { %v1170_v33 = vadd.f32 1e-05, %v1138_v49  ;;  %v1231_v20 = vmul.f32 %v4282_v55, %v4206_v11  ;;  %v1103_v21 = vpop.xlane.xlu1 %1102  ;;  %4044 = vmatmul.mubr.msk.bf16.gmra.mrb[20].mxu0 %vm365_vm0, %v1319_v10  ;;  %v4208_v19 = vpop.eup %4207  ;;  %v4291_v55 = vld [vmem:[%s4391_s29 + $0xf0] sm:$0xff] }
 0x1af   : > { %v651_v52 = vpop.xlane.xlu0 %650  ;;  %4217 = vrsqrt.f32 %v716_v32  ;;  %v1139_v53 = vmul.f32 0.0625, %v1103_v21  ;;  %v777_v27 = vmul.f32 %v4283_v26, %v4208_v19  ;;  %v1300_v24 = vadd.f32 %v1268_v18, %v813_v62  ;;  %v4292_v62 = vld [vmem:[%s4397_s9 + $0xf0] sm:$0xff]  ;;  %v4293_v19 = vld [vmem:[%s4391_s29 + $0xf8] sm:$0xff] }
 0x1b0   : > { %v685_v0 = vmul.f32 0.0625, %v651_v52  ;;  %4219 = vrsqrt.f32 %v1170_v33  ;;  %v1269_v1 = vmul.f32 %v4856_v8, %v1231_v20 }
 0x1b1   : > { %v4210_v36 = vpop.eup %4209  ;;  %v1171_v37 = vadd.f32 1e-05, %v1139_v53  ;;  %v815_v60 = vmul.f32 %v4864_v47, %v777_v27 }
 0x1b2   : > { %v717_v39 = vadd.f32 1e-05, %v685_v0  ;;  %v4212_v23 = vpop.eup %4211  ;;  %v654_v12 = vpop.xlane.xlu1 %653  ;;  %v1301_v25 = vadd.f32 %v1269_v1, %v814_v63  ;;  %v778_v35 = vmul.f32 %v4285_v34, %v4210_v36  ;;  %v4294_v1 = vld [vmem:[%s4397_s9 + $0xf8] sm:$0xff] }
 0x1b3   : > { %v1106_v13 = vpop.xlane.xlu0 %1105  ;;  %v1232_v57 = vmul.f32 %v4284_v56, %v4212_v23  ;;  %4221 = vrsqrt.f32 %v1171_v37  ;;  %v686_v22 = vmul.f32 0.0625, %v654_v12 }
 0x1b4   : > { %v1140_v38 = vmul.f32 0.0625, %v1106_v13  ;;  %v1320_v40 = vpack.c.bf16 %v1301_v25, %v1300_v24  ;;  %4223 = vrsqrt.f32 %v717_v39  ;;  %v816_v15 = vmul.f32 %v4864_v47, %v778_v35 }
 0x1b5   : > { %v4214_v41 = vpop.eup %4213  ;;  %v718_v2 = vadd.f32 1e-05, %v686_v22  ;;  %v1270_v42 = vmul.f32 %v4856_v8, %v1232_v57  ;;  %v1707_v24 = vlaneseq  ;;  %v1704_v57 = vld [vmem:[%s7253_s5] sm:$0x7]  ;;  %v4335_v22 = vmov 0.0  }
 0x1b6   : > { %v1172_v7 = vadd.f32 1e-05, %v1140_v38  ;;  %v1233_v54 = vmul.f32 %v4286_v5, %v4214_v41  ;;  %v1109_v30 = vpop.xlane.xlu1 %1108  ;;  %4047 = vmatprep.mubr.msk.bf16.mxu0 %vm365_vm0, %v1320_v40  ;;  %v4216_v43 = vpop.eup %4215  ;;  %v5010_v38 = vrot.slane %v4335_v22, 7 }
 0x1b7   : > { %4225 = vrsqrt.f32 %v718_v2  ;;  %v1141_v61 = vmul.f32 0.0625, %v1109_v30  ;;  %v779_v17 = vmul.f32 %v4287_v16, %v4216_v43  ;;  %v1302_v50 = vadd.f32 %v1270_v42, %v815_v60 }
 0x1b8   : > { %4227 = vrsqrt.f32 %v1172_v7  ;;  %v1271_v28 = vmul.f32 %v4856_v8, %v1233_v54  ;;  %v1708_v25 = vshrl.u32 %v1707_v24, 7  ;;  %7399 = vst [vmem:[#allocation2_spill] sm:$0xff] %v5010_v38  ;;  %v5020_v35 = vsel %vm1569_vm1, %v5010_v38, 0.0 }
 0x1b9   : > { %v4218_v29 = vpop.eup %4217  ;;  %v1173_v44 = vadd.f32 1e-05, %v1141_v61  ;;  %v817_v49 = vmul.f32 %v4864_v47, %v779_v17  ;;  %7401 = vst [vmem:[#allocation4_spill] sm:$0xff] %v5020_v35 }
 0x1ba   : > { %v4220_v45 = vpop.eup %4219  ;;  %v1303_v51 = vadd.f32 %v1271_v28, %v816_v15  ;;  %v780_v14 = vmul.f32 %v4289_v4, %v4218_v29  ;;  %v1777_v56 = vsub.s32 1, %v1708_v25  ;;  %v1709_v40 = vsub.s32 0, %v1708_v25  ;;  %v1706_v4 = vld [vmem:[%s7253_s5 + $0x8] sm:$0x7] }
 0x1bb   : > { %v1234_v3 = vmul.f32 %v4288_v6, %v4220_v45  ;;  %4229 = vrsqrt.f32 %v1173_v44 }
 0x1bc   : > { %v1321_v31 = vpack.c.bf16 %v1303_v51, %v1302_v50  ;;  %v818_v10 = vmul.f32 %v4864_v47, %v780_v14  ;;  %v5012_v34 = vrot.slane %v1704_v57, %v1777_v56  ;;  %v5030_v54 = vrot.slane %v1704_v57, %v1709_v40  ;;  %v1705_v51 = vld [vmem:[%s7253_s5 + $0x4] sm:$0x7] }
 0x1bd   : > { %v4222_v46 = vpop.eup %4221  ;;  %v1272_v58 = vmul.f32 %v4856_v8, %v1234_v3 }
 0x1be   : > { %v1235_v48 = vmul.f32 %v4290_v9, %v4222_v46  ;;  %4048 = vmatmul.mubr.msk.bf16.gmra.mrb[24].mxu0 %vm365_vm0, %v1321_v31  ;;  %v4224_v59 = vpop.eup %4223  ;;  %v1780_v7 = vmul.f32 %v5012_v34, %v5010_v38  ;;  %v1781_v5 = vmul.f32 %v5012_v34, %v5020_v35  ;;  %v1712_v16 = vmul.f32 %v5030_v54, %v5010_v38 }
 0x1bf   : > { %v781_v20 = vmul.f32 %v4291_v55, %v4224_v59  ;;  %v1304_v21 = vadd.f32 %v1272_v58, %v817_v49  ;;  %v5052_v49 = vrot.slane %v1705_v51, %v1709_v40  ;;  %v5054_v58 = vrot.slane %v1705_v51, %v1777_v56 }
 0x1c0   : > { %v1273_v11 = vmul.f32 %v4856_v8, %v1235_v48  ;;  %v1877_v60 = vrot.slane %v1780_v7, 1  ;;  %v1879_v61 = vrot.slane %v1781_v5, 1 }
 0x1c1   : > { %v4226_v32 = vpop.eup %4225  ;;  %v819_v37 = vmul.f32 %v4864_v47, %v781_v20 }
 0x1c2   : > { %v4228_v33 = vpop.eup %4227  ;;  %v1305_v52 = vadd.f32 %v1273_v11, %v818_v10  ;;  %v782_v53 = vmul.f32 %v4293_v19, %v4226_v32  ;;  %v1880_v17 = vsel %vm1875_vm2, %v1877_v60, %v1879_v61 }
 0x1c3   : > { %v1236_v18 = vmul.f32 %v4292_v62, %v4228_v33  ;;  %v1989_v14 = vadd.f32 %v1880_v17, %v1712_v16  ;;  %v5058_v33 = vrot.slane %v1706_v4, %v1777_v56 }
 0x1c4   : > { %v1322_v0 = vpack.c.bf16 %v1305_v52, %v1304_v21  ;;  %v820_v23 = vmul.f32 %v4864_v47, %v782_v53  ;;  %v2022_v47 = vsub.s32 2, %v1708_v25 }
 0x1c5   : > { %v4230_v63 = vpop.eup %4229  ;;  %v1274_v39 = vmul.f32 %v4856_v8, %v1236_v18 }
 0x1c6   : > { %v1237_v36 = vmul.f32 %v4294_v1, %v4230_v63  ;;  %4051 = vmatprep.mubr.msk.bf16.mxu0 %vm365_vm0, %v1322_v0  ;;  %v5022_v41 = vrot.slane %v1704_v57, %v2022_v47  ;;  %v5056_v11 = vrot.slane %v1705_v51, %v2022_v47  ;;  %v5063_v21 = vrot.slane %v1706_v4, %v2022_v47 }
 0x1c7   : > { %v1306_v27 = vadd.f32 %v1274_v39, %v819_v37  ;;  %v5076_v0 = vrot.slane %v1706_v4, %v1709_v40 }
 0x1c8   : > { %v1275_v26 = vmul.f32 %v4856_v8, %v1237_v36  ;;  %v5016_v8 = vsel %vm1569_vm1, 0.0, %v5010_v38  ;;  %v2025_v43 = vmul.f32 %v5022_v41, %v5010_v38  ;;  %v2026_v15 = vmul.f32 %v5022_v41, %v5020_v35 }
 0x1c9   : > { %7400 = vst [vmem:[#allocation3_spill] sm:$0xff] %v5016_v8  ;;  %v1779_v2 = vmul.f32 %v5012_v34, %v5016_v8  ;;  %v2024_v42 = vmul.f32 %v5022_v41, %v5016_v8  ;;  %v1711_v28 = vmul.f32 %v5030_v54, %v5016_v8 }
 0x1ca   : > { %v1307_v12 = vadd.f32 %v1275_v26, %v820_v23  ;;  %v2122_v45 = vrot.slane %v2025_v43, 2  ;;  %v2124_v50 = vrot.slane %v2026_v15, 2 }
 0x1cb   : > { %v1876_v30 = vrot.slane %v1779_v2, 1  ;;  %v2121_v44 = vrot.slane %v2024_v42, 2 }
 0x1cc   : > { %v1323_v13 = vpack.c.bf16 %v1307_v12, %v1306_v27  ;;  %v2125_v46 = vsel %vm2120_vm3, %v2122_v45, %v2124_v50 }
 0x1cd   : > { %v1878_v29 = vsel %vm1875_vm2, %v1876_v30, %v1877_v60  ;;  %v2123_v3 = vsel %vm2120_vm3, %v2121_v44, %v2122_v45  ;;  %v5065_v62 = vadd.f32 %v2125_v46, %v1989_v14 }
 0x1ce   : > { %4052 = vmatmul.mubr.msk.bf16.gmra.mrb[28].mxu0 %vm365_vm0, %v1323_v13  ;;  %v1988_v6 = vadd.f32 %v1878_v29, %v1711_v28 }
 0x1d0   : > { %v2233_v10 = vadd.f32 %v2123_v3, %v1988_v6 }
 0x231   : > { %v4025_v31 = vpop.f32.mrb[0].mxu0 }
 0x232   : > { %v1575_v9 = vrot.slane %v4025_v31, 7  ;;  %v1409_v48 = vpop.f32.mrb[1].mxu0 }
 0x233   : > { %v1572_v59 = vrot.slane %v1409_v48, 7  ;;  %v4026_v32 = vpop.f32.mrb[2].mxu0 }
 0x234   : > { %v5061_v55 = vsel %vm1569_vm1, 0.0, %v1575_v9  ;;  %v1576_v20 = vrot.slane %v4026_v32, 7  ;;  %v1412_v52 = vpop.f32.mrb[3].mxu0 }
 0x235   : > { %v5069_v18 = vmul.f32 %v5012_v34, %v5061_v55  ;;  %v5073_v19 = vmul.f32 %v5022_v41, %v5061_v55  ;;  %v1671_v53 = vsel %vm1569_vm1, 0.0, %v1572_v59  ;;  %v5080_v63 = vmul.f32 %v5030_v54, %v5061_v55 }
 0x236   : > { %v5083_v1 = vmul.f32 %v5012_v34, %v1671_v53  ;;  %v5086_v36 = vmul.f32 %v5022_v41, %v1671_v53  ;;  %v2269_v37 = vmul.f32 %v5052_v49, %v1671_v53  ;;  %v5091_v23 = vmul.f32 %v5030_v54, %v1671_v53 }
 0x237   : > { %v5094_v26 = vmul.f32 %v5054_v58, %v1671_v53  ;;  %v5097_v27 = vmul.f32 %v5056_v11, %v1671_v53  ;;  %v5103_v25 = vsel %vm1569_vm1, %v1575_v9, %v1576_v20  ;;  %v1689_v47 = vsel %vm1569_vm1, %v1576_v20, 0.0 }
 0x238   : > { %v1881_v13 = vrot.slane %v5083_v1, 1  ;;  %v2126_v24 = vrot.slane %v5086_v36, 2  ;;  %v5105_v56 = vadd.f32 %v2269_v37, %v2233_v10  ;;  %v5112_v40 = vmul.f32 %v5012_v34, %v5103_v25 }
 0x239   : > { %v2433_v57 = vrot.slane %v5094_v26, 1  ;;  %v1787_v2 = vmul.f32 %v5012_v34, %v1689_v47  ;;  %v5117_v7 = vmul.f32 %v5022_v41, %v5103_v25  ;;  %v2032_v5 = vmul.f32 %v5022_v41, %v1689_v47 }
 0x23a   : > { %v5121_v30 = vmul.f32 %v5054_v58, %v1689_v47  ;;  %v5124_v60 = vmul.f32 %v5056_v11, %v1689_v47  ;;  %v5127_v42 = vmul.f32 %v5058_v33, %v1689_v47  ;;  %v5130_v43 = vmul.f32 %v5063_v21, %v1689_v47 }
 0x23b   : > { %v7273_v61 = vrot.slane %v5112_v40, 1  ;;  %v1889_v15 = vrot.slane %v1787_v2, 1  ;;  %v7272_v28 = vrot.slane %v5117_v7, 2  ;;  %v2134_v29 = vrot.slane %v2032_v5, 2 }
 0x23c   : > { %v1716_v44 = vmul.f32 %v5030_v54, %v5103_v25  ;;  %v1573_v3 = vrot.slane %v1412_v52, 7  ;;  %v2272_v14 = vmul.f32 %v5052_v49, %v5103_v25  ;;  %v5150_v31 = vmul.f32 %v5076_v0, %v5061_v55 }
 0x23d   : > { %v1890_v50 = vsel %vm1875_vm2, %v7273_v61, %v1889_v15  ;;  %v2135_v51 = vsel %vm2120_vm3, %v7272_v28, %v2134_v29  ;;  %v5154_v46 = vmul.f32 %v5058_v33, %v5061_v55  ;;  %v5160_v10 = vmul.f32 %v5058_v33, %v5103_v25 }
 0x23e   : > { %v1993_v4 = vadd.f32 %v1890_v50, %v1716_v44  ;;  %v1574_v9 = vsel %vm1569_vm1, %v1572_v59, %v1573_v3  ;;  %v1688_v48 = vsel %vm1569_vm1, %v1573_v3, 0.0  ;;  %v5164_v32 = vmul.f32 %v5063_v21, %v5061_v55 }
 0x23f   : > { %v1714_v52 = vmul.f32 %v5030_v54, %v1574_v9  ;;  %v1783_v53 = vmul.f32 %v5012_v34, %v1574_v9  ;;  %v1784_v1 = vmul.f32 %v5012_v34, %v1688_v48  ;;  %v2028_v59 = vmul.f32 %v5022_v41, %v1574_v9 }
 0x240   : > { %v5166_v20 = vadd.f32 %v2135_v51, %v1993_v4  ;;  %v2029_v37 = vmul.f32 %v5022_v41, %v1688_v48  ;;  %v2270_v47 = vmul.f32 %v5052_v49, %v1574_v9  ;;  %v2338_v2 = vmul.f32 %v5054_v58, %v1574_v9 }
 0x241   : > { %v4029_v36 = vpop.f32.mrb[4].mxu0  ;;  %v1882_v15 = vrot.slane %v1783_v53, 1  ;;  %v1884_v29 = vrot.slane %v1784_v1, 1  ;;  %v2339_v44 = vmul.f32 %v5054_v58, %v1688_v48  ;;  %v5179_v50 = vmul.f32 %v5056_v11, %v1574_v9 }
 0x242   : > { %v5175_v5 = vpop.f32.mrb[5].mxu0  ;;  %v2127_v3 = vrot.slane %v2028_v59, 2  ;;  %v2129_v4 = vrot.slane %v2029_v37, 2  ;;  %v2302_v12 = vadd.f32 %v2270_v47, %v5065_v62  ;;  %v2434_v28 = vrot.slane %v2338_v2, 1 }
 0x243   : > { %v4030_v51 = vpop.f32.mrb[6].mxu0  ;;  %v1883_v61 = vsel %vm1875_vm2, %v1881_v13, %v1882_v15  ;;  %v1885_v16 = vsel %vm1875_vm2, %v1882_v15, %v1884_v29  ;;  %v2436_v45 = vrot.slane %v2339_v44, 1  ;;  %v2583_v53 = vmul.f32 %v5056_v11, %v1688_v48 }
 0x244   : > { %v1428_v39 = vpop.f32.mrb[7].mxu0  ;;  %v5186_v1 = vadd.f32 %v1883_v61, %v5091_v23  ;;  %v1991_v6 = vadd.f32 %v1885_v16, %v1714_v52  ;;  %v5189_v9 = vsel %vm2120_vm3, %v2126_v24, %v2127_v3  ;;  %v2130_v59 = vsel %vm2120_vm3, %v2127_v3, %v2129_v4 }
 0x245   : > { %v2437_v62 = vsel %vm1875_vm2, %v2434_v28, %v2436_v45  ;;  %v7274_v37 = vrot.slane %v5179_v50, 2  ;;  %v2680_v47 = vrot.slane %v2583_v53, 2  ;;  %v1581_v13 = vrot.slane %v4029_v36, 7 }
 0x246   : > { %v2236_v2 = vadd.f32 %v2130_v59, %v1991_v6  ;;  %v2546_v15 = vadd.f32 %v2437_v62, %v2302_v12  ;;  %v1578_v29 = vrot.slane %v5175_v5, 7  ;;  %v1582_v48 = vrot.slane %v4030_v51, 7 }
 0x247   : > { %v2681_v23 = vsel %vm2120_vm3, %v7274_v37, %v2680_v47  ;;  %v5199_v24 = vsel %vm1569_vm1, 0.0, %v1581_v13  ;;  %v2435_v61 = vsel %vm1875_vm2, %v2433_v57, %v2434_v28  ;;  %v5206_v45 = vmul.f32 %v5063_v21, %v5103_v25 }
 0x248   : > { %v5208_v16 = vadd.f32 %v2272_v14, %v2236_v2  ;;  %v5210_v12 = vadd.f32 %v2681_v23, %v2546_v15  ;;  %v5214_v6 = vmul.f32 %v5012_v34, %v5199_v24  ;;  %v1579_v52 = vrot.slane %v1428_v39, 7 }
 0x249   : > { %v5218_v36 = vmul.f32 %v5022_v41, %v5199_v24  ;;  %v5221_v26 = vsel %vm1569_vm1, 0.0, %v1578_v29  ;;  %v5224_v57 = vsel %vm1569_vm1, %v1581_v13, %v1582_v48  ;;  %v1691_v28 = vsel %vm1569_vm1, %v1582_v48, 0.0 }
 0x24a   : > { %7402 = vst [vmem:[#allocation5_spill] sm:$0xff] %v5214_v6  ;;  %v5229_v14 = vmul.f32 %v5030_v54, %v5199_v24  ;;  %v5234_v39 = vmul.f32 %v5030_v54, %v5221_v26  ;;  %v5238_v44 = vmul.f32 %v5012_v34, %v5221_v26  ;;  %v5243_v3 = vmul.f32 %v5022_v41, %v5221_v26 }
 0x24b   : > { %7403 = vst [vmem:[#allocation6_spill] sm:$0xff] %v5218_v36  ;;  %v5247_v4 = vmul.f32 %v5012_v34, %v5224_v57  ;;  %v1793_v53 = vmul.f32 %v5012_v34, %v1691_v28  ;;  %v1720_v62 = vmul.f32 %v5030_v54, %v5224_v57  ;;  %v5255_v47 = vmul.f32 %v5022_v41, %v5224_v57 }
 0x24c   : > { %7404 = vst [vmem:[#allocation7_spill] sm:$0xff] %v5229_v14  ;;  %7405 = vst [vmem:[#allocation8_spill] sm:$0xff] %v5234_v39  ;;  %v2038_v13 = vmul.f32 %v5022_v41, %v1691_v28  ;;  %v5260_v48 = vmul.f32 %v5054_v58, %v1691_v28  ;;  %v5263_v23 = vmul.f32 %v5056_v11, %v1691_v28 }
 0x24d   : > { %7406 = vst [vmem:[#allocation9_spill] sm:$0xff] %v5238_v44  ;;  %7407 = vst [vmem:[#allocation10_spill] sm:$0xff] %v5243_v3  ;;  %v7281_v2 = vrot.slane %v5247_v4, 1  ;;  %v1899_v15 = vrot.slane %v1793_v53, 1  ;;  %v7282_v51 = vrot.slane %v5255_v47, 2  ;;  %v5267_v59 = vmul.f32 %v5058_v33, %v1691_v28 }
 0x24e   : > { %7408 = vst [vmem:[#allocation11_spill] sm:$0xff] %v5247_v4  ;;  %7409 = vst [vmem:[#allocation12_spill] sm:$0xff] %v5255_v47  ;;  %v2144_v5 = vrot.slane %v2038_v13, 2  ;;  %v5270_v17 = vmul.f32 %v5063_v21, %v1691_v28  ;;  %v5278_v35 = vsel %vm1569_vm1, %v1578_v29, %v1579_v52  ;;  %v2545_v22 = vadd.f32 %v2435_v61, %v5105_v56 }
 0x24f   : > { %7410 = vst [vmem:[#allocation13_spill] sm:$0xff] %v5260_v48  ;;  %7411 = vst [vmem:[#allocation14_spill] sm:$0xff] %v5263_v23  ;;  %v1900_v53 = vsel %vm1875_vm2, %v7281_v2, %v1899_v15  ;;  %v1690_v2 = vsel %vm1569_vm1, %v1579_v52, 0.0  ;;  %v5293_v29 = vmul.f32 %v5012_v34, %v5278_v35  ;;  %v7413_v15 = vrot.slane %v5179_v50, 2 }
 0x250   : > { %v1997_v13 = vadd.f32 %v1900_v53, %v1720_v62  ;;  %v2145_v8 = vsel %vm2120_vm3, %v7282_v51, %v2144_v5  ;;  %v5297_v62 = vmul.f32 %v5022_v41, %v5278_v35  ;;  %v1790_v51 = vmul.f32 %v5012_v34, %v1690_v2 }
 0x251   : > { %v5280_v38 = vpop.f32.mrb[8].mxu0  ;;  %v2035_v28 = vmul.f32 %v5022_v41, %v1690_v2  ;;  %v5306_v37 = vmul.f32 %v5054_v58, %v1690_v2  ;;  %v5313_v36 = vmul.f32 %v5056_v11, %v1690_v2  ;;  %v5316_v47 = vmul.f32 %v5058_v33, %v1690_v2 }
 0x252   : > { %v5287_v14 = vpop.f32.mrb[9].mxu0  ;;  %v5301_v5 = vadd.f32 %v2145_v8, %v1997_v13  ;;  %v1718_v8 = vmul.f32 %v5030_v54, %v5278_v35  ;;  %v1894_v13 = vrot.slane %v1790_v51, 1  ;;  %v5323_v23 = vmul.f32 %v5063_v21, %v1690_v2 }
 0x253   : > { %v5299_v53 = vpop.f32.mrb[10].mxu0  ;;  %v7414_v48 = vrot.slane %v5097_v27, 2  ;;  %v7415_v3 = vrot.slane %v5293_v29, 1  ;;  %v2989_v2 = vrot.slane %v5154_v46, 1  ;;  %v2990_v50 = vrot.slane %v5160_v10, 1 }
 0x254   : > { %7412 = vst [vmem:[#allocation15_spill] sm:$0xff] %v5301_v5  ;;  %v5308_v52 = vpop.f32.mrb[11].mxu0  ;;  %v2139_v5 = vrot.slane %v2035_v28, 2  ;;  %v7416_v28 = vrot.slane %v5297_v62, 2  ;;  %v3233_v27 = vrot.slane %v5164_v32, 2  ;;  %v3234_v61 = vrot.slane %v5206_v45, 2 }
 0x255   : > { %v2679_v39 = vsel %vm2120_vm3, %v7414_v48, %v7413_v15  ;;  %v1895_v51 = vsel %vm1875_vm2, %v7415_v3, %v1894_v13  ;;  %v2826_v48 = vmul.f32 %v5076_v0, %v5103_v25  ;;  %v2235_v3 = vadd.f32 %v5189_v9, %v5186_v1 }
 0x256   : > { %v2140_v6 = vsel %vm2120_vm3, %v7416_v28, %v2139_v5  ;;  %v1995_v44 = vadd.f32 %v1895_v51, %v1718_v8  ;;  %v2789_v56 = vadd.f32 %v2679_v39, %v2545_v22  ;;  %v2271_v15 = vmul.f32 %v5052_v49, %v5061_v55 }
 0x257   : > { %v2991_v22 = vsel %vm1875_vm2, %v2989_v2, %v2990_v50  ;;  %v7417_v10 = vrot.slane %v5127_v42, 1  ;;  %v3235_v45 = vsel %vm2120_vm3, %v3233_v27, %v3234_v61  ;;  %v2858_v39 = vadd.f32 %v2826_v48, %v5210_v12 }
 0x258   : > { %v5348_v5 = vadd.f32 %v2140_v6, %v1995_v44  ;;  %v2857_v46 = vadd.f32 %v5150_v31, %v2789_v56  ;;  %v7418_v8 = vrot.slane %v5130_v43, 2  ;;  %v2303_v9 = vadd.f32 %v2271_v15, %v2235_v3 }
 0x259   : > { %v2993_v32 = vsel %vm1875_vm2, %v2990_v50, %v7417_v10  ;;  %v2340_v6 = vmul.f32 %v5054_v58, %v5061_v55  ;;  %v5364_v31 = vmul.f32 %v5054_v58, %v5103_v25  ;;  %v2584_v42 = vmul.f32 %v5056_v11, %v5061_v55 }
 0x25a   : > { %v3237_v1 = vsel %vm2120_vm3, %v3234_v61, %v7418_v8  ;;  %v3101_v13 = vadd.f32 %v2991_v22, %v2857_v46  ;;  %v3102_v44 = vadd.f32 %v2993_v32, %v2858_v39  ;;  %v5370_v12 = vmul.f32 %v5056_v11, %v5103_v25 }
 0x25b   : > { %v2827_v43 = vmul.f32 %v5076_v0, %v5221_v26  ;;  %v2896_v51 = vmul.f32 %v5058_v33, %v5221_v26  ;;  %v2438_v2 = vrot.slane %v2340_v6, 1  ;;  %v7294_v56 = vrot.slane %v5364_v31, 1 }
 0x25c   : > { %v5376_v28 = vadd.f32 %v3235_v45, %v3101_v13  ;;  %v2682_v50 = vrot.slane %v2584_v42, 2  ;;  %v5379_v27 = vadd.f32 %v3237_v1, %v3102_v44  ;;  %v7293_v55 = vrot.slane %v5370_v12, 2 }
 0x25d   : > { %v5384_v25 = vmul.f32 %v5058_v33, %v5278_v35  ;;  %v2994_v61 = vrot.slane %v2896_v51, 1  ;;  %v2440_v48 = vsel %vm1875_vm2, %v2438_v2, %v7294_v56  ;;  %v3140_v3 = vmul.f32 %v5063_v21, %v5221_v26 }
 0x25e   : > { %7419 = vst [vmem:[#allocation16_spill] sm:$0xff] %v5376_v28  ;;  %7420 = vst [vmem:[#allocation17_spill] sm:$0xff] %v5379_v27  ;;  %3441 = vrot.lane.b32.xlu0 %v5376_v28, %s4336_s25  ;;  %v5395_v15 = vmul.f32 %v5063_v21, %v5278_v35  ;;  %v1587_v46 = vrot.slane %v5280_v38, 7  ;;  %3443 = vrot.lane.b32.xlu1 %v5379_v27, %s4336_s25  ;;  %v2547_v10 = vadd.f32 %v2440_v48, %v2303_v9 }
 0x25f   : > { %v2684_v32 = vsel %vm2120_vm3, %v2682_v50, %v7293_v55  ;;  %v7292_v45 = vrot.slane %v5384_v25, 1  ;;  %v1584_v39 = vrot.slane %v5287_v14, 7  ;;  %v3238_v1 = vrot.slane %v3140_v3, 2 }
 0x260   : > { %v7291_v13 = vrot.slane %v5395_v15, 2  ;;  %v5411_v38 = vsel %vm1569_vm1, 0.0, %v1587_v46  ;;  %v1588_v6 = vrot.slane %v5299_v53, 7  ;;  %v2791_v44 = vadd.f32 %v2684_v32, %v2547_v10 }
 0x261   : > { %v5398_v22 = vpop.f32.mrb[12].mxu0  ;;  %v2996_v51 = vsel %vm1875_vm2, %v2994_v61, %v7292_v45  ;;  %v5422_v14 = vmul.f32 %v5012_v34, %v5411_v38  ;;  %v5431_v53 = vmul.f32 %v5022_v41, %v5411_v38  ;;  %v5434_v48 = vsel %vm1569_vm1, 0.0, %v1584_v39 }
 0x262   : > { %v5407_v8 = vpop.f32.mrb[13].mxu0  ;;  %v3240_v50 = vsel %vm2120_vm3, %v3238_v1, %v7291_v13  ;;  %v5437_v3 = vsel %vm1569_vm1, %v1587_v46, %v1588_v6  ;;  %v2859_v61 = vadd.f32 %v2827_v43, %v2791_v44  ;;  %v5441_v10 = vmul.f32 %v5030_v54, %v5411_v38 }
 0x263   : > { %v5414_v42 = vpop.f32.mrb[14].mxu0  ;;  %7421 = vst [vmem:[#allocation18_spill] sm:$0xff] %v5422_v14  ;;  %7422 = vst [vmem:[#allocation19_spill] sm:$0xff] %v5431_v53  ;;  %v5446_v1 = vmul.f32 %v5012_v34, %v5434_v48  ;;  %v5451_v9 = vmul.f32 %v5030_v54, %v5434_v48  ;;  %v5455_v46 = vmul.f32 %v5022_v41, %v5434_v48  ;;  %v1693_v43 = vsel %vm1569_vm1, %v1588_v6, 0.0 }
 0x264   : > { %v5424_v2 = vpop.f32.mrb[15].mxu0  ;;  %7423 = vst [vmem:[#allocation20_spill] sm:$0xff] %v5441_v10  ;;  %v3103_v44 = vadd.f32 %v2996_v51, %v2859_v61  ;;  %v1724_v32 = vmul.f32 %v5030_v54, %v5437_v3  ;;  %v5462_v45 = vmul.f32 %v5012_v34, %v5437_v3  ;;  %v1799_v13 = vmul.f32 %v5012_v34, %v1693_v43 }
 0x265   : > { %7424 = vst [vmem:[#allocation21_spill] sm:$0xff] %v5451_v9  ;;  %7425 = vst [vmem:[#allocation22_spill] sm:$0xff] %v5455_v46  ;;  %v5468_v55 = vmul.f32 %v5022_v41, %v5437_v3  ;;  %v2044_v56 = vmul.f32 %v5022_v41, %v1693_v43  ;;  %v5472_v6 = vmul.f32 %v5054_v58, %v1693_v43  ;;  %v1585_v10 = vrot.slane %v5308_v52, 7 }
 0x266   : > { %7426 = vst [vmem:[#allocation23_spill] sm:$0xff] %v5462_v45  ;;  %v5474_v51 = vadd.f32 %v3240_v50, %v3103_v44  ;;  %v7302_v61 = vrot.slane %v5462_v45, 1  ;;  %v1909_v28 = vrot.slane %v1799_v13, 1  ;;  %v5478_v27 = vmul.f32 %v5056_v11, %v1693_v43 }
 0x267   : > { %7427 = vst [vmem:[#allocation24_spill] sm:$0xff] %v5468_v55  ;;  %7428 = vst [vmem:[#allocation25_spill] sm:$0xff] %v5472_v6  ;;  %v7303_v4 = vrot.slane %v5468_v55, 2  ;;  %v2154_v53 = vrot.slane %v2044_v56, 2  ;;  %v5483_v14 = vmul.f32 %v5058_v33, %v1693_v43  ;;  %v5492_v44 = vmul.f32 %v5063_v21, %v1693_v43 }
 0x268   : > { %7429 = vst [vmem:[#allocation26_spill] sm:$0xff] %v5474_v51  ;;  %7430 = vst [vmem:[#allocation27_spill] sm:$0xff] %v5478_v27  ;;  %3445 = vrot.lane.b32.xlu1 %v5474_v51, %s4336_s25  ;;  %v1910_v50 = vsel %vm1875_vm2, %v7302_v61, %v1909_v28  ;;  %v7432_v51 = vrot.slane %v5121_v30, 1  ;;  %v7433_v45 = vrot.slane %v5364_v31, 1  ;;  %v5506_v43 = vsel %vm1569_vm1, %v1584_v39, %v1585_v10 }
 0x269   : > { %7431 = vst [vmem:[#allocation28_spill] sm:$0xff] %v5492_v44  ;;  %v2001_v46 = vadd.f32 %v1910_v50, %v1724_v32  ;;  %v2155_v56 = vsel %vm2120_vm3, %v7303_v4, %v2154_v53  ;;  %v1692_v52 = vsel %vm1569_vm1, %v1585_v10, 0.0  ;;  %v5515_v30 = vmul.f32 %v5012_v34, %v5506_v43 }
 0x26a   : > { %v2442_v28 = vsel %vm1875_vm2, %v7433_v45, %v7432_v51  ;;  %v1796_v31 = vmul.f32 %v5012_v34, %v1692_v52  ;;  %v1722_v45 = vmul.f32 %v5030_v54, %v5506_v43  ;;  %v5522_v39 = vmul.f32 %v5022_v41, %v5506_v43 }
 0x26b   : > { %v2548_v32 = vadd.f32 %v2442_v28, %v5208_v16  ;;  %v5510_v50 = vadd.f32 %v2155_v56, %v2001_v46  ;;  %v2041_v10 = vmul.f32 %v5022_v41, %v1692_v52  ;;  %v5526_v16 = vmul.f32 %v5054_v58, %v1692_v52 }
 0x26c   : > { %v7308_v46 = vrot.slane %v5515_v30, 1  ;;  %v1904_v51 = vrot.slane %v1796_v31, 1  ;;  %v5530_v56 = vmul.f32 %v5058_v33, %v1692_v52  ;;  %v5533_v28 = vmul.f32 %v5063_v21, %v1692_v52 }
 0x26d   : > { %7434 = vst [vmem:[#allocation29_spill] sm:$0xff] %v5510_v50  ;;  %v2149_v13 = vrot.slane %v2041_v10, 2  ;;  %v5540_v61 = vmul.f32 %v5056_v11, %v1692_v52  ;;  %v7438_v9 = vrot.slane %v5370_v12, 2  ;;  %v7439_v6 = vrot.slane %v5522_v39, 2 }
 0x26e   : > { %v1905_v31 = vsel %vm1875_vm2, %v7308_v46, %v1904_v51  ;;  %v3007_v55 = vrot.slane %v5530_v56, 1  ;;  %v2828_v51 = vmul.f32 %v5076_v0, %v5278_v35  ;;  %v7440_v27 = vrot.slane %v5316_v47, 1 }
 0x26f   : > { %v1999_v52 = vadd.f32 %v1905_v31, %v1722_v45  ;;  %v7446_v31 = vrot.slane %v5117_v7, 2  ;;  %v7447_v47 = vrot.slane %v5073_v19, 2  ;;  %v2587_v7 = vmul.f32 %v5056_v11, %v5221_v26 }
 0x270   : > { %v2588_v19 = vmul.f32 %v5056_v11, %v5278_v35  ;;  %v1590_v56 = vrot.slane %v5407_v8, 7 }
 0x271   : > { %v5535_v4 = vpop.f32.mrb[16].mxu0 }
 0x272   : > { %7435 = vst [vmem:[#allocation30_spill] sm:$0xff] %v5535_v4  ;;  %v5542_v50 = vpop.f32.mrb[17].mxu0  ;;  %v7437_v4 = vrot.slane %v5124_v60, 2  ;;  %v7441_v60 = vrot.slane %v5384_v25, 1  ;;  %v2133_v25 = vsel %vm2120_vm3, %v7447_v47, %v7446_v31  ;;  %v3143_v47 = vmul.f32 %v5063_v21, %v5199_v24 }
 0x273   : > { %7436 = vst [vmem:[#allocation31_spill] sm:$0xff] %v5542_v50  ;;  %v5554_v53 = vpop.f32.mrb[18].mxu0  ;;  %v2150_v50 = vsel %vm2120_vm3, %v7439_v6, %v2149_v13  ;;  %v7444_v6 = vrot.slane %v5112_v40, 1  ;;  %v7445_v13 = vrot.slane %v5069_v18, 1  ;;  %v2343_v40 = vmul.f32 %v5054_v58, %v5221_v26 }
 0x274   : > { %v2686_v10 = vsel %vm2120_vm3, %v7438_v9, %v7437_v4  ;;  %v5561_v46 = vpop.f32.mrb[19].mxu0  ;;  %v2998_v12 = vsel %vm1875_vm2, %v7441_v60, %v7440_v27  ;;  %v7442_v4 = vrot.slane %v5323_v23, 2  ;;  %v7443_v9 = vrot.slane %v5395_v15, 2 }
 0x275   : > { %v2792_v44 = vadd.f32 %v2686_v10, %v2548_v32  ;;  %v1888_v32 = vsel %vm1875_vm2, %v7445_v13, %v7444_v6  ;;  %v5583_v10 = vadd.f32 %v2150_v50, %v1999_v52  ;;  %v2273_v15 = vmul.f32 %v5052_v49, %v5221_v26 }
 0x276   : > { %v3242_v45 = vsel %vm2120_vm3, %v7443_v9, %v7442_v4  ;;  %v1992_v23 = vadd.f32 %v1888_v32, %v5080_v63  ;;  %v2344_v18 = vmul.f32 %v5054_v58, %v5278_v35  ;;  %v2829_v63 = vmul.f32 %v5076_v0, %v5199_v24 }
 0x277   : > { %v2860_v27 = vadd.f32 %v2828_v51, %v2792_v44  ;;  %v2899_v44 = vmul.f32 %v5058_v33, %v5199_v24  ;;  %v2443_v51 = vrot.slane %v2343_v40, 1  ;;  %v2687_v4 = vrot.slane %v2587_v7, 2 }
 0x278   : > { %v2237_v52 = vadd.f32 %v2133_v25, %v1992_v23  ;;  %v2444_v60 = vrot.slane %v2344_v18, 1  ;;  %v2688_v9 = vrot.slane %v2588_v19, 2  ;;  %v2900_v26 = vmul.f32 %v5058_v33, %v5224_v57 }
 0x279   : > { %v3104_v50 = vadd.f32 %v2998_v12, %v2860_v27  ;;  %v2999_v32 = vrot.slane %v2899_v44, 1  ;;  %v3144_v25 = vmul.f32 %v5063_v21, %v5224_v57  ;;  %v2274_v23 = vmul.f32 %v5052_v49, %v5278_v35 }
 0x27a   : > { %v2305_v13 = vadd.f32 %v2273_v15, %v2237_v52  ;;  %v2445_v12 = vsel %vm1875_vm2, %v2443_v51, %v2444_v60  ;;  %v2689_v31 = vsel %vm2120_vm3, %v2687_v4, %v2688_v9  ;;  %v3000_v27 = vrot.slane %v2900_v26, 1  ;;  %v7454_v26 = vld [vmem:[#allocation9_spill] sm:$0xff] }
 0x27b   : > { %v5600_v6 = vadd.f32 %v3242_v45, %v3104_v50  ;;  %v7449_v15 = vrot.slane %v5306_v37, 1  ;;  %v3243_v18 = vrot.slane %v3143_v47, 2  ;;  %v3244_v7 = vrot.slane %v3144_v25, 2  ;;  %v7457_v47 = vld [vmem:[#allocation10_spill] sm:$0xff] }
 0x27c   : > { %v2549_v45 = vadd.f32 %v2445_v12, %v2305_v13  ;;  %v7450_v19 = vrot.slane %v5313_v36, 2  ;;  %v2830_v52 = vmul.f32 %v5076_v0, %v5224_v57  ;;  %v3001_v51 = vsel %vm1875_vm2, %v2999_v32, %v3000_v27 }
 0x27d   : > { %7448 = vst [vmem:[#allocation32_spill] sm:$0xff] %v5600_v6  ;;  %3447 = vrot.lane.b32.xlu1 %v5600_v6, %s4336_s25  ;;  %v2447_v40 = vsel %vm1875_vm2, %v2444_v60, %v7449_v15  ;;  %v2306_v4 = vadd.f32 %v2274_v23, %v5166_v20  ;;  %v7451_v35 = vrot.slane %v5267_v59, 1  ;;  %v3245_v60 = vsel %vm2120_vm3, %v3243_v18, %v3244_v7 }
 0x27e   : > { %v2691_v50 = vsel %vm2120_vm3, %v2688_v9, %v7450_v19  ;;  %v2793_v44 = vadd.f32 %v2689_v31, %v2549_v45  ;;  %v7452_v13 = vrot.slane %v5270_v17, 2  ;;  %v7453_v9 = vrot.slane %v5293_v29, 1 }
 0x27f   : > { %v3003_v37 = vsel %vm1875_vm2, %v3000_v27, %v7451_v35  ;;  %v7455_v12 = vrot.slane %v7454_v26, 1  ;;  %v7456_v32 = vrot.slane %v5297_v62, 2  ;;  %v7458_v20 = vrot.slane %v7457_v47, 2  ;;  %v7459_v27 = vld [vmem:[#allocation8_spill] sm:$0xff] }
 0x280   : > { %v3247_v36 = vsel %vm2120_vm3, %v3244_v7, %v7452_v13  ;;  %v2861_v25 = vadd.f32 %v2829_v63, %v2793_v44  ;;  %v2550_v45 = vadd.f32 %v2447_v40, %v2306_v4  ;;  %v2275_v17 = vmul.f32 %v5052_v49, %v5199_v24 }
 0x281   : > { %v1893_v31 = vsel %vm1875_vm2, %v7455_v12, %v7453_v9  ;;  %v2138_v59 = vsel %vm2120_vm3, %v7458_v20, %v7456_v32  ;;  %v2346_v29 = vmul.f32 %v5054_v58, %v5199_v24  ;;  %v2347_v15 = vmul.f32 %v5054_v58, %v5224_v57  ;;  %v5652_v7 = vpop.f32.mrb[20].mxu0 }
 0x282   : > { %v1994_v23 = vadd.f32 %v1893_v31, %v7459_v27  ;;  %v2590_v62 = vmul.f32 %v5056_v11, %v5199_v24  ;;  %v2591_v18 = vmul.f32 %v5056_v11, %v5224_v57  ;;  %v3105_v63 = vadd.f32 %v3001_v51, %v2861_v25  ;;  %v5656_v4 = vpop.f32.mrb[21].mxu0 }
 0x283   : > { %v2794_v40 = vadd.f32 %v2691_v50, %v2550_v45  ;;  %v2831_v44 = vmul.f32 %v5076_v0, %v5434_v48  ;;  %v2448_v35 = vrot.slane %v2346_v29, 1  ;;  %v2449_v13 = vrot.slane %v2347_v15, 1  ;;  %v5658_v12 = vpop.f32.mrb[22].mxu0  ;;  %v7463_v15 = vld [vmem:[#allocation13_spill] sm:$0xff] }
 0x284   : > { %v2239_v19 = vadd.f32 %v2138_v59, %v1994_v23  ;;  %v2692_v9 = vrot.slane %v2590_v62, 2  ;;  %v2693_v26 = vrot.slane %v2591_v18, 2  ;;  %7460 = vst [vmem:[#allocation9_spill] sm:$0xff] %v5658_v12  ;;  %v5660_v24 = vadd.f32 %v3245_v60, %v3105_v63  ;;  %v5664_v50 = vpop.f32.mrb[23].mxu0 }
 0x285   : > { %v2862_v31 = vadd.f32 %v2830_v52, %v2794_v40  ;;  %v2902_v51 = vmul.f32 %v5058_v33, %v5434_v48  ;;  %7462 = vst [vmem:[#allocation8_spill] sm:$0xff] %v5664_v50  ;;  %v2450_v47 = vsel %vm1875_vm2, %v2448_v35, %v2449_v13  ;;  %v2903_v59 = vmul.f32 %v5058_v33, %v5506_v43  ;;  %v7466_v35 = vld [vmem:[#allocation14_spill] sm:$0xff] }
 0x286   : > { %7461 = vst [vmem:[#allocation10_spill] sm:$0xff] %v5660_v24  ;;  %v2307_v32 = vadd.f32 %v2275_v17, %v2239_v19  ;;  %v2694_v20 = vsel %vm2120_vm3, %v2692_v9, %v2693_v26  ;;  %v3146_v25 = vmul.f32 %v5063_v21, %v5434_v48  ;;  %3449 = vrot.lane.b32.xlu0 %v5660_v24, %s4336_s25  ;;  %v7464_v62 = vrot.slane %v7463_v15, 1 }
 0x287   : > { %v3106_v52 = vadd.f32 %v3003_v37, %v2862_v31  ;;  %v3004_v45 = vrot.slane %v2902_v51, 1  ;;  %v3147_v27 = vmul.f32 %v5063_v21, %v5506_v43  ;;  %v3005_v23 = vrot.slane %v2903_v59, 1 }
 0x288   : > { %v2551_v60 = vadd.f32 %v2450_v47, %v2307_v32  ;;  %v3248_v17 = vrot.slane %v3146_v25, 2  ;;  %v2276_v29 = vmul.f32 %v5052_v49, %v5224_v57  ;;  %v2452_v18 = vsel %vm1875_vm2, %v2449_v13, %v7464_v62 }
 0x289   : > { %v5681_v63 = vadd.f32 %v3247_v36, %v3106_v52  ;;  %v3249_v19 = vrot.slane %v3147_v27, 2  ;;  %v7467_v37 = vrot.slane %v7466_v35, 2  ;;  %v3006_v32 = vsel %vm1875_vm2, %v3004_v45, %v3005_v23  ;;  %v7471_v45 = vld [vmem:[#allocation5_spill] sm:$0xff] }
 0x28a   : > { %v2795_v40 = vadd.f32 %v2694_v20, %v2551_v60  ;;  %v2308_v51 = vadd.f32 %v2276_v29, %v5348_v5  ;;  %v3008_v57 = vsel %vm1875_vm2, %v3005_v23, %v3007_v55  ;;  %v7468_v47 = vrot.slane %v5533_v28, 2 }
 0x28b   : > { %7465 = vst [vmem:[#allocation13_spill] sm:$0xff] %v5681_v63  ;;  %v2696_v9 = vsel %vm2120_vm3, %v2693_v26, %v7467_v37  ;;  %3451 = vrot.lane.b32.xlu1 %v5681_v63, %s4336_s25  ;;  %v3250_v13 = vsel %vm2120_vm3, %v3248_v17, %v3249_v19  ;;  %v1593_v20 = vrot.slane %v5398_v22, 7  ;;  %v2832_v5 = vmul.f32 %v5076_v0, %v5506_v43  ;;  %v7473_v22 = vld [vmem:[#allocation12_spill] sm:$0xff]  ;;  %v7475_v17 = vld [vmem:[#allocation6_spill] sm:$0xff] }
 0x28c   : > { %v2863_v36 = vadd.f32 %v2831_v44, %v2795_v40  ;;  %v3252_v26 = vsel %vm2120_vm3, %v3249_v19, %v7468_v47  ;;  %v2552_v59 = vadd.f32 %v2452_v18, %v2308_v51  ;;  %v1594_v55 = vrot.slane %v5414_v42, 7  ;;  %v7469_v44 = vld [vmem:[#allocation11_spill] sm:$0xff] }
 0x28d   : > { %v5704_v52 = vsel %vm1569_vm1, 0.0, %v1593_v20  ;;  %v7470_v60 = vrot.slane %v7469_v44, 1  ;;  %v7472_v28 = vrot.slane %v7471_v45, 1  ;;  %v7474_v23 = vrot.slane %v7473_v22, 2 }
 0x28e   : > { %v3107_v25 = vadd.f32 %v3006_v32, %v2863_v36  ;;  %v7476_v29 = vrot.slane %v7475_v17, 2  ;;  %v2796_v8 = vadd.f32 %v2696_v9, %v2552_v59  ;;  %v5722_v42 = vmul.f32 %v5012_v34, %v5704_v52 }
 0x28f   : > { %v5711_v27 = vsel %vm1875_vm2, %v7472_v28, %v7470_v60  ;;  %v5726_v62 = vmul.f32 %v5022_v41, %v5704_v52  ;;  %v1591_v18 = vrot.slane %v5424_v2, 7  ;;  %v5732_v19 = vsel %vm1569_vm1, 0.0, %v1590_v56 }
 0x290   : > { %v5718_v15 = vsel %vm2120_vm3, %v7476_v29, %v7474_v23  ;;  %7477 = vst [vmem:[#allocation14_spill] sm:$0xff] %v5722_v42  ;;  %v5729_v40 = vadd.f32 %v3250_v13, %v3107_v25  ;;  %v5735_v35 = vsel %vm1569_vm1, %v1593_v20, %v1594_v55  ;;  %v1695_v37 = vsel %vm1569_vm1, %v1594_v55, 0.0 }
 0x291   : > { %7478 = vst [vmem:[#allocation11_spill] sm:$0xff] %v5726_v62  ;;  %v2864_v9 = vadd.f32 %v2832_v5, %v2796_v8  ;;  %v5740_v32 = vmul.f32 %v5030_v54, %v5704_v52  ;;  %v5748_v2 = vmul.f32 %v5030_v54, %v5732_v19  ;;  %v5752_v13 = vmul.f32 %v5012_v34, %v5732_v19  ;;  %v5768_v44 = vpop.f32.mrb[24].mxu0 }
 0x292   : > { %7479 = vst [vmem:[#allocation5_spill] sm:$0xff] %v5729_v40  ;;  %3453 = vrot.lane.b32.xlu0 %v5729_v40, %s4336_s25  ;;  %v5756_v47 = vmul.f32 %v5022_v41, %v5732_v19  ;;  %v5760_v20 = vmul.f32 %v5012_v34, %v5735_v35  ;;  %v1805_v5 = vmul.f32 %v5012_v34, %v1695_v37  ;;  %7483 = vst [vmem:[#allocation34_spill] sm:$0xff] %v5768_v44 }
 0x293   : > { %7480 = vst [vmem:[#allocation12_spill] sm:$0xff] %v5740_v32  ;;  %v3108_v59 = vadd.f32 %v3008_v57, %v2864_v9  ;;  %v5765_v55 = vmul.f32 %v5022_v41, %v5735_v35  ;;  %v2050_v25 = vmul.f32 %v5022_v41, %v1695_v37  ;;  %v1728_v45 = vmul.f32 %v5030_v54, %v5735_v35  ;;  %v5777_v57 = vpop.f32.mrb[25].mxu0 }
 0x294   : > { %7481 = vst [vmem:[#allocation6_spill] sm:$0xff] %v5760_v20  ;;  %v5775_v22 = vmul.f32 %v5054_v58, %v1695_v37  ;;  %7484 = vst [vmem:[#allocation35_spill] sm:$0xff] %v5777_v57  ;;  %v1919_v17 = vrot.slane %v1805_v5, 1  ;;  %v5782_v9 = vpop.f32.mrb[26].mxu0  ;;  %v5786_v51 = vmul.f32 %v5056_v11, %v1695_v37  ;;  %v5789_v60 = vmul.f32 %v5058_v33, %v1695_v37 }
 0x295   : > { %7482 = vst [vmem:[#allocation33_spill] sm:$0xff] %v5765_v55  ;;  %v5779_v23 = vadd.f32 %v3252_v26, %v3108_v59  ;;  %v7313_v29 = vrot.slane %v5765_v55, 2  ;;  %v2164_v8 = vrot.slane %v2050_v25, 2  ;;  %7486 = vst [vmem:[#allocation37_spill] sm:$0xff] %v5782_v9  ;;  %v5792_v31 = vmul.f32 %v5063_v21, %v1695_v37  ;;  %v5794_v28 = vpop.f32.mrb[27].mxu0  ;;  %v7490_v9 = vld [vmem:[#allocation7_spill] sm:$0xff] }
 0x296   : > { %7487 = vst [vmem:[#allocation38_spill] sm:$0xff] %v5794_v28  ;;  %v7488_v26 = vrot.slane %v5760_v20, 1  ;;  %v5805_v25 = vsel %vm1569_vm1, %v1590_v56, %v1591_v18  ;;  %v1694_v36 = vsel %vm1569_vm1, %v1591_v18, 0.0  ;;  %v1996_v40 = vadd.f32 %v5711_v27, %v7490_v9  ;;  %v7493_v55 = vld [vmem:[#allocation15_spill] sm:$0xff] }
 0x297   : > { %7485 = vst [vmem:[#allocation36_spill] sm:$0xff] %v5779_v23  ;;  %3455 = vrot.lane.b32.xlu1 %v5779_v23, %s4336_s25  ;;  %v2165_v5 = vsel %vm2120_vm3, %v7313_v29, %v2164_v8  ;;  %v1802_v8 = vmul.f32 %v5012_v34, %v1694_v36  ;;  %v5819_v56 = vmul.f32 %v5022_v41, %v5805_v25  ;;  %v7494_v20 = vrot.slane %v5540_v61, 2 }
 0x298   : > { %v1920_v59 = vsel %vm1875_vm2, %v7488_v26, %v1919_v17  ;;  %v5814_v17 = vmul.f32 %v5012_v34, %v5805_v25  ;;  %v2047_v26 = vmul.f32 %v5022_v41, %v1694_v36  ;;  %v5832_v63 = vmul.f32 %v5058_v33, %v1694_v36 }
 0x299   : > { %v2005_v37 = vadd.f32 %v1920_v59, %v1728_v45  ;;  %v1726_v45 = vmul.f32 %v5030_v54, %v5805_v25  ;;  %v5827_v59 = vmul.f32 %v5054_v58, %v1694_v36  ;;  %v1914_v24 = vrot.slane %v1802_v8, 1 }
 0x29a   : > { %v7315_v29 = vrot.slane %v5814_v17, 1  ;;  %v2159_v23 = vrot.slane %v2047_v26, 2  ;;  %v5839_v6 = vmul.f32 %v5063_v21, %v1694_v36  ;;  %v2277_v26 = vmul.f32 %v5052_v49, %v5434_v48 }
 0x29b   : > { %v5821_v18 = vadd.f32 %v2165_v5, %v2005_v37  ;;  %v5836_v37 = vmul.f32 %v5056_v11, %v1694_v36  ;;  %v7491_v5 = vrot.slane %v5819_v56, 2  ;;  %v2593_v27 = vmul.f32 %v5056_v11, %v5434_v48 }
 0x29c   : > { %v1915_v28 = vsel %vm1875_vm2, %v7315_v29, %v1914_v24  ;;  %v2241_v24 = vadd.f32 %v5718_v15, %v1996_v40  ;;  %v2350_v29 = vmul.f32 %v5054_v58, %v5506_v43  ;;  %v2906_v32 = vmul.f32 %v5058_v33, %v5437_v3 }
 0x29d   : > { %7489 = vst [vmem:[#allocation39_spill] sm:$0xff] %v5821_v18  ;;  %v2003_v57 = vadd.f32 %v1915_v28, %v1726_v45  ;;  %v2160_v44 = vsel %vm2120_vm3, %v7491_v5, %v2159_v23  ;;  %v2349_v18 = vmul.f32 %v5054_v58, %v5434_v48  ;;  %v2594_v28 = vmul.f32 %v5056_v11, %v5506_v43 }
 0x29e   : > { %v2833_v23 = vmul.f32 %v5076_v0, %v5411_v38  ;;  %v2905_v5 = vmul.f32 %v5058_v33, %v5411_v38  ;;  %v2309_v36 = vadd.f32 %v2277_v26, %v2241_v24  ;;  %v2454_v15 = vrot.slane %v2350_v29, 1 }
 0x29f   : > { %v5862_v9 = vadd.f32 %v2160_v44, %v2003_v57  ;;  %v2453_v45 = vrot.slane %v2349_v18, 1  ;;  %v2697_v40 = vrot.slane %v2593_v27, 2  ;;  %v2698_v8 = vrot.slane %v2594_v28, 2 }
 0x2a0   : > { %v3009_v48 = vrot.slane %v2905_v5, 1  ;;  %v3149_v50 = vmul.f32 %v5063_v21, %v5411_v38  ;;  %v3150_v44 = vmul.f32 %v5063_v21, %v5437_v3  ;;  %v2278_v26 = vmul.f32 %v5052_v49, %v5506_v43 }
 0x2a1   : > { %v2455_v57 = vsel %vm1875_vm2, %v2453_v45, %v2454_v15  ;;  %v2699_v18 = vsel %vm2120_vm3, %v2697_v40, %v2698_v8  ;;  %v7492_v29 = vrot.slane %v5526_v16, 1  ;;  %v3010_v28 = vrot.slane %v2906_v32, 1 }
 0x2a2   : > { %v2553_v27 = vadd.f32 %v2455_v57, %v2309_v36  ;;  %v3253_v5 = vrot.slane %v3149_v50, 2  ;;  %v3254_v62 = vrot.slane %v3150_v44, 2  ;;  %v2310_v42 = vadd.f32 %v2278_v26, %v7493_v55  ;;  %v7500_v57 = vld [vmem:[#allocation21_spill] sm:$0xff]  ;;  %v7502_v26 = vld [vmem:[#allocation22_spill] sm:$0xff] }
 0x2a3   : > { %v2457_v24 = vsel %vm1875_vm2, %v2454_v15, %v7492_v29  ;;  %v2701_v12 = vsel %vm2120_vm3, %v2698_v8, %v7494_v20  ;;  %v2834_v45 = vmul.f32 %v5076_v0, %v5437_v3  ;;  %v7495_v40 = vrot.slane %v5515_v30, 1  ;;  %v7498_v20 = vld [vmem:[#allocation28_spill] sm:$0xff] }
 0x2a4   : > { %v7496_v43 = vrot.slane %v5446_v1, 1  ;;  %v2797_v15 = vadd.f32 %v2699_v18, %v2553_v27  ;;  %v3011_v32 = vsel %vm1875_vm2, %v3009_v48, %v3010_v28  ;;  %v3255_v50 = vsel %vm2120_vm3, %v3253_v5, %v3254_v62 }
 0x2a5   : > { %v7497_v55 = vrot.slane %v5483_v14, 1  ;;  %v2554_v36 = vadd.f32 %v2457_v24, %v2310_v42  ;;  %v7499_v8 = vrot.slane %v7498_v20, 2  ;;  %v7501_v1 = vrot.slane %v5522_v39, 2 }
 0x2a6   : > { %v1903_v16 = vsel %vm1875_vm2, %v7496_v43, %v7495_v40  ;;  %v7503_v29 = vrot.slane %v7502_v26, 2  ;;  %v2865_v48 = vadd.f32 %v2833_v23, %v2797_v15  ;;  %v2279_v27 = vmul.f32 %v5052_v49, %v5411_v38 }
 0x2a7   : > { %v3013_v61 = vsel %vm1875_vm2, %v3010_v28, %v7497_v55  ;;  %v3257_v44 = vsel %vm2120_vm3, %v3254_v62, %v7499_v8  ;;  %v1998_v30 = vadd.f32 %v1903_v16, %v7500_v57  ;;  %v2352_v14 = vmul.f32 %v5054_v58, %v5411_v38 }
 0x2a8   : > { %v2148_v18 = vsel %vm2120_vm3, %v7503_v29, %v7501_v1  ;;  %v2353_v42 = vmul.f32 %v5054_v58, %v5437_v3  ;;  %v2798_v24 = vadd.f32 %v2701_v12, %v2554_v36  ;;  %v2596_v28 = vmul.f32 %v5056_v11, %v5411_v38  ;;  %v5928_v1 = vpop.f32.mrb[28].mxu0 }
 0x2a9   : > { %v2243_v62 = vadd.f32 %v2148_v18, %v1998_v30  ;;  %v2597_v39 = vmul.f32 %v5056_v11, %v5437_v3  ;;  %v3109_v5 = vadd.f32 %v3011_v32, %v2865_v48  ;;  %v2458_v40 = vrot.slane %v2352_v14, 1  ;;  %7505 = vst [vmem:[#allocation15_spill] sm:$0xff] %v5928_v1  ;;  %v7533_v1 = vld [vmem:[#allocation24_spill] sm:$0xff] }
 0x2aa   : > { %v2459_v23 = vrot.slane %v2353_v42, 1  ;;  %v2835_v43 = vmul.f32 %v5076_v0, %v5732_v19  ;;  %v2866_v16 = vadd.f32 %v2834_v45, %v2798_v24  ;;  %v2702_v55 = vrot.slane %v2596_v28, 2  ;;  %v7508_v42 = vld [vmem:[#allocation25_spill] sm:$0xff] }
 0x2ab   : > { %v2311_v15 = vadd.f32 %v2279_v27, %v2243_v62  ;;  %v2703_v20 = vrot.slane %v2597_v39, 2  ;;  %v5918_v8 = vadd.f32 %v3255_v50, %v3109_v5  ;;  %v2908_v38 = vmul.f32 %v5058_v33, %v5732_v19 }
 0x2ac   : > { %v2460_v12 = vsel %vm1875_vm2, %v2458_v40, %v2459_v23  ;;  %v2909_v36 = vmul.f32 %v5058_v33, %v5805_v25  ;;  %v3110_v32 = vadd.f32 %v3013_v61, %v2866_v16  ;;  %v3152_v45 = vmul.f32 %v5063_v21, %v5732_v19  ;;  %v5936_v61 = vpop.f32.mrb[29].mxu0  ;;  %v7511_v16 = vld [vmem:[#allocation27_spill] sm:$0xff] }
 0x2ad   : > { %7504 = vst [vmem:[#allocation7_spill] sm:$0xff] %v5918_v8  ;;  %v2555_v57 = vadd.f32 %v2460_v12, %v2311_v15  ;;  %v2704_v30 = vsel %vm2120_vm3, %v2702_v55, %v2703_v20  ;;  %3457 = vrot.lane.b32.xlu0 %v5918_v8, %s4336_s25  ;;  %v3014_v50 = vrot.slane %v2908_v38, 1  ;;  %v3153_v29 = vmul.f32 %v5063_v21, %v5805_v25  ;;  %v5943_v28 = vpop.f32.mrb[30].mxu0 }
 0x2ae   : > { %v3015_v26 = vrot.slane %v2909_v36, 1  ;;  %v2280_v18 = vmul.f32 %v5052_v49, %v5437_v3  ;;  %7506 = vst [vmem:[#allocation28_spill] sm:$0xff] %v5936_v61  ;;  %v5938_v48 = vadd.f32 %v3257_v44, %v3110_v32  ;;  %v3258_v14 = vrot.slane %v3152_v45, 2  ;;  %7510 = vst [vmem:[#allocation22_spill] sm:$0xff] %v5943_v28  ;;  %v5950_v55 = vpop.f32.mrb[31].mxu0  ;;  %v7515_v36 = vld [vmem:[#allocation30_spill] sm:$0xff] }
 0x2af   : > { %v2799_v27 = vadd.f32 %v2704_v30, %v2555_v57  ;;  %v7509_v24 = vrot.slane %v7508_v42, 1  ;;  %v3259_v5 = vrot.slane %v3153_v29, 2  ;;  %v7512_v15 = vrot.slane %v7511_v16, 2  ;;  %7513 = vst [vmem:[#allocation25_spill] sm:$0xff] %v5950_v55  ;;  %v7517_v45 = vld [vmem:[#allocation31_spill] sm:$0xff]  ;;  %v7531_v28 = vld [vmem:[#allocation18_spill] sm:$0xff] }
 0x2b0   : > { %7507 = vst [vmem:[#allocation21_spill] sm:$0xff] %v5938_v48  ;;  %v3016_v39 = vsel %vm1875_vm2, %v3014_v50, %v3015_v26  ;;  %v2312_v40 = vadd.f32 %v2280_v18, %v5583_v10  ;;  %3459 = vrot.lane.b32.xlu1 %v5938_v48, %s4336_s25  ;;  %v7514_v12 = vrot.slane %v5832_v63, 1  ;;  %v1599_v32 = vrot.slane %v7515_v36, 7  ;;  %v7529_v55 = vld [vmem:[#allocation23_spill] sm:$0xff] }
 0x2b1   : > { %v2462_v62 = vsel %vm1875_vm2, %v2459_v23, %v7509_v24  ;;  %v2706_v3 = vsel %vm2120_vm3, %v2703_v20, %v7512_v15  ;;  %v2867_v44 = vadd.f32 %v2835_v43, %v2799_v27  ;;  %v2836_v23 = vmul.f32 %v5076_v0, %v5805_v25 }
 0x2b2   : > { %v3018_v38 = vsel %vm1875_vm2, %v3015_v26, %v7514_v12  ;;  %v3260_v10 = vsel %vm2120_vm3, %v3258_v14, %v3259_v5  ;;  %v2556_v57 = vadd.f32 %v2462_v62, %v2312_v40  ;;  %v7516_v20 = vrot.slane %v5839_v6, 2 }
 0x2b3   : > { %v1596_v50 = vrot.slane %v7517_v45, 7  ;;  %v3111_v29 = vadd.f32 %v3016_v39, %v2867_v44  ;;  %v5967_v18 = vsel %vm1569_vm1, 0.0, %v1599_v32  ;;  %v1600_v63 = vrot.slane %v5554_v53, 7 }
 0x2b4   : > { %v3262_v30 = vsel %vm2120_vm3, %v3259_v5, %v7516_v20  ;;  %v2800_v26 = vadd.f32 %v2706_v3, %v2556_v57  ;;  %v5972_v27 = vmul.f32 %v5012_v34, %v5967_v18  ;;  %v5976_v6 = vmul.f32 %v5022_v41, %v5967_v18 }
 0x2b5   : > { %v1597_v14 = vrot.slane %v5561_v46, 7  ;;  %v5979_v42 = vadd.f32 %v3260_v10, %v3111_v29  ;;  %v5982_v24 = vsel %vm1569_vm1, 0.0, %v1596_v50  ;;  %v5985_v62 = vsel %vm1569_vm1, %v1599_v32, %v1600_v63 }
 0x2b6   : > { %7518 = vst [vmem:[#allocation27_spill] sm:$0xff] %v5972_v27  ;;  %7519 = vst [vmem:[#allocation30_spill] sm:$0xff] %v5976_v6  ;;  %v1697_v53 = vsel %vm1569_vm1, %v1600_v63, 0.0  ;;  %v2868_v39 = vadd.f32 %v2836_v23, %v2800_v26  ;;  %v5990_v5 = vmul.f32 %v5030_v54, %v5967_v18  ;;  %v5998_v46 = vmul.f32 %v5030_v54, %v5982_v24 }
 0x2b7   : > { %7520 = vst [vmem:[#allocation31_spill] sm:$0xff] %v5979_v42  ;;  %3461 = vrot.lane.b32.xlu0 %v5979_v42, %s4336_s25  ;;  %v6002_v15 = vmul.f32 %v5012_v34, %v5982_v24  ;;  %v6006_v3 = vmul.f32 %v5022_v41, %v5982_v24  ;;  %v6010_v44 = vmul.f32 %v5012_v34, %v5985_v62  ;;  %v7532_v61 = vrot.slane %v7531_v28, 1 }
 0x2b8   : > { %7521 = vst [vmem:[#allocation40_spill] sm:$0xff] %v5990_v5  ;;  %v3112_v23 = vadd.f32 %v3018_v38, %v2868_v39  ;;  %v1811_v12 = vmul.f32 %v5012_v34, %v1697_v53  ;;  %v6015_v36 = vmul.f32 %v5022_v41, %v5985_v62  ;;  %v2056_v32 = vmul.f32 %v5022_v41, %v1697_v53 }
 0x2b9   : > { %7522 = vst [vmem:[#allocation41_spill] sm:$0xff] %v6006_v3  ;;  %7523 = vst [vmem:[#allocation42_spill] sm:$0xff] %v6010_v44  ;;  %v1732_v57 = vmul.f32 %v5030_v54, %v5985_v62  ;;  %v7323_v20 = vrot.slane %v6010_v44, 1  ;;  %v6023_v45 = vmul.f32 %v5054_v58, %v1697_v53  ;;  %v6030_v16 = vmul.f32 %v5056_v11, %v1697_v53 }
 0x2ba   : > { %7524 = vst [vmem:[#allocation43_spill] sm:$0xff] %v6015_v36  ;;  %v6025_v29 = vadd.f32 %v3262_v30, %v3112_v23  ;;  %v1929_v38 = vrot.slane %v1811_v12, 1  ;;  %v7322_v63 = vrot.slane %v6015_v36, 2  ;;  %v2174_v26 = vrot.slane %v2056_v32, 2 }
 0x2bb   : > { %7525 = vst [vmem:[#allocation44_spill] sm:$0xff] %v6023_v45  ;;  %7527 = vst [vmem:[#allocation46_spill] sm:$0xff] %v6030_v16  ;;  %v6033_v40 = vmul.f32 %v5058_v33, %v1697_v53  ;;  %v6036_v10 = vmul.f32 %v5063_v21, %v1697_v53  ;;  %v6047_v12 = vsel %vm1569_vm1, %v1596_v50, %v1597_v14  ;;  %v1696_v32 = vsel %vm1569_vm1, %v1597_v14, 0.0 }
 0x2bc   : > { %7526 = vst [vmem:[#allocation45_spill] sm:$0xff] %v6025_v29  ;;  %3463 = vrot.lane.b32.xlu1 %v6025_v29, %s4336_s25  ;;  %v1930_v30 = vsel %vm1875_vm2, %v7323_v20, %v1929_v38  ;;  %v2175_v23 = vsel %vm2120_vm3, %v7322_v63, %v2174_v26  ;;  %v6056_v38 = vmul.f32 %v5012_v34, %v6047_v12  ;;  %v7530_v53 = vrot.slane %v7529_v55, 1 }
 0x2bd   : > { %v2009_v39 = vadd.f32 %v1930_v30, %v1732_v57  ;;  %v1808_v26 = vmul.f32 %v5012_v34, %v1696_v32  ;;  %v6061_v50 = vmul.f32 %v5022_v41, %v6047_v12  ;;  %v1730_v57 = vmul.f32 %v5030_v54, %v6047_v12 }
 0x2be   : > { %v2053_v30 = vmul.f32 %v5022_v41, %v1696_v32  ;;  %v6069_v63 = vmul.f32 %v5054_v58, %v1696_v32  ;;  %v7329_v20 = vrot.slane %v6056_v38, 1  ;;  %v6074_v29 = vmul.f32 %v5058_v33, %v1696_v32 }
 0x2bf   : > { %v6063_v14 = vadd.f32 %v2175_v23, %v2009_v39  ;;  %v1924_v43 = vrot.slane %v1808_v26, 1  ;;  %v6078_v23 = vmul.f32 %v5056_v11, %v1696_v32  ;;  %v6081_v8 = vmul.f32 %v5063_v21, %v1696_v32 }
 0x2c0   : > { %v2169_v42 = vrot.slane %v2053_v30, 2  ;;  %v1908_v30 = vsel %vm1875_vm2, %v7532_v61, %v7530_v53  ;;  %v7534_v39 = vrot.slane %v7533_v1, 2  ;;  %v7537_v36 = vrot.slane %v6061_v50, 2 }
 0x2c1   : > { %7528 = vst [vmem:[#allocation47_spill] sm:$0xff] %v6063_v14  ;;  %v1925_v48 = vsel %vm1875_vm2, %v7329_v20, %v1924_v43  ;;  %v7535_v14 = vld [vmem:[#allocation19_spill] sm:$0xff]  ;;  %v7538_v20 = vld [vmem:[#allocation20_spill] sm:$0xff]  ;;  %v2281_v28 = vmul.f32 %v5052_v49, %v5732_v19  ;;  %v2355_v61 = vmul.f32 %v5054_v58, %v5732_v19  ;;  %v2356_v1 = vmul.f32 %v5054_v58, %v5805_v25  ;;  %v7540_v43 = vld [vmem:[#allocation29_spill] sm:$0xff] }
 0x2c2   : > { %v7536_v5 = vrot.slane %v7535_v14, 2  ;;  %v2007_v32 = vadd.f32 %v1925_v48, %v1730_v57  ;;  %v2170_v27 = vsel %vm2120_vm3, %v7537_v36, %v2169_v42  ;;  %v2000_v26 = vadd.f32 %v1908_v30, %v7538_v20 }
 0x2c3   : > { %v2599_v48 = vmul.f32 %v5056_v11, %v5732_v19  ;;  %v2600_v42 = vmul.f32 %v5056_v11, %v5805_v25  ;;  %v2837_v36 = vmul.f32 %v5076_v0, %v5704_v52  ;;  %v2463_v20 = vrot.slane %v2355_v61, 1 }
 0x2c4   : > { %v2153_v6 = vsel %vm2120_vm3, %v7536_v5, %v7534_v39  ;;  %v6110_v55 = vadd.f32 %v2170_v27, %v2007_v32  ;;  %v2464_v53 = vrot.slane %v2356_v1, 1  ;;  %v2911_v57 = vmul.f32 %v5058_v33, %v5704_v52 }
 0x2c5   : > { %v2245_v5 = vadd.f32 %v2153_v6, %v2000_v26  ;;  %v2707_v14 = vrot.slane %v2599_v48, 2  ;;  %v2708_v30 = vrot.slane %v2600_v42, 2  ;;  %v2912_v19 = vmul.f32 %v5058_v33, %v5735_v35 }
 0x2c6   : > { %7539 = vst [vmem:[#allocation23_spill] sm:$0xff] %v6110_v55  ;;  %v3155_v27 = vmul.f32 %v5063_v21, %v5704_v52  ;;  %v2465_v6 = vsel %vm1875_vm2, %v2463_v20, %v2464_v53  ;;  %v3019_v26 = vrot.slane %v2911_v57, 1  ;;  %v3156_v32 = vmul.f32 %v5063_v21, %v5735_v35 }
 0x2c7   : > { %v2313_v39 = vadd.f32 %v2281_v28, %v2245_v5  ;;  %v2282_v61 = vmul.f32 %v5052_v49, %v5805_v25  ;;  %v2709_v48 = vsel %vm2120_vm3, %v2707_v14, %v2708_v30  ;;  %v3020_v28 = vrot.slane %v2912_v19, 1 }
 0x2c8   : > { %v3263_v5 = vrot.slane %v3155_v27, 2  ;;  %v3264_v42 = vrot.slane %v3156_v32, 2  ;;  %v7541_v16 = vrot.slane %v5827_v59, 1  ;;  %v7542_v20 = vrot.slane %v5836_v37, 2 }
 0x2c9   : > { %v2557_v1 = vadd.f32 %v2465_v6, %v2313_v39  ;;  %v2314_v44 = vadd.f32 %v2282_v61, %v7540_v43  ;;  %v3021_v3 = vsel %vm1875_vm2, %v3019_v26, %v3020_v28  ;;  %v2838_v25 = vmul.f32 %v5076_v0, %v5735_v35 }
 0x2ca   : > { %v2467_v55 = vsel %vm1875_vm2, %v2464_v53, %v7541_v16  ;;  %v2711_v57 = vsel %vm2120_vm3, %v2708_v30, %v7542_v20  ;;  %v7543_v14 = vrot.slane %v5789_v60, 1  ;;  %v3265_v43 = vsel %vm2120_vm3, %v3263_v5, %v3264_v42 }
 0x2cb   : > { %v2801_v45 = vadd.f32 %v2709_v48, %v2557_v1  ;;  %v2558_v19 = vadd.f32 %v2467_v55, %v2314_v44  ;;  %v7544_v59 = vrot.slane %v5792_v31, 2  ;;  %v7545_v37 = vrot.slane %v5814_v17, 1 }
 0x2cc   : > { %v3023_v39 = vsel %vm1875_vm2, %v3020_v28, %v7543_v14  ;;  %v7546_v53 = vrot.slane %v5752_v13, 1  ;;  %v7547_v60 = vrot.slane %v5819_v56, 2  ;;  %v7548_v26 = vrot.slane %v5756_v47, 2 }
 0x2cd   : > { %v3267_v16 = vsel %vm2120_vm3, %v3264_v42, %v7544_v59  ;;  %v2869_v27 = vadd.f32 %v2837_v36, %v2801_v45  ;;  %v2283_v31 = vmul.f32 %v5052_v49, %v5704_v52  ;;  %v2802_v44 = vadd.f32 %v2711_v57, %v2558_v19 }
 0x2ce   : > { %v1913_v30 = vsel %vm1875_vm2, %v7546_v53, %v7545_v37  ;;  %v2158_v32 = vsel %vm2120_vm3, %v7548_v26, %v7547_v60  ;;  %v2358_v17 = vmul.f32 %v5054_v58, %v5704_v52  ;;  %v2359_v13 = vmul.f32 %v5054_v58, %v5735_v35 }
 0x2cf   : > { %v2002_v6 = vadd.f32 %v1913_v30, %v5748_v2  ;;  %v2602_v45 = vmul.f32 %v5056_v11, %v5704_v52  ;;  %v3113_v2 = vadd.f32 %v3021_v3, %v2869_v27  ;;  %v2603_v47 = vmul.f32 %v5056_v11, %v5735_v35 }
 0x2d0   : > { %v2839_v56 = vmul.f32 %v5076_v0, %v5982_v24  ;;  %v2870_v36 = vadd.f32 %v2838_v25, %v2802_v44  ;;  %v2468_v61 = vrot.slane %v2358_v17, 1  ;;  %v2469_v1 = vrot.slane %v2359_v13, 1 }
 0x2d1   : > { %v2247_v55 = vadd.f32 %v2158_v32, %v2002_v6  ;;  %v2712_v48 = vrot.slane %v2602_v45, 2  ;;  %v6168_v28 = vadd.f32 %v3265_v43, %v3113_v2  ;;  %v2713_v42 = vrot.slane %v2603_v47, 2 }
 0x2d2   : > { %v2914_v20 = vmul.f32 %v5058_v33, %v5982_v24  ;;  %v3114_v52 = vadd.f32 %v3023_v39, %v2870_v36  ;;  %v2470_v3 = vsel %vm1875_vm2, %v2468_v61, %v2469_v1  ;;  %v2915_v57 = vmul.f32 %v5058_v33, %v6047_v12 }
 0x2d3   : > { %7549 = vst [vmem:[#allocation18_spill] sm:$0xff] %v6168_v28  ;;  %v2315_v5 = vadd.f32 %v2283_v31, %v2247_v55  ;;  %v3158_v14 = vmul.f32 %v5063_v21, %v5982_v24  ;;  %3465 = vrot.lane.b32.xlu0 %v6168_v28, %s4336_s25  ;;  %v2714_v43 = vsel %vm2120_vm3, %v2712_v48, %v2713_v42  ;;  %v7551_v60 = vrot.slane %v5775_v22, 1 }
 0x2d4   : > { %v3024_v19 = vrot.slane %v2914_v20, 1  ;;  %v3159_v59 = vmul.f32 %v5063_v21, %v6047_v12  ;;  %v6182_v37 = vadd.f32 %v3267_v16, %v3114_v52  ;;  %v3025_v39 = vrot.slane %v2915_v57, 1  ;;  %v7560_v52 = vld [vmem:[#allocation33_spill] sm:$0xff] }
 0x2d5   : > { %v2559_v25 = vadd.f32 %v2470_v3, %v2315_v5  ;;  %v3268_v53 = vrot.slane %v3158_v14, 2  ;;  %v2284_v30 = vmul.f32 %v5052_v49, %v5735_v35  ;;  %v2472_v26 = vsel %vm1875_vm2, %v2469_v1, %v7551_v60  ;;  %v7562_v3 = vld [vmem:[#allocation11_spill] sm:$0xff] }
 0x2d6   : > { %7550 = vst [vmem:[#allocation24_spill] sm:$0xff] %v6182_v37  ;;  %v3269_v6 = vrot.slane %v3159_v59, 2  ;;  %v7552_v32 = vrot.slane %v5786_v51, 2  ;;  %3467 = vrot.lane.b32.xlu1 %v6182_v37, %s4336_s25  ;;  %v3026_v16 = vsel %vm1875_vm2, %v3024_v19, %v3025_v39  ;;  %v7553_v35 = vrot.slane %v6074_v29, 1  ;;  %v7565_v19 = vld [vmem:[#allocation8_spill] sm:$0xff]  ;;  %v7572_v37 = vld [vmem:[#allocation39_spill] sm:$0xff] }
 0x2d7   : > { %v2803_v27 = vadd.f32 %v2714_v43, %v2559_v25  ;;  %v2316_v17 = vadd.f32 %v2284_v30, %v5862_v9  ;;  %v7554_v51 = vrot.slane %v6081_v8, 2  ;;  %v1605_v55 = vrot.slane %v5652_v7, 7  ;;  %v7555_v9 = vld [vmem:[#allocation9_spill] sm:$0xff] }
 0x2d8   : > { %v2716_v31 = vsel %vm2120_vm3, %v2713_v42, %v7552_v32  ;;  %v3028_v13 = vsel %vm1875_vm2, %v3025_v39, %v7553_v35  ;;  %v3270_v45 = vsel %vm2120_vm3, %v3268_v53, %v3269_v6  ;;  %v2840_v36 = vmul.f32 %v5076_v0, %v6047_v12  ;;  %v7558_v42 = vld [vmem:[#allocation14_spill] sm:$0xff] }
 0x2d9   : > { %v2871_v22 = vadd.f32 %v2839_v56, %v2803_v27  ;;  %v3272_v2 = vsel %vm2120_vm3, %v3269_v6, %v7554_v51  ;;  %v2560_v47 = vadd.f32 %v2472_v26, %v2316_v17  ;;  %v1602_v61 = vrot.slane %v5656_v4, 7  ;;  %v7556_v56 = vld [vmem:[#allocation6_spill] sm:$0xff] }
 0x2da   : > { %v1606_v1 = vrot.slane %v7555_v9, 7  ;;  %v6210_v48 = vsel %vm1569_vm1, 0.0, %v1605_v55  ;;  %v7557_v5 = vrot.slane %v7556_v56, 1  ;;  %v7559_v8 = vrot.slane %v7558_v42, 1 }
 0x2db   : > { %v3115_v29 = vadd.f32 %v3026_v16, %v2871_v22  ;;  %v7561_v7 = vrot.slane %v7560_v52, 2  ;;  %v7563_v57 = vrot.slane %v7562_v3, 2  ;;  %v2804_v4 = vadd.f32 %v2716_v31, %v2560_v47  ;;  %v7570_v47 = vld [vmem:[#allocation12_spill] sm:$0xff] }
 0x2dc   : > { %v1918_v20 = vsel %vm1875_vm2, %v7559_v8, %v7557_v5  ;;  %v6226_v25 = vmul.f32 %v5012_v34, %v6210_v48  ;;  %v6230_v43 = vmul.f32 %v5022_v41, %v6210_v48  ;;  %v1603_v59 = vrot.slane %v7565_v19, 7 }
 0x2dd   : > { %v6222_v14 = vsel %vm2120_vm3, %v7563_v57, %v7561_v7  ;;  %v6233_v39 = vadd.f32 %v3270_v45, %v3115_v29  ;;  %v6236_v53 = vsel %vm1569_vm1, 0.0, %v1602_v61  ;;  %v6239_v30 = vsel %vm1569_vm1, %v1605_v55, %v1606_v1 }
 0x2de   : > { %7564 = vst [vmem:[#allocation19_spill] sm:$0xff] %v6230_v43  ;;  %v1699_v27 = vsel %vm1569_vm1, %v1606_v1, 0.0  ;;  %v2872_v6 = vadd.f32 %v2840_v36, %v2804_v4  ;;  %v6244_v60 = vmul.f32 %v5030_v54, %v6210_v48  ;;  %v6252_v31 = vmul.f32 %v5030_v54, %v6236_v53 }
 0x2df   : > { %7566 = vst [vmem:[#allocation20_spill] sm:$0xff] %v6233_v39  ;;  %3469 = vrot.lane.b32.xlu0 %v6233_v39, %s4336_s25  ;;  %v6256_v16 = vmul.f32 %v5012_v34, %v6236_v53  ;;  %v6260_v17 = vmul.f32 %v5022_v41, %v6236_v53  ;;  %v6264_v35 = vmul.f32 %v5012_v34, %v6239_v30  ;;  %v1698_v4 = vsel %vm1569_vm1, %v1603_v59, 0.0 }
 0x2e0   : > { %7567 = vst [vmem:[#allocation29_spill] sm:$0xff] %v6244_v60  ;;  %v3116_v22 = vadd.f32 %v3028_v13, %v2872_v6  ;;  %v1817_v45 = vmul.f32 %v5012_v34, %v1699_v27  ;;  %v6269_v51 = vmul.f32 %v5022_v41, %v6239_v30  ;;  %v2062_v55 = vmul.f32 %v5022_v41, %v1699_v27 }
 0x2e1   : > { %v1736_v36 = vmul.f32 %v5030_v54, %v6239_v30  ;;  %v7335_v9 = vrot.slane %v6264_v35, 1  ;;  %v6277_v1 = vmul.f32 %v5054_v58, %v1699_v27  ;;  %v6284_v8 = vmul.f32 %v5056_v11, %v1699_v27 }
 0x2e2   : > { %v6279_v29 = vadd.f32 %v3272_v2, %v3116_v22  ;;  %v1939_v13 = vrot.slane %v1817_v45, 1  ;;  %v7334_v56 = vrot.slane %v6269_v51, 2  ;;  %v2184_v5 = vrot.slane %v2062_v55, 2 }
 0x2e3   : > { %v6287_v52 = vmul.f32 %v5058_v33, %v1699_v27  ;;  %v6290_v7 = vmul.f32 %v5063_v21, %v1699_v27  ;;  %v6301_v57 = vsel %vm1569_vm1, %v1602_v61, %v1603_v59  ;;  %v6335_v27 = vmul.f32 %v5063_v21, %v1698_v4 }
 0x2e4   : > { %7568 = vst [vmem:[#allocation9_spill] sm:$0xff] %v6279_v29  ;;  %3471 = vrot.lane.b32.xlu1 %v6279_v29, %s4336_s25  ;;  %v1940_v2 = vsel %vm1875_vm2, %v7335_v9, %v1939_v13  ;;  %v2185_v3 = vsel %vm2120_vm3, %v7334_v56, %v2184_v5  ;;  %v6310_v55 = vmul.f32 %v5012_v34, %v6301_v57  ;;  %v7573_v60 = vrot.slane %v6078_v23, 2 }
 0x2e5   : > { %v2013_v19 = vadd.f32 %v1940_v2, %v1736_v36  ;;  %v1814_v13 = vmul.f32 %v5012_v34, %v1698_v4  ;;  %v6315_v61 = vmul.f32 %v5022_v41, %v6301_v57  ;;  %v1734_v36 = vmul.f32 %v5030_v54, %v6301_v57 }
 0x2e6   : > { %v2059_v5 = vmul.f32 %v5022_v41, %v1698_v4  ;;  %v6323_v2 = vmul.f32 %v5054_v58, %v1698_v4  ;;  %v7338_v32 = vrot.slane %v6310_v55, 1  ;;  %v6328_v9 = vmul.f32 %v5058_v33, %v1698_v4 }
 0x2e7   : > { %v6317_v59 = vadd.f32 %v2185_v3, %v2013_v19  ;;  %v1934_v56 = vrot.slane %v1814_v13, 1  ;;  %v7337_v26 = vrot.slane %v6315_v61, 2  ;;  %v6332_v19 = vmul.f32 %v5056_v11, %v1698_v4 }
 0x2e8   : > { %v2179_v6 = vrot.slane %v2059_v5, 2  ;;  %v2004_v45 = vadd.f32 %v1918_v20, %v7570_v47  ;;  %v2285_v22 = vmul.f32 %v5052_v49, %v5982_v24  ;;  %v2361_v4 = vmul.f32 %v5054_v58, %v5982_v24 }
 0x2e9   : > { %7569 = vst [vmem:[#allocation6_spill] sm:$0xff] %v6317_v59  ;;  %v1935_v42 = vsel %vm1875_vm2, %v7338_v32, %v1934_v56  ;;  %v2362_v56 = vmul.f32 %v5054_v58, %v6047_v12  ;;  %v2605_v20 = vmul.f32 %v5056_v11, %v5982_v24  ;;  %v2606_v47 = vmul.f32 %v5056_v11, %v6047_v12 }
 0x2ea   : > { %v2011_v5 = vadd.f32 %v1935_v42, %v1734_v36  ;;  %v2180_v3 = vsel %vm2120_vm3, %v7337_v26, %v2179_v6  ;;  %v2249_v39 = vadd.f32 %v6222_v14, %v2004_v45  ;;  %v2473_v36 = vrot.slane %v2361_v4, 1 }
 0x2eb   : > { %v2841_v6 = vmul.f32 %v5076_v0, %v5967_v18  ;;  %v2917_v26 = vmul.f32 %v5058_v33, %v5967_v18  ;;  %v2474_v14 = vrot.slane %v2362_v56, 1  ;;  %v2717_v45 = vrot.slane %v2605_v20, 2 }
 0x2ec   : > { %v6357_v42 = vadd.f32 %v2180_v3, %v2011_v5  ;;  %v2317_v32 = vadd.f32 %v2285_v22, %v2249_v39  ;;  %v2718_v44 = vrot.slane %v2606_v47, 2  ;;  %v2918_v13 = vmul.f32 %v5058_v33, %v5985_v62 }
 0x2ed   : > { %v3029_v24 = vrot.slane %v2917_v26, 1  ;;  %v3161_v29 = vmul.f32 %v5063_v21, %v5967_v18  ;;  %v3162_v3 = vmul.f32 %v5063_v21, %v5985_v62  ;;  %v2475_v5 = vsel %vm1875_vm2, %v2473_v36, %v2474_v14 }
 0x2ee   : > { %v2719_v4 = vsel %vm2120_vm3, %v2717_v45, %v2718_v44  ;;  %v2286_v39 = vmul.f32 %v5052_v49, %v6047_v12  ;;  %v7571_v22 = vrot.slane %v6069_v63, 1  ;;  %v2561_v20 = vadd.f32 %v2475_v5, %v2317_v32 }
 0x2ef   : > { %v3030_v47 = vrot.slane %v2918_v13, 1  ;;  %v3273_v26 = vrot.slane %v3161_v29, 2  ;;  %v3274_v28 = vrot.slane %v3162_v3, 2  ;;  %v2721_v43 = vsel %vm2120_vm3, %v2718_v44, %v7573_v60  ;;  %v7579_v3 = vld [vmem:[#allocation41_spill] sm:$0xff] }
 0x2f0   : > { %v2477_v56 = vsel %vm1875_vm2, %v2474_v14, %v7571_v22  ;;  %v2318_v59 = vadd.f32 %v2286_v39, %v7572_v37  ;;  %v2842_v36 = vmul.f32 %v5076_v0, %v5985_v62  ;;  %v7574_v45 = vrot.slane %v6056_v38, 1 }
 0x2f1   : > { %v7575_v12 = vrot.slane %v6002_v15, 1  ;;  %v2805_v14 = vadd.f32 %v2719_v4, %v2561_v20  ;;  %v3031_v32 = vsel %vm1875_vm2, %v3029_v24, %v3030_v47  ;;  %v3275_v29 = vsel %vm2120_vm3, %v3273_v26, %v3274_v28 }
 0x2f2   : > { %v7576_v37 = vrot.slane %v6033_v40, 1  ;;  %v2562_v13 = vadd.f32 %v2477_v56, %v2318_v59  ;;  %v7577_v44 = vrot.slane %v6036_v10, 2  ;;  %v7578_v15 = vrot.slane %v6061_v50, 2 }
 0x2f3   : > { %v1923_v63 = vsel %vm1875_vm2, %v7575_v12, %v7574_v45  ;;  %v7580_v5 = vrot.slane %v7579_v3, 2  ;;  %v2873_v24 = vadd.f32 %v2841_v6, %v2805_v14  ;;  %v2287_v39 = vmul.f32 %v5052_v49, %v5967_v18 }
 0x2f4   : > { %v3033_v23 = vsel %vm1875_vm2, %v3030_v47, %v7576_v37  ;;  %v3277_v60 = vsel %vm2120_vm3, %v3274_v28, %v7577_v44  ;;  %v2006_v38 = vadd.f32 %v1923_v63, %v5998_v46  ;;  %v2364_v40 = vmul.f32 %v5054_v58, %v5967_v18 }
 0x2f5   : > { %v2168_v4 = vsel %vm2120_vm3, %v7580_v5, %v7578_v15  ;;  %v2365_v10 = vmul.f32 %v5054_v58, %v5985_v62  ;;  %v2806_v59 = vadd.f32 %v2721_v43, %v2562_v13  ;;  %v2608_v46 = vmul.f32 %v5056_v11, %v5967_v18 }
 0x2f6   : > { %v2251_v28 = vadd.f32 %v2168_v4, %v2006_v38  ;;  %v2609_v50 = vmul.f32 %v5056_v11, %v5985_v62  ;;  %v3117_v22 = vadd.f32 %v3031_v32, %v2873_v24  ;;  %v2478_v56 = vrot.slane %v2364_v40, 1  ;;  %v7583_v4 = vld [vmem:[#allocation44_spill] sm:$0xff] }
 0x2f7   : > { %v2479_v6 = vrot.slane %v2365_v10, 1  ;;  %v2843_v20 = vmul.f32 %v5076_v0, %v6236_v53  ;;  %v2874_v47 = vadd.f32 %v2842_v36, %v2806_v59  ;;  %v2722_v45 = vrot.slane %v2608_v46, 2  ;;  %v7585_v59 = vld [vmem:[#allocation23_spill] sm:$0xff]  ;;  %v7586_v46 = vld [vmem:[#allocation46_spill] sm:$0xff] }
 0x2f8   : > { %v2319_v26 = vadd.f32 %v2287_v39, %v2251_v28  ;;  %v2723_v12 = vrot.slane %v2609_v50, 2  ;;  %v6413_v63 = vadd.f32 %v3275_v29, %v3117_v22  ;;  %v2920_v18 = vmul.f32 %v5058_v33, %v6236_v53 }
 0x2f9   : > { %v2480_v43 = vsel %vm1875_vm2, %v2478_v56, %v2479_v6  ;;  %v2921_v14 = vmul.f32 %v5058_v33, %v6301_v57  ;;  %v3118_v32 = vadd.f32 %v3033_v23, %v2874_v47  ;;  %v3164_v36 = vmul.f32 %v5063_v21, %v6236_v53  ;;  %v7589_v47 = vld [vmem:[#allocation34_spill] sm:$0xff] }
 0x2fa   : > { %7581 = vst [vmem:[#allocation14_spill] sm:$0xff] %v6413_v63  ;;  %v2563_v37 = vadd.f32 %v2480_v43, %v2319_v26  ;;  %v2724_v13 = vsel %vm2120_vm3, %v2722_v45, %v2723_v12  ;;  %3473 = vrot.lane.b32.xlu0 %v6413_v63, %s4336_s25  ;;  %v3034_v29 = vrot.slane %v2920_v18, 1  ;;  %v3165_v38 = vmul.f32 %v5063_v21, %v6301_v57  ;;  %v7608_v63 = vld [vmem:[#allocation27_spill] sm:$0xff] }
 0x2fb   : > { %v3035_v44 = vrot.slane %v2921_v14, 1  ;;  %v2288_v15 = vmul.f32 %v5052_v49, %v5985_v62  ;;  %v6429_v3 = vadd.f32 %v3277_v60, %v3118_v32  ;;  %v3278_v5 = vrot.slane %v3164_v36, 2  ;;  %v7591_v14 = vld [vmem:[#allocation35_spill] sm:$0xff] }
 0x2fc   : > { %v2807_v23 = vadd.f32 %v2724_v13, %v2563_v37  ;;  %v7584_v24 = vrot.slane %v7583_v4, 1  ;;  %v3279_v10 = vrot.slane %v3165_v38, 2  ;;  %v7587_v50 = vrot.slane %v7586_v46, 2  ;;  %v7595_v38 = vld [vmem:[#allocation38_spill] sm:$0xff] }
 0x2fd   : > { %7582 = vst [vmem:[#allocation33_spill] sm:$0xff] %v6429_v3  ;;  %v3036_v40 = vsel %vm1875_vm2, %v3034_v29, %v3035_v44  ;;  %v2320_v28 = vadd.f32 %v2288_v15, %v7585_v59  ;;  %3475 = vrot.lane.b32.xlu1 %v6429_v3, %s4336_s25  ;;  %v2844_v60 = vmul.f32 %v5076_v0, %v6301_v57  ;;  %v7588_v56 = vrot.slane %v6328_v9, 1  ;;  %v7592_v9 = vld [vmem:[#allocation37_spill] sm:$0xff] }
 0x2fe   : > { %v2482_v39 = vsel %vm1875_vm2, %v2479_v6, %v7584_v24  ;;  %v2726_v22 = vsel %vm2120_vm3, %v2723_v12, %v7587_v50  ;;  %v2875_v62 = vadd.f32 %v2843_v20, %v2807_v23  ;;  %v1611_v26 = vrot.slane %v7589_v47, 7 }
 0x2ff   : > { %v3038_v6 = vsel %vm1875_vm2, %v3035_v44, %v7588_v56  ;;  %v3280_v45 = vsel %vm2120_vm3, %v3278_v5, %v3279_v10  ;;  %v2564_v43 = vadd.f32 %v2482_v39, %v2320_v28  ;;  %v7590_v18 = vrot.slane %v6335_v27, 2 }
 0x300   : > { %v1608_v32 = vrot.slane %v7591_v14, 7  ;;  %v3119_v37 = vadd.f32 %v3036_v40, %v2875_v62  ;;  %v6454_v13 = vsel %vm1569_vm1, 0.0, %v1611_v26  ;;  %v1612_v36 = vrot.slane %v7592_v9, 7 }
 0x301   : > { %v3282_v12 = vsel %vm2120_vm3, %v3279_v10, %v7590_v18  ;;  %v2808_v29 = vadd.f32 %v2726_v22, %v2564_v43  ;;  %v6459_v44 = vmul.f32 %v5012_v34, %v6454_v13  ;;  %v6463_v27 = vmul.f32 %v5022_v41, %v6454_v13 }
 0x302   : > { %v1609_v15 = vrot.slane %v7595_v38, 7  ;;  %v6466_v23 = vadd.f32 %v3280_v45, %v3119_v37  ;;  %v6469_v5 = vsel %vm1569_vm1, 0.0, %v1608_v32  ;;  %v6472_v4 = vsel %vm1569_vm1, %v1611_v26, %v1612_v36 }
 0x303   : > { %7593 = vst [vmem:[#allocation11_spill] sm:$0xff] %v6459_v44  ;;  %7594 = vst [vmem:[#allocation8_spill] sm:$0xff] %v6463_v27  ;;  %v1701_v24 = vsel %vm1569_vm1, %v1612_v36, 0.0  ;;  %v2876_v39 = vadd.f32 %v2844_v60, %v2808_v29  ;;  %v6477_v40 = vmul.f32 %v5030_v54, %v6454_v13  ;;  %v6485_v28 = vmul.f32 %v5030_v54, %v6469_v5  ;;  %v7612_v27 = vld [vmem:[#allocation30_spill] sm:$0xff] }
 0x304   : > { %7596 = vst [vmem:[#allocation12_spill] sm:$0xff] %v6466_v23  ;;  %3477 = vrot.lane.b32.xlu0 %v6466_v23, %s4336_s25  ;;  %v6489_v46 = vmul.f32 %v5012_v34, %v6469_v5  ;;  %v6493_v50 = vmul.f32 %v5022_v41, %v6469_v5  ;;  %v6497_v22 = vmul.f32 %v5012_v34, %v6472_v4  ;;  %v7609_v3 = vrot.slane %v7608_v63, 1 }
 0x305   : > { %7597 = vst [vmem:[#allocation39_spill] sm:$0xff] %v6477_v40  ;;  %v3120_v62 = vadd.f32 %v3038_v6, %v2876_v39  ;;  %v1823_v60 = vmul.f32 %v5012_v34, %v1701_v24  ;;  %v6502_v56 = vmul.f32 %v5022_v41, %v6472_v4  ;;  %v2068_v47 = vmul.f32 %v5022_v41, %v1701_v24 }
 0x306   : > { %7598 = vst [vmem:[#allocation41_spill] sm:$0xff] %v6493_v50  ;;  %7599 = vst [vmem:[#allocation44_spill] sm:$0xff] %v6497_v22  ;;  %v1740_v45 = vmul.f32 %v5030_v54, %v6472_v4  ;;  %v7344_v43 = vrot.slane %v6497_v22, 1  ;;  %v6510_v18 = vmul.f32 %v5054_v58, %v1701_v24  ;;  %v6517_v29 = vmul.f32 %v5056_v11, %v1701_v24 }
 0x307   : > { %7600 = vst [vmem:[#allocation23_spill] sm:$0xff] %v6502_v56  ;;  %v6512_v14 = vadd.f32 %v3282_v12, %v3120_v62  ;;  %v1949_v6 = vrot.slane %v1823_v60, 1  ;;  %v7343_v37 = vrot.slane %v6502_v56, 2  ;;  %v2194_v9 = vrot.slane %v2068_v47, 2 }
 0x308   : > { %7601 = vst [vmem:[#allocation46_spill] sm:$0xff] %v6510_v18  ;;  %7603 = vst [vmem:[#allocation35_spill] sm:$0xff] %v6517_v29  ;;  %v6520_v38 = vmul.f32 %v5058_v33, %v1701_v24  ;;  %v6523_v39 = vmul.f32 %v5063_v21, %v1701_v24  ;;  %v6534_v60 = vsel %vm1569_vm1, %v1608_v32, %v1609_v15  ;;  %v1700_v47 = vsel %vm1569_vm1, %v1609_v15, 0.0 }
 0x309   : > { %7602 = vst [vmem:[#allocation34_spill] sm:$0xff] %v6512_v14  ;;  %3479 = vrot.lane.b32.xlu1 %v6512_v14, %s4336_s25  ;;  %v1950_v12 = vsel %vm1875_vm2, %v7344_v43, %v1949_v6  ;;  %v2195_v62 = vsel %vm2120_vm3, %v7343_v37, %v2194_v9  ;;  %v6543_v6 = vmul.f32 %v5012_v34, %v6534_v60  ;;  %v7606_v14 = vld [vmem:[#allocation42_spill] sm:$0xff]  ;;  %v7613_v56 = vrot.slane %v7612_v27, 2 }
 0x30a   : > { %v2017_v59 = vadd.f32 %v1950_v12, %v1740_v45  ;;  %v1820_v9 = vmul.f32 %v5012_v34, %v1700_v47  ;;  %v6548_v32 = vmul.f32 %v5022_v41, %v6534_v60  ;;  %v1738_v45 = vmul.f32 %v5030_v54, %v6534_v60 }
 0x30b   : > { %v2065_v12 = vmul.f32 %v5022_v41, %v1700_v47  ;;  %v6556_v37 = vmul.f32 %v5054_v58, %v1700_v47  ;;  %v7353_v43 = vrot.slane %v6543_v6, 1  ;;  %v6561_v26 = vmul.f32 %v5058_v33, %v1700_v47 }
 0x30c   : > { %7604 = vst [vmem:[#allocation37_spill] sm:$0xff] %v6548_v32  ;;  %v6550_v15 = vadd.f32 %v2195_v62, %v2017_v59  ;;  %v1944_v10 = vrot.slane %v1820_v9, 1  ;;  %v6565_v62 = vmul.f32 %v5056_v11, %v1700_v47  ;;  %v6568_v20 = vmul.f32 %v5063_v21, %v1700_v47 }
 0x30d   : > { %v2189_v36 = vrot.slane %v2065_v12, 2  ;;  %v7607_v24 = vrot.slane %v7606_v14, 1  ;;  %v7614_v44 = vrot.slane %v6548_v32, 2  ;;  %v2289_v63 = vmul.f32 %v5052_v49, %v6236_v53 }
 0x30e   : > { %7605 = vst [vmem:[#allocation38_spill] sm:$0xff] %v6550_v15  ;;  %v1945_v23 = vsel %vm1875_vm2, %v7353_v43, %v1944_v10  ;;  %v7610_v15 = vld [vmem:[#allocation43_spill] sm:$0xff]  ;;  %v7615_v43 = vld [vmem:[#allocation40_spill] sm:$0xff]  ;;  %v2368_v27 = vmul.f32 %v5054_v58, %v6301_v57 }
 0x30f   : > { %v1928_v12 = vsel %vm1875_vm2, %v7609_v3, %v7607_v24  ;;  %v7611_v59 = vrot.slane %v7610_v15, 2  ;;  %v2015_v47 = vadd.f32 %v1945_v23, %v1738_v45  ;;  %v2190_v22 = vsel %vm2120_vm3, %v7614_v44, %v2189_v36  ;;  %v7617_v10 = vld [vmem:[#allocation47_spill] sm:$0xff] }
 0x310   : > { %v2008_v9 = vadd.f32 %v1928_v12, %v7615_v43  ;;  %v2367_v3 = vmul.f32 %v5054_v58, %v6236_v53  ;;  %v2611_v23 = vmul.f32 %v5056_v11, %v6236_v53  ;;  %v2612_v44 = vmul.f32 %v5056_v11, %v6301_v57 }
 0x311   : > { %v2173_v40 = vsel %vm2120_vm3, %v7613_v56, %v7611_v59  ;;  %v6597_v56 = vadd.f32 %v2190_v22, %v2015_v47  ;;  %v2845_v43 = vmul.f32 %v5076_v0, %v6210_v48  ;;  %v2484_v24 = vrot.slane %v2368_v27, 1 }
 0x312   : > { %v2253_v14 = vadd.f32 %v2173_v40, %v2008_v9  ;;  %v2483_v36 = vrot.slane %v2367_v3, 1  ;;  %v2727_v15 = vrot.slane %v2611_v23, 2  ;;  %v2923_v45 = vmul.f32 %v5058_v33, %v6210_v48 }
 0x313   : > { %7616 = vst [vmem:[#allocation42_spill] sm:$0xff] %v6597_v56  ;;  %v2728_v12 = vrot.slane %v2612_v44, 2  ;;  %v2924_v53 = vmul.f32 %v5058_v33, %v6239_v30  ;;  %v3167_v40 = vmul.f32 %v5063_v21, %v6210_v48  ;;  %v3168_v47 = vmul.f32 %v5063_v21, %v6239_v30 }
 0x314   : > { %v2321_v59 = vadd.f32 %v2289_v63, %v2253_v14  ;;  %v2485_v22 = vsel %vm1875_vm2, %v2483_v36, %v2484_v24  ;;  %v3039_v9 = vrot.slane %v2923_v45, 1  ;;  %v2290_v3 = vmul.f32 %v5052_v49, %v6301_v57 }
 0x315   : > { %v2729_v23 = vsel %vm2120_vm3, %v2727_v15, %v2728_v12  ;;  %v3040_v63 = vrot.slane %v2924_v53, 1  ;;  %v3283_v14 = vrot.slane %v3167_v40, 2  ;;  %v3284_v44 = vrot.slane %v3168_v47, 2 }
 0x316   : > { %v2565_v27 = vadd.f32 %v2485_v22, %v2321_v59  ;;  %v2322_v29 = vadd.f32 %v2290_v3, %v7617_v10  ;;  %v7618_v56 = vrot.slane %v6323_v2, 1  ;;  %v7619_v36 = vrot.slane %v6332_v19, 2 }
 0x317   : > { %v3041_v32 = vsel %vm1875_vm2, %v3039_v9, %v3040_v63  ;;  %v2846_v57 = vmul.f32 %v5076_v0, %v6239_v30  ;;  %v7620_v15 = vrot.slane %v6287_v52, 1  ;;  %v3285_v10 = vsel %vm2120_vm3, %v3283_v14, %v3284_v44 }
 0x318   : > { %v2487_v18 = vsel %vm1875_vm2, %v2484_v24, %v7618_v56  ;;  %v2731_v45 = vsel %vm2120_vm3, %v2728_v12, %v7619_v36  ;;  %v2809_v50 = vadd.f32 %v2729_v23, %v2565_v27  ;;  %v7621_v2 = vrot.slane %v6290_v7, 2 }
 0x319   : > { %v3043_v59 = vsel %vm1875_vm2, %v3040_v63, %v7620_v15  ;;  %v2566_v53 = vadd.f32 %v2487_v18, %v2322_v29  ;;  %v7622_v19 = vrot.slane %v6310_v55, 1  ;;  %v7623_v24 = vrot.slane %v6256_v16, 1 }
 0x31a   : > { %v3287_v56 = vsel %vm2120_vm3, %v3284_v44, %v7621_v2  ;;  %v2877_v40 = vadd.f32 %v2845_v43, %v2809_v50  ;;  %v7624_v52 = vrot.slane %v6315_v61, 2  ;;  %v7625_v9 = vrot.slane %v6260_v17, 2 }
 0x31b   : > { %v1933_v12 = vsel %vm1875_vm2, %v7623_v24, %v7622_v19  ;;  %v2291_v7 = vmul.f32 %v5052_v49, %v6210_v48  ;;  %v2810_v18 = vadd.f32 %v2731_v45, %v2566_v53  ;;  %v2370_v55 = vmul.f32 %v5054_v58, %v6210_v48 }
 0x31c   : > { %v2010_v22 = vadd.f32 %v1933_v12, %v6252_v31  ;;  %v2178_v47 = vsel %vm2120_vm3, %v7625_v9, %v7624_v52  ;;  %v2371_v16 = vmul.f32 %v5054_v58, %v6239_v30  ;;  %v2614_v50 = vmul.f32 %v5056_v11, %v6210_v48 }
 0x31d   : > { %v3121_v31 = vadd.f32 %v3041_v32, %v2877_v40  ;;  %v2615_v17 = vmul.f32 %v5056_v11, %v6239_v30  ;;  %v2847_v61 = vmul.f32 %v5076_v0, %v6469_v5  ;;  %v2878_v43 = vadd.f32 %v2846_v57, %v2810_v18  ;;  %v7646_v18 = vld [vmem:[#allocation29_spill] sm:$0xff] }
 0x31e   : > { %v2255_v29 = vadd.f32 %v2178_v47, %v2010_v22  ;;  %v2488_v3 = vrot.slane %v2370_v55, 1  ;;  %v2489_v27 = vrot.slane %v2371_v16, 1  ;;  %v2732_v23 = vrot.slane %v2614_v50, 2 }
 0x31f   : > { %v6655_v63 = vadd.f32 %v3285_v10, %v3121_v31  ;;  %v2733_v44 = vrot.slane %v2615_v17, 2  ;;  %v2926_v36 = vmul.f32 %v5058_v33, %v6469_v5  ;;  %v3122_v48 = vadd.f32 %v3043_v59, %v2878_v43 }
 0x320   : > { %v2323_v14 = vadd.f32 %v2291_v7, %v2255_v29  ;;  %v2490_v32 = vsel %vm1875_vm2, %v2488_v3, %v2489_v27  ;;  %v2927_v45 = vmul.f32 %v5058_v33, %v6534_v60  ;;  %v3170_v15 = vmul.f32 %v5063_v21, %v6469_v5  ;;  %v7632_v29 = vld [vmem:[#allocation15_spill] sm:$0xff] }
 0x321   : > { %7626 = vst [vmem:[#allocation27_spill] sm:$0xff] %v6655_v63  ;;  %3481 = vrot.lane.b32.xlu0 %v6655_v63, %s4336_s25  ;;  %v2734_v10 = vsel %vm2120_vm3, %v2732_v23, %v2733_v44  ;;  %v3044_v53 = vrot.slane %v2926_v36, 1  ;;  %v3171_v2 = vmul.f32 %v5063_v21, %v6534_v60  ;;  %v6669_v19 = vadd.f32 %v3287_v56, %v3122_v48  ;;  %v7648_v63 = vld [vmem:[#allocation6_spill] sm:$0xff] }
 0x322   : > { %v2567_v57 = vadd.f32 %v2490_v32, %v2323_v14  ;;  %v3045_v59 = vrot.slane %v2927_v45, 1  ;;  %v3288_v24 = vrot.slane %v3170_v15, 2  ;;  %v2292_v12 = vmul.f32 %v5052_v49, %v6239_v30  ;;  %v7638_v32 = vld [vmem:[#allocation19_spill] sm:$0xff] }
 0x323   : > { %7627 = vst [vmem:[#allocation43_spill] sm:$0xff] %v6669_v19  ;;  %v3289_v22 = vrot.slane %v3171_v2, 2  ;;  %v7628_v52 = vrot.slane %v6277_v1, 1  ;;  %v7629_v47 = vrot.slane %v6284_v8, 2  ;;  %3483 = vrot.lane.b32.xlu1 %v6669_v19, %s4336_s25  ;;  %v7630_v30 = vrot.slane %v6561_v26, 1 }
 0x324   : > { %v2811_v40 = vadd.f32 %v2734_v10, %v2567_v57  ;;  %v3046_v56 = vsel %vm1875_vm2, %v3044_v53, %v3045_v59  ;;  %v2324_v55 = vadd.f32 %v2292_v12, %v6357_v42  ;;  %v7631_v8 = vrot.slane %v6568_v20, 2  ;;  %v7634_v42 = vld [vmem:[#allocation22_spill] sm:$0xff] }
 0x325   : > { %v2492_v9 = vsel %vm1875_vm2, %v2489_v27, %v7628_v52  ;;  %v2736_v7 = vsel %vm2120_vm3, %v2733_v44, %v7629_v47  ;;  %v3048_v16 = vsel %vm1875_vm2, %v3045_v59, %v7630_v30  ;;  %v3290_v50 = vsel %vm2120_vm3, %v3288_v24, %v3289_v22  ;;  %v7633_v27 = vld [vmem:[#allocation28_spill] sm:$0xff] }
 0x326   : > { %v2879_v1 = vadd.f32 %v2847_v61, %v2811_v40  ;;  %v3292_v31 = vsel %vm2120_vm3, %v3289_v22, %v7631_v8  ;;  %v1617_v17 = vrot.slane %v7632_v29, 7  ;;  %v2568_v43 = vadd.f32 %v2492_v9, %v2324_v55 }
 0x327   : > { %v2848_v3 = vmul.f32 %v5076_v0, %v6534_v60  ;;  %v1614_v23 = vrot.slane %v7633_v27, 7  ;;  %v1618_v14 = vrot.slane %v7634_v42, 7  ;;  %v7635_v61 = vrot.slane %v6264_v35, 1  ;;  %v7640_v35 = vld [vmem:[#allocation25_spill] sm:$0xff] }
 0x328   : > { %v3123_v26 = vadd.f32 %v3046_v56, %v2879_v1  ;;  %v1686_v44 = vsel %vm1569_vm1, 0.0, %v1617_v17  ;;  %v7636_v36 = vrot.slane %v6226_v25, 1  ;;  %v7637_v48 = vrot.slane %v6269_v51, 2 }
 0x329   : > { %v7639_v45 = vrot.slane %v7638_v32, 2  ;;  %v2812_v57 = vadd.f32 %v2736_v7, %v2568_v43  ;;  %v6712_v10 = vmul.f32 %v5054_v58, %v1686_v44  ;;  %v6715_v53 = vmul.f32 %v5056_v11, %v1686_v44 }
 0x32a   : > { %v6702_v20 = vsel %vm1875_vm2, %v7636_v36, %v7635_v61  ;;  %v1615_v2 = vrot.slane %v7640_v35, 7  ;;  %v6718_v25 = vadd.f32 %v3290_v50, %v3123_v26  ;;  %v6721_v59 = vmul.f32 %v5052_v49, %v1686_v44 }
 0x32b   : > { %v6709_v15 = vsel %vm2120_vm3, %v7639_v45, %v7637_v48  ;;  %v6724_v51 = vmul.f32 %v5058_v33, %v1686_v44  ;;  %v6727_v24 = vmul.f32 %v5063_v21, %v1686_v44  ;;  %v2880_v12 = vadd.f32 %v2848_v3, %v2812_v57 }
 0x32c   : > { %7641 = vst [vmem:[#allocation30_spill] sm:$0xff] %v6718_v25  ;;  %7642 = vst [vmem:[#allocation40_spill] sm:$0xff] %v6721_v59  ;;  %v6731_v22 = vmul.f32 %v5076_v0, %v1686_v44  ;;  %v6734_v52 = vsel %vm1569_vm1, 0.0, %v1614_v23  ;;  %3485 = vrot.lane.b32.xlu0 %v6718_v25, %s4336_s25  ;;  %v6750_v1 = vsel %vm1569_vm1, %v1617_v17, %v1618_v14  ;;  %v1703_v50 = vsel %vm1569_vm1, %v1618_v14, 0.0 }
 0x32d   : > { %v6743_v56 = vmul.f32 %v5012_v34, %v6734_v52  ;;  %v3124_v55 = vadd.f32 %v3048_v16, %v2880_v12  ;;  %v6747_v30 = vmul.f32 %v5030_v54, %v6734_v52  ;;  %v6756_v29 = vmul.f32 %v5022_v41, %v6734_v52 }
 0x32e   : > { %v6760_v43 = vmul.f32 %v5054_v58, %v6750_v1  ;;  %v2384_v16 = vmul.f32 %v5054_v58, %v1703_v50  ;;  %v6767_v17 = vmul.f32 %v5052_v49, %v6750_v1  ;;  %v6771_v27 = vmul.f32 %v5056_v11, %v6750_v1 }
 0x32f   : > { %v6763_v3 = vadd.f32 %v3292_v31, %v3124_v55  ;;  %v2628_v42 = vmul.f32 %v5056_v11, %v1703_v50  ;;  %v6777_v44 = vmul.f32 %v5058_v33, %v6750_v1  ;;  %v6780_v31 = vmul.f32 %v5058_v33, %v1703_v50 }
 0x330   : > { %v7359_v14 = vrot.slane %v6760_v43, 1  ;;  %v2511_v26 = vrot.slane %v2384_v16, 1  ;;  %v7358_v61 = vrot.slane %v6771_v27, 2  ;;  %v6786_v48 = vmul.f32 %v5063_v21, %v1703_v50 }
 0x331   : > { %7643 = vst [vmem:[#allocation47_spill] sm:$0xff] %v6763_v3  ;;  %3487 = vrot.lane.b32.xlu1 %v6763_v3, %s4336_s25  ;;  %v2755_v36 = vrot.slane %v2628_v42, 2  ;;  %v6789_v32 = vsel %vm1569_vm1, %v1614_v23, %v1615_v2  ;;  %v1702_v12 = vsel %vm1569_vm1, %v1615_v2, 0.0  ;;  %v2930_v3 = vmul.f32 %v5058_v33, %v6472_v4 }
 0x332   : > { %v6794_v45 = vsel %vm1875_vm2, %v7359_v14, %v2511_v26  ;;  %v1742_v23 = vmul.f32 %v5030_v54, %v6789_v32  ;;  %v6809_v16 = vmul.f32 %v5012_v34, %v6789_v32  ;;  %v1826_v42 = vmul.f32 %v5012_v34, %v1702_v12 }
 0x333   : > { %7644 = vst [vmem:[#allocation15_spill] sm:$0xff] %v6794_v45  ;;  %v6802_v55 = vsel %vm2120_vm3, %v7358_v61, %v2755_v36  ;;  %v6814_v26 = vmul.f32 %v5022_v41, %v6789_v32  ;;  %v2071_v2 = vmul.f32 %v5022_v41, %v1702_v12  ;;  %v6819_v36 = vmul.f32 %v5054_v58, %v6789_v32 }
 0x334   : > { %7645 = vst [vmem:[#allocation28_spill] sm:$0xff] %v6802_v55  ;;  %v7360_v9 = vrot.slane %v6809_v16, 1  ;;  %v2381_v54 = vmul.f32 %v5054_v58, %v1702_v12  ;;  %v6824_v61 = vmul.f32 %v5056_v11, %v1702_v12  ;;  %v6827_v40 = vmul.f32 %v5058_v33, %v1702_v12 }
 0x335   : > { %v1954_v34 = vrot.slane %v1826_v42, 1  ;;  %v7361_v14 = vrot.slane %v6814_v26, 2  ;;  %v2199_v8 = vrot.slane %v2071_v2, 2  ;;  %v7362_v41 = vrot.slane %v6819_v36, 1 }
 0x336   : > { %v2506_v50 = vrot.slane %v2381_v54, 1  ;;  %v6834_v47 = vmul.f32 %v5063_v21, %v1702_v12  ;;  %v2012_v2 = vadd.f32 %v6702_v20, %v7646_v18  ;;  %v2293_v54 = vmul.f32 %v5052_v49, %v6469_v5 }
 0x337   : > { %v1955_v57 = vsel %vm1875_vm2, %v7360_v9, %v1954_v34  ;;  %v2200_v42 = vsel %vm2120_vm3, %v7361_v14, %v2199_v8  ;;  %v2373_v34 = vmul.f32 %v5054_v58, %v6469_v5  ;;  %v2374_v8 = vmul.f32 %v5054_v58, %v6534_v60 }
 0x338   : > { %v2019_v35 = vadd.f32 %v1955_v57, %v1742_v23  ;;  %v6849_v12 = vsel %vm1875_vm2, %v7362_v41, %v2506_v50  ;;  %v2257_v9 = vadd.f32 %v6709_v15, %v2012_v2  ;;  %v2617_v18 = vmul.f32 %v5056_v11, %v6469_v5 }
 0x339   : > { %v2618_v20 = vmul.f32 %v5056_v11, %v6534_v60  ;;  %v2493_v50 = vrot.slane %v2373_v34, 1  ;;  %v2849_v23 = vmul.f32 %v5076_v0, %v6454_v13  ;;  %v2929_v14 = vmul.f32 %v5058_v33, %v6454_v13 }
 0x33a   : > { %v6861_v57 = vadd.f32 %v2200_v42, %v2019_v35  ;;  %v2325_v41 = vadd.f32 %v2293_v54, %v2257_v9  ;;  %v2494_v15 = vrot.slane %v2374_v8, 1  ;;  %v2737_v2 = vrot.slane %v2617_v18, 2 }
 0x33b   : > { %v2738_v7 = vrot.slane %v2618_v20, 2  ;;  %v3049_v5 = vrot.slane %v2929_v14, 1  ;;  %v3173_v25 = vmul.f32 %v5063_v21, %v6454_v13  ;;  %v3174_v35 = vmul.f32 %v5063_v21, %v6472_v4 }
 0x33c   : > { %v2495_v42 = vsel %vm1875_vm2, %v2493_v50, %v2494_v15  ;;  %v2294_v9 = vmul.f32 %v5052_v49, %v6534_v60  ;;  %v7647_v54 = vrot.slane %v6556_v37, 1  ;;  %v3050_v20 = vrot.slane %v2930_v3, 1 }
 0x33d   : > { %v2739_v34 = vsel %vm2120_vm3, %v2737_v2, %v2738_v7  ;;  %v2569_v18 = vadd.f32 %v2495_v42, %v2325_v41  ;;  %v3293_v14 = vrot.slane %v3173_v25, 2  ;;  %v3294_v19 = vrot.slane %v3174_v35, 2  ;;  %v7654_v35 = vld [vmem:[#allocation37_spill] sm:$0xff] }
 0x33e   : > { %v2497_v8 = vsel %vm1875_vm2, %v2494_v15, %v7647_v54  ;;  %v2326_v55 = vadd.f32 %v2294_v9, %v7648_v63  ;;  %v7649_v45 = vrot.slane %v6565_v62, 2  ;;  %v2850_v50 = vmul.f32 %v5076_v0, %v6472_v4  ;;  %v7656_v42 = vld [vmem:[#allocation41_spill] sm:$0xff] }
 0x33f   : > { %v7650_v2 = vrot.slane %v6543_v6, 1  ;;  %v7651_v60 = vrot.slane %v6489_v46, 1  ;;  %v2813_v15 = vadd.f32 %v2739_v34, %v2569_v18  ;;  %v3051_v3 = vsel %vm1875_vm2, %v3049_v5, %v3050_v20 }
 0x340   : > { %v2741_v59 = vsel %vm2120_vm3, %v2738_v7, %v7649_v45  ;;  %v3295_v25 = vsel %vm2120_vm3, %v3293_v14, %v3294_v19  ;;  %v7652_v63 = vrot.slane %v6520_v38, 1  ;;  %v2570_v41 = vadd.f32 %v2497_v8, %v2326_v55 }
 0x341   : > { %v1943_v37 = vsel %vm1875_vm2, %v7651_v60, %v7650_v2  ;;  %v7653_v7 = vrot.slane %v6523_v39, 2  ;;  %v7655_v46 = vrot.slane %v7654_v35, 2  ;;  %v7657_v9 = vrot.slane %v7656_v42, 2 }
 0x342   : > { %v3053_v62 = vsel %vm1875_vm2, %v3050_v20, %v7652_v63  ;;  %v2014_v6 = vadd.f32 %v1943_v37, %v6485_v28  ;;  %v2881_v5 = vadd.f32 %v2849_v23, %v2813_v15  ;;  %v2295_v54 = vmul.f32 %v5052_v49, %v6454_v13 }
 0x343   : > { %v3297_v45 = vsel %vm2120_vm3, %v3294_v19, %v7653_v7  ;;  %v2188_v34 = vsel %vm2120_vm3, %v7657_v9, %v7655_v46  ;;  %v2376_v38 = vmul.f32 %v5054_v58, %v6454_v13  ;;  %v2377_v39 = vmul.f32 %v5054_v58, %v6472_v4 }
 0x344   : > { %v2814_v55 = vadd.f32 %v2741_v59, %v2570_v41  ;;  %v2259_v19 = vadd.f32 %v2188_v34, %v2014_v6  ;;  %v2620_v28 = vmul.f32 %v5056_v11, %v6454_v13  ;;  %v2621_v8 = vmul.f32 %v5056_v11, %v6472_v4 }
 0x345   : > { %v3125_v18 = vadd.f32 %v3051_v3, %v2881_v5  ;;  %v2498_v20 = vrot.slane %v2376_v38, 1  ;;  %v2499_v23 = vrot.slane %v2377_v39, 1  ;;  %v2851_v14 = vmul.f32 %v5076_v0, %v6734_v52  ;;  %v7658_v5 = vld [vmem:[#allocation46_spill] sm:$0xff] }
 0x346   : > { %v2882_v2 = vadd.f32 %v2850_v50, %v2814_v55  ;;  %v2327_v60 = vadd.f32 %v2295_v54, %v2259_v19  ;;  %v2742_v37 = vrot.slane %v2620_v28, 2  ;;  %v2743_v15 = vrot.slane %v2621_v8, 2  ;;  %v7660_v19 = vld [vmem:[#allocation42_spill] sm:$0xff]  ;;  %v7661_v8 = vld [vmem:[#allocation35_spill] sm:$0xff] }
 0x347   : > { %v6917_v63 = vadd.f32 %v3295_v25, %v3125_v18  ;;  %v2500_v59 = vsel %vm1875_vm2, %v2498_v20, %v2499_v23  ;;  %v2932_v13 = vmul.f32 %v5058_v33, %v6734_v52  ;;  %v2933_v41 = vmul.f32 %v5058_v33, %v6789_v32 }
 0x348   : > { %v3126_v3 = vadd.f32 %v3053_v62, %v2882_v2  ;;  %v2571_v7 = vadd.f32 %v2500_v59, %v2327_v60  ;;  %v2744_v6 = vsel %vm2120_vm3, %v2742_v37, %v2743_v15  ;;  %v3176_v50 = vmul.f32 %v5063_v21, %v6734_v52  ;;  %v7664_v60 = vld [vmem:[#allocation44_spill] sm:$0xff]  ;;  %v7666_v59 = vld [vmem:[#allocation11_spill] sm:$0xff] }
 0x349   : > { %3489 = vrot.lane.b32.xlu0 %v6917_v63, %s4336_s25  ;;  %v3054_v25 = vrot.slane %v2932_v13, 1  ;;  %v3055_v35 = vrot.slane %v2933_v41, 1  ;;  %v3177_v46 = vmul.f32 %v5063_v21, %v6789_v32  ;;  %v2296_v42 = vmul.f32 %v5052_v49, %v6472_v4 }
 0x34a   : > { %v6933_v9 = vadd.f32 %v3297_v45, %v3126_v3  ;;  %v2815_v62 = vadd.f32 %v2744_v6, %v2571_v7  ;;  %v3298_v34 = vrot.slane %v3176_v50, 2  ;;  %v7659_v54 = vrot.slane %v7658_v5, 1  ;;  %v7669_v6 = vld [vmem:[#allocation39_spill] sm:$0xff] }
 0x34b   : > { %v3056_v39 = vsel %vm1875_vm2, %v3054_v25, %v3055_v35  ;;  %v3299_v55 = vrot.slane %v3177_v46, 2  ;;  %v2328_v28 = vadd.f32 %v2296_v42, %v7660_v19  ;;  %v7662_v18 = vrot.slane %v7661_v8, 2  ;;  %v7670_v46 = vld [vmem:[#allocation23_spill] sm:$0xff]  ;;  %v7672_v42 = vld [vmem:[#allocation8_spill] sm:$0xff] }
 0x34c   : > { %v2502_v38 = vsel %vm1875_vm2, %v2499_v23, %v7659_v54  ;;  %3491 = vrot.lane.b32.xlu1 %v6933_v9, %s4336_s25  ;;  %v2883_v4 = vadd.f32 %v2851_v14, %v2815_v62  ;;  %v2852_v45 = vmul.f32 %v5076_v0, %v6789_v32  ;;  %v7663_v2 = vrot.slane %v6827_v40, 1 }
 0x34d   : > { %v2746_v20 = vsel %vm2120_vm3, %v2743_v15, %v7662_v18  ;;  %v7665_v37 = vrot.slane %v7664_v60, 1  ;;  %v7667_v13 = vrot.slane %v7666_v59, 1  ;;  %v3300_v3 = vsel %vm2120_vm3, %v3298_v34, %v3299_v55 }
 0x34e   : > { %v3058_v23 = vsel %vm1875_vm2, %v3055_v35, %v7663_v2  ;;  %v2572_v15 = vadd.f32 %v2502_v38, %v2328_v28  ;;  %v7668_v7 = vrot.slane %v6834_v47, 2  ;;  %v3127_v25 = vadd.f32 %v3056_v39, %v2883_v4 }
 0x34f   : > { %v1948_v41 = vsel %vm1875_vm2, %v7667_v13, %v7665_v37  ;;  %v7671_v40 = vrot.slane %v7670_v46, 2  ;;  %v7673_v35 = vrot.slane %v7672_v42, 2  ;;  %v2297_v5 = vmul.f32 %v5052_v49, %v6734_v52  ;;  %v3444_v46 = vpop.permute.xlu1 %3443  ;;  %v7683_v42 = vld [vmem:[#allocation17_spill] sm:$0xff] }
 0x350   : > { %v3302_v14 = vsel %vm2120_vm3, %v3299_v55, %v7668_v7  ;;  %v2016_v50 = vadd.f32 %v1948_v41, %v7669_v6  ;;  %v2379_v34 = vmul.f32 %v5054_v58, %v6734_v52  ;;  %v2816_v54 = vadd.f32 %v2746_v20, %v2572_v15  ;;  %v7679_v6 = vld [vmem:[#allocation38_spill] sm:$0xff] }
 0x351   : > { %v2193_v62 = vsel %vm2120_vm3, %v7673_v35, %v7671_v40  ;;  %v2623_v47 = vmul.f32 %v5056_v11, %v6734_v52  ;;  %v2624_v39 = vmul.f32 %v5056_v11, %v6789_v32  ;;  %v6973_v55 = vadd.f32 %v3300_v3, %v3127_v25  ;;  %v7684_v35 = vld [vmem:[#allocation16_spill] sm:$0xff] }
 0x352   : > { %v2261_v38 = vadd.f32 %v2193_v62, %v2016_v50  ;;  %v2503_v19 = vrot.slane %v2379_v34, 1  ;;  %v7674_v28 = vrot.slane %v6777_v44, 1  ;;  %v7675_v8 = vrot.slane %v6724_v51, 1 }
 0x353   : > { %v3180_v58 = vmul.f32 %v5063_v21, %v6750_v1  ;;  %v2884_v20 = vadd.f32 %v2852_v45, %v2816_v54  ;;  %v2747_v2 = vrot.slane %v2623_v47, 2  ;;  %v2748_v60 = vrot.slane %v2624_v39, 2  ;;  %3493 = vrot.lane.b32.xlu0 %v6973_v55, %s4336_s25 }
 0x354   : > { %v3061_v18 = vsel %vm1875_vm2, %v7675_v8, %v7674_v28  ;;  %v2329_v4 = vadd.f32 %v2297_v5, %v2261_v38  ;;  %v2196_v52 = vrot.slane %v6756_v29, 2  ;;  %v7676_v11 = vrot.slane %v6819_v36, 1  ;;  %v3442_v5 = vpop.permute.xlu0 %3441 }
 0x355   : > { %v3304_v59 = vrot.slane %v3180_v58, 2  ;;  %v2298_v51 = vmul.f32 %v5052_v49, %v6789_v32  ;;  %v3128_v13 = vadd.f32 %v3058_v23, %v2884_v20  ;;  %v2749_v45 = vsel %vm2120_vm3, %v2747_v2, %v2748_v60  ;;  %v7692_v58 = vld [vmem:[#allocation3_spill] sm:$0xff] }
 0x356   : > { %v2505_v37 = vsel %vm1875_vm2, %v2503_v19, %v7676_v11  ;;  %v7677_v3 = vrot.slane %v6824_v61, 2  ;;  %v7678_v29 = vrot.slane %v6727_v24, 2  ;;  %v7680_v50 = vrot.slane %v6780_v31, 1 }
 0x357   : > { %v2573_v41 = vadd.f32 %v2505_v37, %v2329_v4  ;;  %v2330_v36 = vadd.f32 %v2298_v51, %v7679_v6  ;;  %v7681_v25 = vmov %v7674_v28  ;;  %v7682_v32 = vrot.slane %v6786_v48, 2  ;;  %v7037_v4 = vpop.permute.xlu1 %3445  ;;  %v3585_v6 = vld [vmem:[%s7254_s6] sm:$0xff] }
 0x358   : > { %v2751_v15 = vsel %vm2120_vm3, %v2748_v60, %v7677_v3  ;;  %v3305_v7 = vsel %vm2120_vm3, %v7678_v29, %v3304_v59  ;;  %v3063_v49 = vsel %vm1875_vm2, %v7681_v25, %v7680_v50  ;;  %v7006_v61 = vadd.f32 %v3302_v14, %v3128_v13  ;;  %v7693_v60 = vld [vmem:[#allocation2_spill] sm:$0xff]  ;;  %v7695_v3 = vld [vmem:[#allocation15_spill] sm:$0xff] }
 0x359   : > { %v3307_v23 = vsel %vm2120_vm3, %v3304_v59, %v7682_v32  ;;  %v2817_v40 = vadd.f32 %v2749_v45, %v2573_v41  ;;  %v3378_v24 = vmax.f32 %v7683_v42, 0.0  ;;  %v3377_v62 = vmax.f32 %v7684_v35, 0.0  ;;  %v7694_v59 = vld [vmem:[#allocation40_spill] sm:$0xff]  ;;  %v3586_v25 = vld [vmem:[%s7254_s6 + $0x8] sm:$0xff] }
 0x35a   : > { %v2574_v34 = vadd.f32 %v6849_v12, %v2330_v36  ;;  %v7685_v31 = vrot.slane %v6809_v16, 1  ;;  %v7686_v44 = vrot.slane %v6743_v56, 1  ;;  %v7687_v48 = vrot.slane %v6814_v26, 2  ;;  %3495 = vrot.lane.b32.xlu1 %v7006_v61, %s4336_s25 }
 0x35b   : > { %v7688_v14 = vrot.slane %v6760_v43, 1  ;;  %v7689_v47 = vrot.slane %v6712_v10, 1  ;;  %v2885_v12 = vadd.f32 %v6731_v22, %v2817_v40  ;;  %v2854_v56 = vmul.f32 %v5076_v0, %v6750_v1 }
 0x35c   : > { %v1953_v54 = vsel %vm1875_vm2, %v7686_v44, %v7685_v31  ;;  %v2198_v38 = vsel %vm2120_vm3, %v2196_v52, %v7687_v48  ;;  %v3538_v16 = vmul.f32 %v3444_v46, %v3378_v24  ;;  %v2818_v26 = vadd.f32 %v2751_v15, %v2574_v34  ;;  %v3589_v48 = vld [vmem:[%s7254_s6 + $0x20] sm:$0xff] }
 0x35d   : > { %v2510_v39 = vsel %vm1875_vm2, %v7689_v47, %v7688_v14  ;;  %v2018_v19 = vadd.f32 %v1953_v54, %v6747_v30  ;;  %v3537_v28 = vmul.f32 %v3442_v5, %v3377_v62  ;;  %v7690_v8 = vrot.slane %v6771_v27, 2 }
 0x35e   : > { %v7691_v43 = vrot.slane %v6715_v53, 2  ;;  %v2938_v20 = vmul.f32 %v5058_v33, %v7692_v58  ;;  %v3129_v22 = vadd.f32 %v3061_v18, %v2885_v12  ;;  %v2939_v1 = vmul.f32 %v5058_v33, %v7693_v60 }
 0x35f   : > { %v2263_v2 = vadd.f32 %v2198_v38, %v2018_v19  ;;  %v3182_v30 = vmul.f32 %v5063_v21, %v7692_v58  ;;  %v2886_v52 = vadd.f32 %v2854_v56, %v2818_v26  ;;  %v3183_v53 = vmul.f32 %v5063_v21, %v7693_v60  ;;  %v3590_v38 = vld [vmem:[%s7254_s6 + $0x28] sm:$0xff]  ;;  %v7698_v56 = vld [vmem:[#allocation32_spill] sm:$0xff]  ;;  %v3450_v26 = vpop.permute.xlu0 %3449 }
 0x360   : > { %v2754_v10 = vsel %vm2120_vm3, %v7691_v43, %v7690_v8  ;;  %v3064_v11 = vrot.slane %v2938_v20, 1  ;;  %v2332_v27 = vadd.f32 %v6767_v17, %v6861_v57  ;;  %v7047_v37 = vadd.f32 %v3305_v7, %v3129_v22  ;;  %v7696_v7 = vld [vmem:[#allocation4_spill] sm:$0xff]  ;;  %v7699_v43 = vld [vmem:[#allocation13_spill] sm:$0xff] }
 0x361   : > { %v2331_v51 = vadd.f32 %v7694_v59, %v2263_v2  ;;  %v2855_v18 = vmul.f32 %v5076_v0, %v7692_v58  ;;  %v3065_v13 = vrot.slane %v2939_v1, 1  ;;  %v3130_v41 = vadd.f32 %v3063_v49, %v2886_v52  ;;  %v3588_v49 = vld [vmem:[%s7254_s6 + $0x18] sm:$0xff]  ;;  %v7700_v58 = vld [vmem:[#allocation26_spill] sm:$0xff] }
 0x362   : > { %v3308_v45 = vrot.slane %v3182_v30, 2  ;;  %v2576_v15 = vadd.f32 %v7695_v3, %v2332_v27  ;;  %v2856_v29 = vmul.f32 %v5076_v0, %v7693_v60  ;;  %3497 = vrot.lane.b32.xlu0 %v7047_v37, %s4336_s25  ;;  %v3309_v57 = vrot.slane %v3183_v53, 2  ;;  %v3587_v0 = vld [vmem:[%s7254_s6 + $0x10] sm:$0xff]  ;;  %v7701_v2 = vld [vmem:[#allocation10_spill] sm:$0xff] }
 0x363   : > { %v2575_v17 = vadd.f32 %v2510_v39, %v2331_v51  ;;  %v2940_v36 = vmul.f32 %v5058_v33, %v7696_v7  ;;  %v3184_v50 = vmul.f32 %v5063_v21, %v7696_v7  ;;  %v7073_v32 = vadd.f32 %v3307_v23, %v3130_v41  ;;  %v7697_v33 = vld [vmem:[#allocation28_spill] sm:$0xff]  ;;  %v3448_v21 = vpop.permute.xlu1 %3447 }
 0x364   : > { %v3066_v46 = vsel %vm1875_vm2, %v3064_v11, %v3065_v13  ;;  %v2820_v40 = vadd.f32 %v7697_v33, %v2576_v15  ;;  %v3569_v42 = vpack.c.bf16 %v3538_v16, %v3537_v28  ;;  %v3591_v34 = vpack.c.bf16 %v3586_v25, %v3585_v6  ;;  %v3454_v11 = vpop.permute.xlu0 %3453  ;;  %v7702_v51 = vld [vmem:[#allocation36_spill] sm:$0xff]  ;;  %v7704_v15 = vld [vmem:[#allocation21_spill] sm:$0xff]  ;;  %v7705_v6 = vld [vmem:[#allocation7_spill] sm:$0xff] }
 0x365   : > { %v2819_v24 = vadd.f32 %v2754_v10, %v2575_v17  ;;  %v3067_v35 = vrot.slane %v2940_v36, 1  ;;  %v3311_v62 = vrot.slane %v3184_v50, 2  ;;  %3499 = vrot.lane.b32.xlu1 %v7073_v32, %s4336_s25  ;;  %v3592_v31 = vpack.c.bf16 %v3588_v49, %v3587_v0 }
 0x366   : > { %v2888_v5 = vadd.f32 %v2856_v29, %v2820_v40  ;;  %4061 = vmatprep.mubr.msk.bf16.mxu1 %vm3594_vm4, %v3569_v42  ;;  %v3310_v14 = vsel %vm2120_vm3, %v3308_v45, %v3309_v57  ;;  %4055 = vmatprep.subr.bf16.mxu1 %v3591_v34  ;;  %v3380_v16 = vmax.f32 %v7698_v56, 0.0  ;;  %v3593_v19 = vpack.c.bf16 %v3590_v38, %v3589_v48  ;;  %v7707_v40 = vld [vmem:[#allocation31_spill] sm:$0xff] }
 0x367   : > { %v2887_v23 = vadd.f32 %v2855_v18, %v2819_v24  ;;  %v3068_v44 = vsel %vm1875_vm2, %v3065_v13, %v3067_v35  ;;  %v3312_v54 = vsel %vm2120_vm3, %v3309_v57, %v3311_v62  ;;  %4056 = vmatpush3.bf16.msra.mxu1 %v3591_v34  ;;  %v3452_v28 = vpop.permute.xlu1 %3451  ;;  %v3382_v10 = vmax.f32 %v7699_v43, 0.0  ;;  %v7703_v13 = vld [vmem:[#allocation5_spill] sm:$0xff]  ;;  %v7708_v35 = vld [vmem:[#allocation24_spill] sm:$0xff] }
 0x368   : > { %v3132_v47 = vadd.f32 %v3068_v44, %v2888_v5  ;;  %4057 = vmatprep.subr.bf16.mxu1 %v3592_v31  ;;  %v3379_v20 = vmax.f32 %v7700_v58, 0.0  ;;  %v3540_v22 = vmul.f32 %v3448_v21, %v3380_v16  ;;  %v3381_v60 = vmax.f32 %v7701_v2, 0.0  ;;  %v3458_v3 = vpop.permute.xlu0 %3457  ;;  %v7709_v5 = vld [vmem:[#allocation18_spill] sm:$0xff]  ;;  %v7711_v16 = vld [vmem:[#allocation20_spill] sm:$0xff]  ;;  %v7712_v43 = vld [vmem:[#allocation33_spill] sm:$0xff] }
 0x369   : > { %v3131_v39 = vadd.f32 %v3066_v46, %v2887_v23  ;;  %v3542_v1 = vmul.f32 %v3452_v28, %v3382_v10  ;;  %v3384_v18 = vmax.f32 %v7702_v51, 0.0  ;;  %v3383_v41 = vmax.f32 %v7703_v13, 0.0  ;;  %v7706_v46 = vld [vmem:[#allocation45_spill] sm:$0xff]  ;;  %v7713_v58 = vld [vmem:[#allocation14_spill] sm:$0xff]  ;;  %v7715_v51 = vld [vmem:[#allocation12_spill] sm:$0xff] }
 0x36a   : > { %v7089_v12 = vadd.f32 %v3312_v54, %v3132_v47  ;;  %v3539_v30 = vmul.f32 %v7037_v4, %v3379_v20  ;;  %v3541_v53 = vmul.f32 %v3450_v26, %v3381_v60  ;;  %v3386_v29 = vmax.f32 %v7704_v15, 0.0 }
 0x36b   : > { %v7092_v8 = vadd.f32 %v3310_v14, %v3131_v39  ;;  %4058 = vmatpush3.bf16.msra.mxu1 %v3592_v31  ;;  %v3456_v52 = vpop.permute.xlu1 %3455  ;;  %v3385_v17 = vmax.f32 %v7705_v6, 0.0  ;;  %v3543_v57 = vmul.f32 %v3454_v11, %v3383_v41  ;;  %v3388_v33 = vmax.f32 %v7706_v46, 0.0  ;;  %v7710_v39 = vld [vmem:[#allocation9_spill] sm:$0xff]  ;;  %v7717_v6 = vld [vmem:[#allocation43_spill] sm:$0xff] }
 0x36c   : > { %3503 = vrot.lane.b32.xlu1 %v7089_v12, %s4336_s25  ;;  %4059 = vmatprep.subr.bf16.mxu1 %v3593_v19  ;;  %v3570_v27 = vpack.c.bf16 %v3540_v22, %v3539_v30  ;;  %v3571_v59 = vpack.c.bf16 %v3542_v1, %v3541_v53  ;;  %v3544_v4 = vmul.f32 %v3456_v52, %v3384_v18  ;;  %v3462_v25 = vpop.permute.xlu0 %3461  ;;  %v3387_v42 = vmax.f32 %v7707_v40, 0.0 }
 0x36d   : > { %3501 = vrot.lane.b32.xlu0 %v7092_v8, %s4336_s25  ;;  %v3545_v36 = vmul.f32 %v3458_v3, %v3385_v17  ;;  %v3390_v62 = vmax.f32 %v7708_v35, 0.0  ;;  %v3389_v34 = vmax.f32 %v7709_v5, 0.0  ;;  %v3392_v56 = vmax.f32 %v7710_v39, 0.0  ;;  %v7716_v3 = vld [vmem:[#allocation27_spill] sm:$0xff] }
 0x36e   : > { %v3572_v0 = vpack.c.bf16 %v3544_v4, %v3543_v57  ;;  %v3547_v23 = vmul.f32 %v3462_v25, %v3387_v42  ;;  %v3394_v10 = vmax.f32 %v7712_v43, 0.0  ;;  %v3393_v20 = vmax.f32 %v7713_v58, 0.0  ;;  %v7718_v25 = vld [vmem:[#allocation30_spill] sm:$0xff] }
 0x36f   : > { %4060 = vmatpush3.bf16.msra.mxu1 %v3593_v19  ;;  %v3460_v45 = vpop.permute.xlu1 %3459  ;;  %v3391_v19 = vmax.f32 %v7711_v16, 0.0  ;;  %v3395_v18 = vmax.f32 %v7715_v51, 0.0  ;;  %v3397_v15 = vmax.f32 %v7716_v3, 0.0  ;;  %v3398_v17 = vmax.f32 %v7717_v6, 0.0  ;;  %v4299_v51 = vld [vmem:[%s4397_s9 + $0x30] sm:$0xff] }
 0x370   : > { %v3546_v7 = vmul.f32 %v3460_v45, %v3386_v29  ;;  %v3466_v24 = vpop.permute.xlu0 %3465  ;;  %v3407_v43 = vmax.f32 %v7092_v8, 0.0 }
 0x371   : > { %v3549_v54 = vmul.f32 %v3466_v24, %v3389_v34  ;;  %v3401_v24 = vmax.f32 %v6917_v63, 0.0  ;;  %v3405_v63 = vmax.f32 %v7047_v37, 0.0 }
 0x372   : > { %4062 = vmatmul.mubr.msk.bf16.vlgmr.msra.gmra.mrb[0].mxu1 %vm3594_vm4, %v3570_v27  ;;  %v3573_v49 = vpack.c.bf16 %v3546_v7, %v3545_v36  ;;  %v7714_v27 = vld [vmem:[#allocation34_spill] sm:$0xff] }
 0x373   : > { %4065 = vmatprep.mubr.msk.bf16.mxu1 %vm3594_vm4, %v3571_v59  ;;  %v3464_v50 = vpop.permute.xlu1 %3463  ;;  %v3396_v59 = vmax.f32 %v7714_v27, 0.0 }
 0x374   : > { %v3548_v31 = vmul.f32 %v3464_v50, %v3388_v33  ;;  %v3470_v38 = vpop.permute.xlu0 %3469 }
 0x375   : > { %v3551_v2 = vmul.f32 %v3470_v38, %v3391_v19 }
 0x376   : > { %v3574_v14 = vpack.c.bf16 %v3548_v31, %v3547_v23 }
 0x377   : > { %v3468_v21 = vpop.permute.xlu1 %3467 }
 0x378   : > { %v3550_v44 = vmul.f32 %v3468_v21, %v3390_v62  ;;  %v3474_v28 = vpop.permute.xlu0 %3473  ;;  %v3402_v62 = vmax.f32 %v6933_v9, 0.0 }
 0x379   : > { %v3553_v1 = vmul.f32 %v3474_v28, %v3393_v20 }
 0x37a   : > { %4066 = vmatmul.mubr.msk.bf16.gmra.mrb[4].mxu1 %vm3594_vm4, %v3572_v0  ;;  %v3575_v47 = vpack.c.bf16 %v3550_v44, %v3549_v54  ;;  %v3399_v0 = vmax.f32 %v7718_v25, 0.0  ;;  %v3403_v54 = vmax.f32 %v6973_v55, 0.0  ;;  %v4304_v25 = vld [vmem:[%s4397_s9 + $0x40] sm:$0xff] }
 0x37b   : > { %4069 = vmatprep.mubr.msk.bf16.mxu1 %vm3594_vm4, %v3573_v49  ;;  %v3472_v48 = vpop.permute.xlu1 %3471  ;;  %v7719_v49 = vld [vmem:[#allocation47_spill] sm:$0xff] }
 0x37c   : > { %v3552_v22 = vmul.f32 %v3472_v48, %v3392_v56  ;;  %v3478_v53 = vpop.permute.xlu0 %3477  ;;  %v3400_v46 = vmax.f32 %v7719_v49, 0.0  ;;  %v3404_v48 = vmax.f32 %v7006_v61, 0.0  ;;  %v3406_v56 = vmax.f32 %v7073_v32, 0.0 }
 0x37d   : > { %v3555_v41 = vmul.f32 %v3478_v53, %v3395_v18  ;;  %v3408_v61 = vmax.f32 %v7089_v12, 0.0  ;;  %v4295_v12 = vld [vmem:[%s4397_s9 + $0x10] sm:$0xff]  ;;  %v4298_v53 = vld [vmem:[%s4397_s9 + $0x8] sm:$0xff] }
 0x37e   : > { %v3576_v30 = vpack.c.bf16 %v3552_v22, %v3551_v2  ;;  %v4296_v2 = vld [vmem:[%s4397_s9] sm:$0xff] }
 0x37f   : > { %v3476_v26 = vpop.permute.xlu1 %3475 }
 0x380   : > { %v3554_v60 = vmul.f32 %v3476_v26, %v3394_v10 }
 0x382   : > { %4070 = vmatmul.mubr.msk.bf16.gmra.mrb[8].mxu1 %vm3594_vm4, %v3574_v14  ;;  %v3577_v52 = vpack.c.bf16 %v3554_v60, %v3553_v1 }
 0x383   : > { %4073 = vmatprep.mubr.msk.bf16.mxu1 %vm3594_vm4, %v3575_v47  ;;  %v3480_v11 = vpop.permute.xlu1 %3479 }
 0x384   : > { %v3556_v13 = vmul.f32 %v3480_v11, %v3396_v59 }
 0x386   : > { %v3578_v45 = vpack.c.bf16 %v3556_v13, %v3555_v41  ;;  %v4300_v41 = vld [vmem:[%s4397_s9 + $0x20] sm:$0xff] }
 0x38a   : > { %4074 = vmatmul.mubr.msk.bf16.gmra.mrb[12].mxu1 %vm3594_vm4, %v3576_v30  ;;  %v4297_v30 = vld [vmem:[%s4397_s9 + $0x18] sm:$0xff] }
 0x38b   : > { %4077 = vmatprep.mubr.msk.bf16.mxu1 %vm3594_vm4, %v3577_v52 }
 0x392   : > { %4078 = vmatmul.mubr.msk.bf16.gmra.mrb[16].mxu1 %vm3594_vm4, %v3578_v45 }
 0x393   : > { %v3482_v29 = vpop.permute.xlu0 %3481 }
 0x394   : > { %v3557_v4 = vmul.f32 %v3482_v29, %v3397_v15  ;;  %v4301_v15 = vld [vmem:[%s4397_s9 + $0x38] sm:$0xff] }
 0x395   : > { %v3484_v57 = vpop.permute.xlu1 %3483 }
 0x396   : > { %v3558_v7 = vmul.f32 %v3484_v57, %v3398_v17  ;;  %v4302_v17 = vld [vmem:[%s4397_s9 + $0x28] sm:$0xff] }
 0x398   : > { %v3579_v36 = vpack.c.bf16 %v3558_v7, %v3557_v4  ;;  %v4303_v7 = vld [vmem:[%s4397_s9 + $0x50] sm:$0xff] }
 0x39a   : > { %4081 = vmatprep.mubr.msk.bf16.mxu1 %vm3594_vm4, %v3579_v36 }
 0x39e   : > { %v3486_v50 = vpop.permute.xlu0 %3485 }
 0x39f   : > { %v3559_v33 = vmul.f32 %v3486_v50, %v3399_v0 }
 0x3a3   : > { %v3488_v40 = vpop.permute.xlu1 %3487 }
 0x3a4   : > { %v3560_v42 = vmul.f32 %v3488_v40, %v3400_v46  ;;  %v4305_v46 = vld [vmem:[%s4397_s9 + $0x58] sm:$0xff] }
 0x3a6   : > { %v3580_v21 = vpack.c.bf16 %v3560_v42, %v3559_v33  ;;  %v4306_v42 = vld [vmem:[%s4397_s9 + $0x48] sm:$0xff] }
 0x3a8   : > { %4082 = vmatmul.mubr.msk.bf16.gmra.mrb[20].mxu1 %vm3594_vm4, %v3580_v21 }
 0x3bb   : > { %v3490_v35 = vpop.permute.xlu0 %3489 }
 0x3bc   : > { %v3561_v5 = vmul.f32 %v3490_v35, %v3401_v24  ;;  %v4307_v35 = vld [vmem:[%s4397_s9 + $0x70] sm:$0xff] }
 0x3be   : > { %v3492_v34 = vpop.permute.xlu1 %3491 }
 0x3bf   : > { %v3562_v31 = vmul.f32 %v3492_v34, %v3402_v62  ;;  %v4308_v34 = vld [vmem:[%s4397_s9 + $0x60] sm:$0xff] }
 0x3c1   : > { %v3581_v23 = vpack.c.bf16 %v3562_v31, %v3561_v5 }
 0x3c3   : > { %4085 = vmatprep.mubr.msk.bf16.mxu1 %vm3594_vm4, %v3581_v23 }
 0x3c5   : > { %v3494_v44 = vpop.permute.xlu0 %3493 }
 0x3c6   : > { %v3563_v38 = vmul.f32 %v3494_v44, %v3403_v54  ;;  %v4309_v44 = vld [vmem:[%s4397_s9 + $0x78] sm:$0xff] }
 0x3cc   : > { %v3496_v14 = vpop.permute.xlu1 %3495 }
 0x3cd   : > { %v3564_v47 = vmul.f32 %v3496_v14, %v3404_v48 }
 0x3cf   : > { %v3582_v39 = vpack.c.bf16 %v3564_v47, %v3563_v38  ;;  %v4310_v38 = vld [vmem:[%s4397_s9 + $0x68] sm:$0xff] }
 0x3d1   : > { %4086 = vmatmul.mubr.msk.bf16.gmra.mrb[24].mxu1 %vm3594_vm4, %v3582_v39  ;;  %v4311_v39 = vld [vmem:[%s4397_s9 + $0x90] sm:$0xff] }
 0x3d4   : > { %v3498_v9 = vpop.permute.xlu0 %3497 }
 0x3d5   : > { %v3565_v16 = vmul.f32 %v3498_v9, %v3405_v63 }
 0x3d7   : > { %v3500_v19 = vpop.permute.xlu1 %3499 }
 0x3d8   : > { %v3566_v26 = vmul.f32 %v3500_v19, %v3406_v56  ;;  %v4312_v56 = vld [vmem:[%s4397_s9 + $0x80] sm:$0xff] }
 0x3da   : > { %v3583_v55 = vpack.c.bf16 %v3566_v26, %v3565_v16  ;;  %v4313_v26 = vld [vmem:[%s4397_s9 + $0x98] sm:$0xff] }
 0x3dc   : > { %4089 = vmatprep.mubr.msk.bf16.mxu1 %vm3594_vm4, %v3583_v55 }
 0x3de   : > { %v3504_v28 = vpop.permute.xlu1 %3503 }
 0x3df   : > { %v3568_v10 = vmul.f32 %v3504_v28, %v3408_v61  ;;  %v3502_v37 = vpop.permute.xlu0 %3501  ;;  %v4314_v28 = vld [vmem:[%s4397_s9 + $0x88] sm:$0xff] }
 0x3e0   : > { %v3567_v58 = vmul.f32 %v3502_v37, %v3407_v43  ;;  %v4315_v37 = vld [vmem:[%s4397_s9 + $0xb0] sm:$0xff] }
 0x3e2   : > { %v3584_v20 = vpack.c.bf16 %v3568_v10, %v3567_v58 }
 0x3e4   : > { %4090 = vmatmul.mubr.msk.bf16.gmra.mrb[28].mxu1 %vm3594_vm4, %v3584_v20 }
 0x445   : > { %v4063_v32 = vpop.f32.mrb[0].mxu1 }
 0x446   : > { %v3806_v8 = vadd.f32 %v4295_v12, %v4063_v32  ;;  %v3677_v22 = vpop.f32.mrb[1].mxu1  ;;  %v4316_v32 = vld [vmem:[%s4397_s9 + $0xa0] sm:$0xff] }
 0x447   : > { %v3804_v60 = vadd.f32 %v4296_v2, %v3677_v22  ;;  %v4064_v1 = vpop.f32.mrb[2].mxu1  ;;  %v4317_v22 = vld [vmem:[%s4397_s9 + $0xb8] sm:$0xff] }
 0x448   : > { %3838 = vst.msk [vmem:[%s7147_s19 + $0x10] sm:$0xff] %vm365_vm0, %v3806_v8  ;;  %v3807_v52 = vadd.f32 %v4297_v30, %v4064_v1  ;;  %v3680_v11 = vpop.f32.mrb[3].mxu1  ;;  %v4318_v1 = vld [vmem:[%s4397_s9 + $0xa8] sm:$0xff] }
 0x449   : > { %3836 = vst.msk [vmem:[%s7147_s19] sm:$0xff] %vm365_vm0, %v3804_v60  ;;  %v3805_v27 = vadd.f32 %v4298_v53, %v3680_v11  ;;  %v4319_v11 = vld [vmem:[%s4397_s9 + $0xd0] sm:$0xff] }
 0x44a   : > { %3839 = vst.msk [vmem:[%s7147_s19 + $0x18] sm:$0xff] %vm365_vm0, %v3807_v52 }
 0x44b   : > { %3837 = vst.msk [vmem:[%s7147_s19 + $0x8] sm:$0xff] %vm365_vm0, %v3805_v27 }
 0x44d   : > { %v4067_v59 = vpop.f32.mrb[4].mxu1 }
 0x44e   : > { %v3810_v18 = vadd.f32 %v4299_v51, %v4067_v59  ;;  %v3693_v13 = vpop.f32.mrb[5].mxu1  ;;  %v4320_v59 = vld [vmem:[%s4397_s9 + $0xc0] sm:$0xff] }
 0x44f   : > { %v3808_v45 = vadd.f32 %v4300_v41, %v3693_v13  ;;  %v4068_v3 = vpop.f32.mrb[6].mxu1  ;;  %v4321_v13 = vld [vmem:[%s4397_s9 + $0xd8] sm:$0xff] }
 0x450   : > { %3842 = vst.msk [vmem:[%s7147_s19 + $0x30] sm:$0xff] %vm365_vm0, %v3810_v18  ;;  %v3811_v29 = vadd.f32 %v4301_v15, %v4068_v3  ;;  %v3696_v6 = vpop.f32.mrb[7].mxu1  ;;  %v4322_v3 = vld [vmem:[%s4397_s9 + $0xc8] sm:$0xff] }
 0x451   : > { %3840 = vst.msk [vmem:[%s7147_s19 + $0x20] sm:$0xff] %vm365_vm0, %v3808_v45  ;;  %v3809_v4 = vadd.f32 %v4302_v17, %v3696_v6  ;;  %v4323_v6 = vld [vmem:[%s4397_s9 + $0xf0] sm:$0xff] }
 0x452   : > { %3843 = vst.msk [vmem:[%s7147_s19 + $0x38] sm:$0xff] %vm365_vm0, %v3811_v29 }
 0x453   : > { %3841 = vst.msk [vmem:[%s7147_s19 + $0x28] sm:$0xff] %vm365_vm0, %v3809_v4 }
 0x455   : > { %v4071_v57 = vpop.f32.mrb[8].mxu1 }
 0x456   : > { %v3814_v36 = vadd.f32 %v4303_v7, %v4071_v57  ;;  %v3709_v50 = vpop.f32.mrb[9].mxu1  ;;  %v4324_v57 = vld [vmem:[%s4397_s9 + $0xe0] sm:$0xff] }
 0x457   : > { %v3812_v0 = vadd.f32 %v4304_v25, %v3709_v50  ;;  %v4072_v49 = vpop.f32.mrb[10].mxu1  ;;  %v4325_v50 = vld [vmem:[%s4397_s9 + $0xf8] sm:$0xff] }
 0x458   : > { %3846 = vst.msk [vmem:[%s7147_s19 + $0x50] sm:$0xff] %vm365_vm0, %v3814_v36  ;;  %v3815_v33 = vadd.f32 %v4305_v46, %v4072_v49  ;;  %v3712_v40 = vpop.f32.mrb[11].mxu1  ;;  %v4326_v49 = vld [vmem:[%s4397_s9 + $0xe8] sm:$0xff] }
 0x459   : > { %3844 = vst.msk [vmem:[%s7147_s19 + $0x40] sm:$0xff] %vm365_vm0, %v3812_v0  ;;  %v3813_v21 = vadd.f32 %v4306_v42, %v3712_v40 }
 0x45a   : > { %3847 = vst.msk [vmem:[%s7147_s19 + $0x58] sm:$0xff] %vm365_vm0, %v3815_v33 }
 0x45b   : > { %3845 = vst.msk [vmem:[%s7147_s19 + $0x48] sm:$0xff] %vm365_vm0, %v3813_v21 }
 0x45d   : > { %v4075_v24 = vpop.f32.mrb[12].mxu1 }
 0x45e   : > { %v3818_v62 = vadd.f32 %v4307_v35, %v4075_v24  ;;  %v3725_v5 = vpop.f32.mrb[13].mxu1 }
 0x45f   : > { %v3816_v31 = vadd.f32 %v4308_v34, %v3725_v5  ;;  %v4076_v23 = vpop.f32.mrb[14].mxu1 }
 0x460   : > { %3850 = vst.msk [vmem:[%s7147_s19 + $0x70] sm:$0xff] %vm365_vm0, %v3818_v62  ;;  %v3819_v54 = vadd.f32 %v4309_v44, %v4076_v23  ;;  %v3728_v48 = vpop.f32.mrb[15].mxu1 }
 0x461   : > { %3848 = vst.msk [vmem:[%s7147_s19 + $0x60] sm:$0xff] %vm365_vm0, %v3816_v31  ;;  %v3817_v14 = vadd.f32 %v4310_v38, %v3728_v48 }
 0x462   : > { %3851 = vst.msk [vmem:[%s7147_s19 + $0x78] sm:$0xff] %vm365_vm0, %v3819_v54 }
 0x463   : > { %3849 = vst.msk [vmem:[%s7147_s19 + $0x68] sm:$0xff] %vm365_vm0, %v3817_v14 }
 0x465   : > { %v4079_v47 = vpop.f32.mrb[16].mxu1 }
 0x466   : > { %v3822_v63 = vadd.f32 %v4311_v39, %v4079_v47  ;;  %v3741_v9 = vpop.f32.mrb[17].mxu1 }
 0x467   : > { %v3820_v16 = vadd.f32 %v4312_v56, %v3741_v9  ;;  %v4080_v19 = vpop.f32.mrb[18].mxu1 }
 0x468   : > { %3854 = vst.msk [vmem:[%s7147_s19 + $0x90] sm:$0xff] %vm365_vm0, %v3822_v63  ;;  %v3823_v55 = vadd.f32 %v4313_v26, %v4080_v19  ;;  %v3744_v61 = vpop.f32.mrb[19].mxu1 }
 0x469   : > { %3852 = vst.msk [vmem:[%s7147_s19 + $0x80] sm:$0xff] %vm365_vm0, %v3820_v16  ;;  %v3821_v43 = vadd.f32 %v4314_v28, %v3744_v61 }
 0x46a   : > { %3855 = vst.msk [vmem:[%s7147_s19 + $0x98] sm:$0xff] %vm365_vm0, %v3823_v55 }
 0x46b   : > { %3853 = vst.msk [vmem:[%s7147_s19 + $0x88] sm:$0xff] %vm365_vm0, %v3821_v43 }
 0x47b   : > { %v4083_v10 = vpop.f32.mrb[20].mxu1 }
 0x47c   : > { %v3826_v58 = vadd.f32 %v4315_v37, %v4083_v10  ;;  %v3757_v20 = vpop.f32.mrb[21].mxu1 }
 0x47d   : > { %v3824_v12 = vadd.f32 %v4316_v32, %v3757_v20  ;;  %v4084_v8 = vpop.f32.mrb[22].mxu1 }
 0x47e   : > { %3858 = vst.msk [vmem:[%s7147_s19 + $0xb0] sm:$0xff] %vm365_vm0, %v3826_v58  ;;  %v3827_v2 = vadd.f32 %v4317_v22, %v4084_v8  ;;  %v3760_v60 = vpop.f32.mrb[23].mxu1 }
 0x47f   : > { %3856 = vst.msk [vmem:[%s7147_s19 + $0xa0] sm:$0xff] %vm365_vm0, %v3824_v12  ;;  %v3825_v30 = vadd.f32 %v4318_v1, %v3760_v60 }
 0x480   : > { %3859 = vst.msk [vmem:[%s7147_s19 + $0xb8] sm:$0xff] %vm365_vm0, %v3827_v2 }
 0x481   : > { %3857 = vst.msk [vmem:[%s7147_s19 + $0xa8] sm:$0xff] %vm365_vm0, %v3825_v30 }
 0x4a4   : > { %v4087_v52 = vpop.f32.mrb[24].mxu1 }
 0x4a5   : > { %v3830_v53 = vadd.f32 %v4319_v11, %v4087_v52  ;;  %v3773_v27 = vpop.f32.mrb[25].mxu1 }
 0x4a6   : > { %v3828_v51 = vadd.f32 %v4320_v59, %v3773_v27  ;;  %v4088_v18 = vpop.f32.mrb[26].mxu1 }
 0x4a7   : > { %3862 = vst.msk [vmem:[%s7147_s19 + $0xd0] sm:$0xff] %vm365_vm0, %v3830_v53  ;;  %v3831_v41 = vadd.f32 %v4321_v13, %v4088_v18  ;;  %v3776_v45 = vpop.f32.mrb[27].mxu1 }
 0x4a8   : > { %3860 = vst.msk [vmem:[%s7147_s19 + $0xc0] sm:$0xff] %vm365_vm0, %v3828_v51  ;;  %v3829_v15 = vadd.f32 %v4322_v3, %v3776_v45 }
 0x4a9   : > { %3863 = vst.msk [vmem:[%s7147_s19 + $0xd8] sm:$0xff] %vm365_vm0, %v3831_v41 }
 0x4aa   : > { %3861 = vst.msk [vmem:[%s7147_s19 + $0xc8] sm:$0xff] %vm365_vm0, %v3829_v15 }
 0x4b7   : > { %v4091_v29 = vpop.f32.mrb[28].mxu1 }
 0x4b8   : > { %v3834_v17 = vadd.f32 %v4323_v6, %v4091_v29  ;;  %v3789_v4 = vpop.f32.mrb[29].mxu1 }
 0x4b9   : > { %v3832_v7 = vadd.f32 %v4324_v57, %v3789_v4  ;;  %v4092_v36 = vpop.f32.mrb[30].mxu1 }
 0x4ba   : > { %3866 = vst.msk [vmem:[%s7147_s19 + $0xf0] sm:$0xff] %vm365_vm0, %v3834_v17  ;;  %v3835_v25 = vadd.f32 %v4325_v50, %v4092_v36  ;;  %v3792_v0 = vpop.f32.mrb[31].mxu1 }
 0x4bb   : > { %3864 = vst.msk [vmem:[%s7147_s19 + $0xe0] sm:$0xff] %vm365_vm0, %v3832_v7  ;;  %v3833_v46 = vadd.f32 %v4326_v49, %v3792_v0 }
 0x4bc   : > { %3867 = vst.msk [vmem:[%s7147_s19 + $0xf8] sm:$0xff] %vm365_vm0, %v3835_v25 }
 0x4bd   : > { %3865 = vst.msk [vmem:[%s7147_s19 + $0xe8] sm:$0xff] %vm365_vm0, %v3833_v46 }
 0x4be PF: > { %s17_s24 = sadd.s32 1, %s4333_s24  }
 0x4bf   : > { %p14_p4 = scmp.ge.s32.totalorder %s17_s24, 4  }
 0x4c1   :  { %16 = sbr.rel (!%p14_p4) target bundleno = 1 (0x1), region = 81 }

</bundles_post_ra>
